<compile_context>
chip_gen: v5e
topology: v5e:2x2
jax: 0.10.0
libtpu: 0.0.40
codegen_flags: <defaults>
</compile_context>

<pallas_src>
import jax
import jax.numpy as jnp
from jax.experimental import pallas as pl
from jax.experimental.pallas import tpu as pltpu

LANE = 128
SUBLANE = 8

_GATE_PERM = (0, 1, 3, 2)   # PyTorch gate order (i, f, g, o) -> (i, f, o, g)
_VMEM_LIMIT_CACHE = [None]


def _round_up(n, m):
    return ((n + m - 1) // m) * m


def _chunk_that_divides(n, cap):
    """Largest divisor of n that is <= cap (>=1)."""
    c = max(1, min(n, cap))
    while n % c:
        c -= 1
    return c


def _vmem_limit():
    """Scoped-VMEM budget, scaled to the chip generation (v7x has 64 MiB)."""
    if _VMEM_LIMIT_CACHE[0] is None:
        try:
            cap = int(pltpu.get_tpu_info().vmem_capacity_bytes)
            if cap <= 0:
                raise ValueError("bad vmem capacity")
        except Exception:
            cap = 64 << 20
        _VMEM_LIMIT_CACHE[0] = int(min(96 << 20, max(32 << 20, cap // 2)))
    return _VMEM_LIMIT_CACHE[0]


def _pick_ts_rec(seq, bp, inp, hp, vmem_limit):
    """Recurrence time-chunk: as big as fits (cap 64) given the VMEM budget.

    Counts the double-buffered x / y chunk blocks, the f32 gx scratch, the
    double-buffered bf16 weights (constant index_map), states and bias.
    """
    g4 = 4 * hp
    fixed = 2 * 2 * (inp * g4 + hp * g4) + 5 * 4 * bp * hp + 2 * 4 * g4
    budget = max((vmem_limit * 3) // 4 - fixed, 64 * 1024)
    per_ts = bp * (2 * 4 * inp + 2 * 4 * hp + 4 * g4)
    cap = max(1, budget // per_ts)
    return _chunk_that_divides(seq, min(64, cap))


# --------------------- Fused LSTM layer (projection + recurrence) ------------
def lstm_layer_kernel(x_ref, wih_ref, b_ref, whh_ref, h0_ref, c0_ref,
                      y_ref, hn_ref, cn_ref, gx_ref):
    """One time-chunk of one LSTM layer.

    x_ref  : (ts, B, In)  f32   layer input chunk (time-major)
    wih_ref: (In, 4H)     bf16  pre-transposed, gate-blocked, padded
    b_ref  : (1, 4H)      f32   b_ih + b_hh (gate-blocked, padded)
    whh_ref: (H, 4H)      bf16  pre-transposed recurrent weights
    h0,c0  : (B, H)       f32   initial state (used only at the first chunk)
    y_ref  : (ts, B, H)   f32   per-timestep hidden states
    hn,cn  : (B, H)       f32   VMEM-resident carry (constant index_map)
    gx_ref : (ts, B, 4H)  f32   VMEM scratch for input-side pre-activations
    """
    blk = pl.program_id(0)
    ts, bp, inp = x_ref.shape
    hp = hn_ref.shape[1]

    # Hoisted input projection for the whole chunk: one bf16 MXU GEMM.
    x2 = x_ref[...].reshape(ts * bp, inp).astype(jnp.bfloat16)
    gx = jnp.dot(x2, wih_ref[...], preferred_element_type=jnp.float32)
    gx_ref[...] = gx.reshape(ts, bp, 4 * hp) + b_ref[...]

    @pl.when(blk == 0)
    def _():
        hn_ref[...] = h0_ref[...]
        cn_ref[...] = c0_ref[...]

    def step(i, carry):
        h, c = carry
        gates = gx_ref[i] + jnp.dot(h.astype(jnp.bfloat16), whh_ref[...],
                                    preferred_element_type=jnp.float32)
        # Gates packed (i, f, o, g): one sigmoid over a contiguous 3H slab.
        sig = jax.nn.sigmoid(gates[:, :3 * hp])
        i_g = sig[:, 0 * hp:1 * hp]
        f_g = sig[:, 1 * hp:2 * hp]
        o_g = sig[:, 2 * hp:3 * hp]
        g_g = jnp.tanh(gates[:, 3 * hp:])
        c_new = f_g * c + i_g * g_g
        h_new = o_g * jnp.tanh(c_new)
        y_ref[i] = h_new
        return (h_new, c_new)

    h_fin, c_fin = jax.lax.fori_loop(
        0, ts, step, (hn_ref[...], cn_ref[...]), unroll=min(8, ts))
    hn_ref[...] = h_fin
    cn_ref[...] = c_fin


def lstm_layer(x_tm, w_ih_t, w_hh_t, b, h0, c0, vmem_limit):
    """One LSTM layer.  x_tm: (seq, Bp, In) time-major f32, padded shapes."""
    seq, bp, inp = x_tm.shape
    hp = h0.shape[-1]
    g4 = 4 * hp
    ts = _pick_ts_rec(seq, bp, inp, hp, vmem_limit)

    y, hn, cn = pl.pallas_call(
        lstm_layer_kernel,
        out_shape=(jax.ShapeDtypeStruct((seq, bp, hp), jnp.float32),
                   jax.ShapeDtypeStruct((bp, hp), jnp.float32),
                   jax.ShapeDtypeStruct((bp, hp), jnp.float32)),
        grid=(seq // ts,),
        in_specs=[pl.BlockSpec((ts, bp, inp), lambda t: (t, 0, 0)),
                  pl.BlockSpec((inp, g4), lambda t: (0, 0)),
                  pl.BlockSpec((1, g4), lambda t: (0, 0)),
                  pl.BlockSpec((hp, g4), lambda t: (0, 0)),
                  pl.BlockSpec((bp, hp), lambda t: (0, 0)),
                  pl.BlockSpec((bp, hp), lambda t: (0, 0))],
        out_specs=(pl.BlockSpec((ts, bp, hp), lambda t: (t, 0, 0)),
                   pl.BlockSpec((bp, hp), lambda t: (0, 0)),
                   pl.BlockSpec((bp, hp), lambda t: (0, 0))),
        scratch_shapes=[pltpu.VMEM((ts, bp, g4), jnp.float32)],
        compiler_params=pltpu.CompilerParams(
            dimension_semantics=("arbitrary",),
            vmem_limit_bytes=vmem_limit),
    )(x_tm, w_ih_t, b, w_hh_t, h0, c0)
    return y, hn, cn


# ------------------------------- FC head kernel ------------------------------
def fc_kernel(x_ref, w1_ref, b1_ref, w2_ref, b2_ref, w3_ref, b3_ref, o_ref):
    """Linear(H,4H) -> Linear(4H,H) -> Linear(H,2pad) -> Sigmoid.

    Weights are pre-transposed (in, out), bf16, zero-padded; output last dim
    is padded to 128 lanes (lane-dense store), real logits in columns 0..1.
    """
    x = x_ref[...].astype(jnp.bfloat16)
    h1 = jnp.dot(x, w1_ref[...], preferred_element_type=jnp.float32) + b1_ref[...]
    h2 = jnp.dot(h1.astype(jnp.bfloat16), w2_ref[...],
                 preferred_element_type=jnp.float32) + b2_ref[...]
    h3 = jnp.dot(h2.astype(jnp.bfloat16), w3_ref[...],
                 preferred_element_type=jnp.float32) + b3_ref[...]
    o_ref[...] = jax.nn.sigmoid(h3)


def fc_forward(x, fc_packed, vmem_limit):
    """x: (Bp, Hp) f32 — last-timestep hidden only, so the slab is tiny."""
    w1t, b1, w2t, b2, w3t, b3 = fc_packed
    bp = x.shape[0]
    return pl.pallas_call(
        fc_kernel,
        out_shape=jax.ShapeDtypeStruct((bp, w3t.shape[1]), jnp.float32),
        in_specs=[pl.BlockSpec(memory_space=pltpu.MemorySpace.VMEM)] * 7,
        out_specs=pl.BlockSpec(memory_space=pltpu.MemorySpace.VMEM),
        compiler_params=pltpu.CompilerParams(vmem_limit_bytes=vmem_limit),
    )(x, w1t, b1, w2t, b2, w3t, b3)


# ------------------------- Param packing (pad + transpose) -------------------
def pack_params(params):
    """Pad feature dims to 128 lanes, reorder gates, pre-transpose, cast
    matmul weights (and the embedding table) to bf16.  Done once."""
    hd = params["hidden_dim"]
    emb = params["embedding"].astype(jnp.float32)
    vocab, ed = emb.shape
    hp = _round_up(hd, LANE)
    ep = _round_up(ed, LANE)
    f1 = _round_up(4 * hd, LANE)
    outp = _round_up(2, LANE)

    perm = jnp.array(_GATE_PERM)

    emb_p = jnp.zeros((vocab, ep), jnp.float32).at[:, :ed].set(emb)
    emb_p = emb_p.astype(jnp.bfloat16)

    lstm_p = []
    for layer in range(3):
        w_ih, w_hh, bvec = params["lstm"][layer]
        in_dim = w_ih.shape[1]
        inp = ep if layer == 0 else hp
        # Gate-blocked, reordered (i,f,o,g), zero-padded so each gate occupies
        # a lane-aligned slab; then transposed to (In, 4H) / (H, 4H).
        wi4 = w_ih.reshape(4, hd, in_dim)[perm]
        wh4 = w_hh.reshape(4, hd, hd)[perm]
        b4 = bvec.reshape(4, hd)[perm]
        wi = jnp.zeros((4, hp, inp), jnp.float32).at[:, :hd, :in_dim].set(wi4)
        wh = jnp.zeros((4, hp, hp), jnp.float32).at[:, :hd, :hd].set(wh4)
        bb = jnp.zeros((4, hp), jnp.float32).at[:, :hd].set(b4)
        lstm_p.append((wi.reshape(4 * hp, inp).T.astype(jnp.bfloat16),
                       wh.reshape(4 * hp, hp).T.astype(jnp.bfloat16),
                       bb.reshape(1, 4 * hp)))

    (w1, b1), (w2, b2), (w3, b3) = params["fc"]

    def pad_linear(w, bvec, in_p, out_p):
        out_f, in_f = w.shape
        wt = jnp.zeros((in_p, out_p), jnp.float32).at[:in_f, :out_f].set(w.T)
        bp_ = jnp.zeros((1, out_p), jnp.float32).at[:, :out_f].set(
            bvec.reshape(1, -1))
        return wt.astype(jnp.bfloat16), bp_

    w1t, b1p = pad_linear(w1, b1, hp, f1)
    w2t, b2p = pad_linear(w2, b2, f1, hp)
    w3t, b3p = pad_linear(w3, b3, hp, outp)

    return {"embedding": emb_p,
            "lstm": lstm_p,
            "fc": (w1t, b1p, w2t, b2p, w3t, b3p),
            "hidden_dim": hd,
            "hidden_pad": hp}


# ------------------------------- Full forward --------------------------------
def lstm_model_forward(ids, packed, hidden=None):
    """ids: (batch, max_len) int32. Returns (last_outputs, (h_n, c_n))."""
    batch, max_len = ids.shape
    hd = packed["hidden_dim"]
    hp = packed["hidden_pad"]
    bp = _round_up(batch, SUBLANE)
    vmem_limit = _vmem_limit()

    # Embedding lookup (frozen bf16 table) — data-dependent gather in JAX glue.
    ids_p = jnp.zeros((bp, max_len), ids.dtype).at[:batch].set(ids)
    embeds = jnp.take(packed["embedding"], ids_p, axis=0).astype(jnp.float32)
    x = jnp.transpose(embeds, (1, 0, 2))                 # (L, Bp, Ep) time-major

    if hidden is None:
        h0 = jnp.zeros((3, bp, hp), jnp.float32)
        c0 = jnp.zeros((3, bp, hp), jnp.float32)
    else:
        h0_in, c0_in = hidden
        h0 = jnp.zeros((3, bp, hp), jnp.float32).at[:, :batch, :hd].set(h0_in)
        c0 = jnp.zeros((3, bp, hp), jnp.float32).at[:, :batch, :hd].set(c0_in)

    hs, cs = [], []
    for layer in range(3):
        w_ih_t, w_hh_t, b = packed["lstm"][layer]
        x, hn, cn = lstm_layer(x, w_ih_t, w_hh_t, b, h0[layer], c0[layer],
                               vmem_limit)
        hs.append(hn)
        cs.append(cn)
    h_n = jnp.stack(hs, axis=0)[:, :batch, :hd]   # (3, batch, hidden)
    c_n = jnp.stack(cs, axis=0)[:, :batch, :hd]

    # FC head on the last timestep only (identical to fc-on-all then [:, -1]).
    h_last = hs[-1]                               # (Bp, Hp) == x[-1]
    out = fc_forward(h_last, packed["fc"], vmem_limit)   # (Bp, 128) lane-dense
    last_outputs = out[:batch, :2]
    return last_outputs, (h_n, c_n)


# ------------------------------ Param init (deterministic) -------------------
def init_params(key, vocab, embedding_dim, hidden_dim):
    def uniform(k, shape, bound):
        return jax.random.uniform(k, shape, jnp.float32, -bound, bound)

    keys = jax.random.split(key, 32)
    ki = iter(keys)
    bound = 1.0 / jnp.sqrt(hidden_dim)

    embedding = jax.random.normal(next(ki), (vocab, embedding_dim), jnp.float32)

    lstm = []
    for layer in range(3):
        in_dim = embedding_dim if layer == 0 else hidden_dim
        w_ih = uniform(next(ki), (4 * hidden_dim, in_dim), bound)
        w_hh = uniform(next(ki), (4 * hidden_dim, hidden_dim), bound)
        b_ih = uniform(next(ki), (1, 4 * hidden_dim), bound)
        b_hh = uniform(next(ki), (1, 4 * hidden_dim), bound)
        lstm.append((w_ih, w_hh, b_ih + b_hh))

    def linear(kw, kb, out_f, in_f):
        bnd = 1.0 / jnp.sqrt(in_f)
        return (uniform(kw, (out_f, in_f), bnd), uniform(kb, (1, out_f), bnd))

    fc = [
        linear(next(ki), next(ki), 4 * hidden_dim, hidden_dim),
        linear(next(ki), next(ki), hidden_dim, 4 * hidden_dim),
        linear(next(ki), next(ki), 2, hidden_dim),
    ]

    return {"embedding": embedding, "lstm": lstm, "fc": fc,
            "hidden_dim": hidden_dim}


if __name__ == "__main__":
    vocab, embedding_dim, hidden_dim = 50, 16, 32
    batch, max_len = 2, 8

    key = jax.random.PRNGKey(0)
    k_params, k_ids = jax.random.split(key)
    params = init_params(k_params, vocab, embedding_dim, hidden_dim)
    packed = pack_params(params)
    ids = jax.random.randint(k_ids, (batch, max_len), 0, vocab, dtype=jnp.int32)

    last_outputs, (h_n, c_n) = lstm_model_forward(ids, packed)
    jax.block_until_ready((last_outputs, h_n, c_n))

    assert last_outputs.shape == (batch, 2)
    assert h_n.shape == (3, batch, hidden_dim)
    assert c_n.shape == (3, batch, hidden_dim)
    assert bool(jnp.all(jnp.isfinite(last_outputs)))
    print("KERNEL_OK")
</pallas_src>

<mosaic_0001>
module attributes {stable_mosaic.version = 11 : i64} {
  func.func @lstm_layer_kernel(%arg0: i32, %arg1: memref<8x8x128xf32, #tpu.memory_space<vmem>>, %arg2: memref<128x512xbf16, #tpu.memory_space<vmem>>, %arg3: memref<1x512xf32, #tpu.memory_space<vmem>>, %arg4: memref<128x512xbf16, #tpu.memory_space<vmem>>, %arg5: memref<8x128xf32, #tpu.memory_space<vmem>>, %arg6: memref<8x128xf32, #tpu.memory_space<vmem>>, %arg7: memref<8x8x128xf32, #tpu.memory_space<vmem>>, %arg8: memref<8x128xf32, #tpu.memory_space<vmem>>, %arg9: memref<8x128xf32, #tpu.memory_space<vmem>>, %arg10: memref<8x8x512xf32, #tpu.memory_space<vmem>>) attributes {dimension_semantics = [#tpu.dimension_semantics<arbitrary>], iteration_bounds = array<i64: 1>, scalar_prefetch = 0 : i64, scratch_operands = 1 : i64, tpu.core_type = #tpu.core_type<tc>, window_params = [{transform_indices = @transform_0, window_bounds = array<i64: 8, 8, 128>}, {pipeline_mode = #tpu.pipeline_mode<synchronous>, transform_indices = @transform_1, window_bounds = array<i64: 128, 512>}, {pipeline_mode = #tpu.pipeline_mode<synchronous>, transform_indices = @transform_2, window_bounds = array<i64: 1, 512>}, {pipeline_mode = #tpu.pipeline_mode<synchronous>, transform_indices = @transform_3, window_bounds = array<i64: 128, 512>}, {pipeline_mode = #tpu.pipeline_mode<synchronous>, transform_indices = @transform_4, window_bounds = array<i64: 8, 128>}, {pipeline_mode = #tpu.pipeline_mode<synchronous>, transform_indices = @transform_5, window_bounds = array<i64: 8, 128>}, {transform_indices = @transform_6, window_bounds = array<i64: 8, 8, 128>}, {pipeline_mode = #tpu.pipeline_mode<synchronous>, transform_indices = @transform_7, window_bounds = array<i64: 8, 128>}, {pipeline_mode = #tpu.pipeline_mode<synchronous>, transform_indices = @transform_8, window_bounds = array<i64: 8, 128>}]} {
    %c0 = arith.constant 0 : index
    %c0_0 = arith.constant 0 : index
    %c0_1 = arith.constant 0 : index
    %0 = vector.load %arg1[%c0, %c0_0, %c0_1] : memref<8x8x128xf32, #tpu.memory_space<vmem>>, vector<8x8x128xf32>
    %1 = vector.shape_cast %0 : vector<8x8x128xf32> to vector<64x128xf32>
    %2 = arith.truncf %1 : vector<64x128xf32> to vector<64x128xbf16>
    %c0_2 = arith.constant 0 : index
    %c0_3 = arith.constant 0 : index
    %3 = vector.load %arg2[%c0_2, %c0_3] : memref<128x512xbf16, #tpu.memory_space<vmem>>, vector<128x512xbf16>
    %cst = arith.constant dense<0.000000e+00> : vector<64x512xf32>
    %4 = tpu.matmul %2, %3, %cst {dimension_numbers = #tpu.dot_dimension_numbers<[1], [0], [0], [1], [0, 0, 1, 1], [], []>} : vector<64x128xbf16>, vector<128x512xbf16>, vector<64x512xf32> -> vector<64x512xf32>
    %5 = vector.shape_cast %4 : vector<64x512xf32> to vector<8x8x512xf32>
    %c0_4 = arith.constant 0 : index
    %c0_5 = arith.constant 0 : index
    %6 = vector.load %arg3[%c0_4, %c0_5] : memref<1x512xf32, #tpu.memory_space<vmem>>, vector<1x512xf32>
    %7 = vector.shape_cast %6 : vector<1x512xf32> to vector<1x1x512xf32>
    %8 = vector.broadcast %7 : vector<1x1x512xf32> to vector<8x8x512xf32>
    %9 = arith.addf %5, %8 : vector<8x8x512xf32>
    %c0_6 = arith.constant 0 : index
    %c0_7 = arith.constant 0 : index
    %c0_8 = arith.constant 0 : index
    %10 = vector.load %arg10[%c0_6, %c0_7, %c0_8] : memref<8x8x512xf32, #tpu.memory_space<vmem>>, vector<8x8x512xf32>
    tpu.vector_store %arg10[%c0_6, %c0_7, %c0_8], %9 {strides = array<i32>} : memref<8x8x512xf32, #tpu.memory_space<vmem>>, vector<8x8x512xf32>,
    %c0_i32 = arith.constant 0 : i32
    %11 = arith.cmpi eq, %arg0, %c0_i32 : i32
    %12 = arith.extui %11 : i1 to i32
    %c0_i32_9 = arith.constant 0 : i32
    %13 = arith.cmpi ne, %12, %c0_i32_9 : i32
    scf.if %13 {
      %c0_83 = arith.constant 0 : index
      %c0_84 = arith.constant 0 : index
      %234 = vector.load %arg5[%c0_83, %c0_84] : memref<8x128xf32, #tpu.memory_space<vmem>>, vector<8x128xf32>
      %c0_85 = arith.constant 0 : index
      %c0_86 = arith.constant 0 : index
      %235 = vector.load %arg8[%c0_85, %c0_86] : memref<8x128xf32, #tpu.memory_space<vmem>>, vector<8x128xf32>
      tpu.vector_store %arg8[%c0_85, %c0_86], %234 {strides = array<i32>} : memref<8x128xf32, #tpu.memory_space<vmem>>, vector<8x128xf32>,
      %c0_87 = arith.constant 0 : index
      %c0_88 = arith.constant 0 : index
      %236 = vector.load %arg6[%c0_87, %c0_88] : memref<8x128xf32, #tpu.memory_space<vmem>>, vector<8x128xf32>
      %c0_89 = arith.constant 0 : index
      %c0_90 = arith.constant 0 : index
      %237 = vector.load %arg9[%c0_89, %c0_90] : memref<8x128xf32, #tpu.memory_space<vmem>>, vector<8x128xf32>
      tpu.vector_store %arg9[%c0_89, %c0_90], %236 {strides = array<i32>} : memref<8x128xf32, #tpu.memory_space<vmem>>, vector<8x128xf32>,
    } else {
    }
    %c0_10 = arith.constant 0 : index
    %c0_11 = arith.constant 0 : index
    %14 = vector.load %arg8[%c0_10, %c0_11] : memref<8x128xf32, #tpu.memory_space<vmem>>, vector<8x128xf32>
    %c0_12 = arith.constant 0 : index
    %c0_13 = arith.constant 0 : index
    %15 = vector.load %arg9[%c0_12, %c0_13] : memref<8x128xf32, #tpu.memory_space<vmem>>, vector<8x128xf32>
    %c0_i32_14 = arith.constant 0 : i32
    %16 = arith.index_cast %c0_i32_14 : i32 to index
    %c0_15 = arith.constant 0 : index
    %c0_16 = arith.constant 0 : index
    %17 = vector.load %arg10[%16, %c0_15, %c0_16] : memref<8x8x512xf32, #tpu.memory_space<vmem>>, vector<1x8x512xf32>
    %18 = vector.shape_cast %17 : vector<1x8x512xf32> to vector<8x512xf32>
    %19 = arith.truncf %14 : vector<8x128xf32> to vector<8x128xbf16>
    %c0_17 = arith.constant 0 : index
    %c0_18 = arith.constant 0 : index
    %20 = vector.load %arg4[%c0_17, %c0_18] : memref<128x512xbf16, #tpu.memory_space<vmem>>, vector<128x512xbf16>
    %cst_19 = arith.constant dense<0.000000e+00> : vector<8x512xf32>
    %21 = tpu.matmul %19, %20, %cst_19 {dimension_numbers = #tpu.dot_dimension_numbers<[1], [0], [0], [1], [0, 0, 1, 1], [], []>} : vector<8x128xbf16>, vector<128x512xbf16>, vector<8x512xf32> -> vector<8x512xf32>
    %22 = arith.addf %18, %21 : vector<8x512xf32>
    %23 = vector.extract_strided_slice %22 {offsets = [0, 0], sizes = [8, 384], strides = [1, 1]} : vector<8x512xf32> to vector<8x384xf32>
    %24 = arith.negf %23 : vector<8x384xf32>
    %25 = math.exp %24 : vector<8x384xf32>
    %cst_20 = arith.constant 1.000000e+00 : f32
    %26 = vector.broadcast %cst_20 : f32 to vector<8x384xf32>
    %27 = arith.addf %26, %25 : vector<8x384xf32>
    %28 = arith.divf %26, %27 : vector<8x384xf32>
    %29 = vector.extract_strided_slice %28 {offsets = [0, 0], sizes = [8, 128], strides = [1, 1]} : vector<8x384xf32> to vector<8x128xf32>
    %30 = vector.extract_strided_slice %28 {offsets = [0, 128], sizes = [8, 128], strides = [1, 1]} : vector<8x384xf32> to vector<8x128xf32>
    %31 = vector.extract_strided_slice %28 {offsets = [0, 256], sizes = [8, 128], strides = [1, 1]} : vector<8x384xf32> to vector<8x128xf32>
    %32 = vector.extract_strided_slice %22 {offsets = [0, 384], sizes = [8, 128], strides = [1, 1]} : vector<8x512xf32> to vector<8x128xf32>
    %33 = math.tanh %32 : vector<8x128xf32>
    %34 = arith.mulf %30, %15 : vector<8x128xf32>
    %35 = arith.mulf %29, %33 : vector<8x128xf32>
    %36 = arith.addf %34, %35 : vector<8x128xf32>
    %37 = math.tanh %36 : vector<8x128xf32>
    %38 = arith.mulf %31, %37 : vector<8x128xf32>
    %39 = arith.index_cast %c0_i32_14 : i32 to index
    %c0_21 = arith.constant 0 : index
    %c0_22 = arith.constant 0 : index
    %40 = vector.load %arg7[%39, %c0_21, %c0_22] : memref<8x8x128xf32, #tpu.memory_space<vmem>>, vector<1x8x128xf32>
    %41 = vector.shape_cast %40 : vector<1x8x128xf32> to vector<8x128xf32>
    %42 = vector.shape_cast %38 : vector<8x128xf32> to vector<1x8x128xf32>
    tpu.vector_store %arg7[%39, %c0_21, %c0_22], %42 {strides = array<i32>} : memref<8x8x128xf32, #tpu.memory_space<vmem>>, vector<1x8x128xf32>,
    %c1_i32 = arith.constant 1 : i32
    %43 = arith.index_cast %c1_i32 : i32 to index
    %c0_23 = arith.constant 0 : index
    %c0_24 = arith.constant 0 : index
    %44 = vector.load %arg10[%43, %c0_23, %c0_24] : memref<8x8x512xf32, #tpu.memory_space<vmem>>, vector<1x8x512xf32>
    %45 = vector.shape_cast %44 : vector<1x8x512xf32> to vector<8x512xf32>
    %46 = arith.truncf %38 : vector<8x128xf32> to vector<8x128xbf16>
    %c0_25 = arith.constant 0 : index
    %c0_26 = arith.constant 0 : index
    %47 = vector.load %arg4[%c0_25, %c0_26] : memref<128x512xbf16, #tpu.memory_space<vmem>>, vector<128x512xbf16>
    %cst_27 = arith.constant dense<0.000000e+00> : vector<8x512xf32>
    %48 = tpu.matmul %46, %47, %cst_27 {dimension_numbers = #tpu.dot_dimension_numbers<[1], [0], [0], [1], [0, 0, 1, 1], [], []>} : vector<8x128xbf16>, vector<128x512xbf16>, vector<8x512xf32> -> vector<8x512xf32>
    %49 = arith.addf %45, %48 : vector<8x512xf32>
    %50 = vector.extract_strided_slice %49 {offsets = [0, 0], sizes = [8, 384], strides = [1, 1]} : vector<8x512xf32> to vector<8x384xf32>
    %51 = arith.negf %50 : vector<8x384xf32>
    %52 = math.exp %51 : vector<8x384xf32>
    %cst_28 = arith.constant 1.000000e+00 : f32
    %53 = vector.broadcast %cst_28 : f32 to vector<8x384xf32>
    %54 = arith.addf %53, %52 : vector<8x384xf32>
    %55 = arith.divf %53, %54 : vector<8x384xf32>
    %56 = vector.extract_strided_slice %55 {offsets = [0, 0], sizes = [8, 128], strides = [1, 1]} : vector<8x384xf32> to vector<8x128xf32>
    %57 = vector.extract_strided_slice %55 {offsets = [0, 128], sizes = [8, 128], strides = [1, 1]} : vector<8x384xf32> to vector<8x128xf32>
    %58 = vector.extract_strided_slice %55 {offsets = [0, 256], sizes = [8, 128], strides = [1, 1]} : vector<8x384xf32> to vector<8x128xf32>
    %59 = vector.extract_strided_slice %49 {offsets = [0, 384], sizes = [8, 128], strides = [1, 1]} : vector<8x512xf32> to vector<8x128xf32>
    %60 = math.tanh %59 : vector<8x128xf32>
    %61 = arith.mulf %57, %36 : vector<8x128xf32>
    %62 = arith.mulf %56, %60 : vector<8x128xf32>
    %63 = arith.addf %61, %62 : vector<8x128xf32>
    %64 = math.tanh %63 : vector<8x128xf32>
    %65 = arith.mulf %58, %64 : vector<8x128xf32>
    %66 = arith.index_cast %c1_i32 : i32 to index
    %c0_29 = arith.constant 0 : index
    %c0_30 = arith.constant 0 : index
    %67 = vector.load %arg7[%66, %c0_29, %c0_30] : memref<8x8x128xf32, #tpu.memory_space<vmem>>, vector<1x8x128xf32>
    %68 = vector.shape_cast %67 : vector<1x8x128xf32> to vector<8x128xf32>
    %69 = vector.shape_cast %65 : vector<8x128xf32> to vector<1x8x128xf32>
    tpu.vector_store %arg7[%66, %c0_29, %c0_30], %69 {strides = array<i32>} : memref<8x8x128xf32, #tpu.memory_space<vmem>>, vector<1x8x128xf32>,
    %c2_i32 = arith.constant 2 : i32
    %70 = arith.index_cast %c2_i32 : i32 to index
    %c0_31 = arith.constant 0 : index
    %c0_32 = arith.constant 0 : index
    %71 = vector.load %arg10[%70, %c0_31, %c0_32] : memref<8x8x512xf32, #tpu.memory_space<vmem>>, vector<1x8x512xf32>
    %72 = vector.shape_cast %71 : vector<1x8x512xf32> to vector<8x512xf32>
    %73 = arith.truncf %65 : vector<8x128xf32> to vector<8x128xbf16>
    %c0_33 = arith.constant 0 : index
    %c0_34 = arith.constant 0 : index
    %74 = vector.load %arg4[%c0_33, %c0_34] : memref<128x512xbf16, #tpu.memory_space<vmem>>, vector<128x512xbf16>
    %cst_35 = arith.constant dense<0.000000e+00> : vector<8x512xf32>
    %75 = tpu.matmul %73, %74, %cst_35 {dimension_numbers = #tpu.dot_dimension_numbers<[1], [0], [0], [1], [0, 0, 1, 1], [], []>} : vector<8x128xbf16>, vector<128x512xbf16>, vector<8x512xf32> -> vector<8x512xf32>
    %76 = arith.addf %72, %75 : vector<8x512xf32>
    %77 = vector.extract_strided_slice %76 {offsets = [0, 0], sizes = [8, 384], strides = [1, 1]} : vector<8x512xf32> to vector<8x384xf32>
    %78 = arith.negf %77 : vector<8x384xf32>
    %79 = math.exp %78 : vector<8x384xf32>
    %cst_36 = arith.constant 1.000000e+00 : f32
    %80 = vector.broadcast %cst_36 : f32 to vector<8x384xf32>
    %81 = arith.addf %80, %79 : vector<8x384xf32>
    %82 = arith.divf %80, %81 : vector<8x384xf32>
    %83 = vector.extract_strided_slice %82 {offsets = [0, 0], sizes = [8, 128], strides = [1, 1]} : vector<8x384xf32> to vector<8x128xf32>
    %84 = vector.extract_strided_slice %82 {offsets = [0, 128], sizes = [8, 128], strides = [1, 1]} : vector<8x384xf32> to vector<8x128xf32>
    %85 = vector.extract_strided_slice %82 {offsets = [0, 256], sizes = [8, 128], strides = [1, 1]} : vector<8x384xf32> to vector<8x128xf32>
    %86 = vector.extract_strided_slice %76 {offsets = [0, 384], sizes = [8, 128], strides = [1, 1]} : vector<8x512xf32> to vector<8x128xf32>
    %87 = math.tanh %86 : vector<8x128xf32>
    %88 = arith.mulf %84, %63 : vector<8x128xf32>
    %89 = arith.mulf %83, %87 : vector<8x128xf32>
    %90 = arith.addf %88, %89 : vector<8x128xf32>
    %91 = math.tanh %90 : vector<8x128xf32>
    %92 = arith.mulf %85, %91 : vector<8x128xf32>
    %93 = arith.index_cast %c2_i32 : i32 to index
    %c0_37 = arith.constant 0 : index
    %c0_38 = arith.constant 0 : index
    %94 = vector.load %arg7[%93, %c0_37, %c0_38] : memref<8x8x128xf32, #tpu.memory_space<vmem>>, vector<1x8x128xf32>
    %95 = vector.shape_cast %94 : vector<1x8x128xf32> to vector<8x128xf32>
    %96 = vector.shape_cast %92 : vector<8x128xf32> to vector<1x8x128xf32>
    tpu.vector_store %arg7[%93, %c0_37, %c0_38], %96 {strides = array<i32>} : memref<8x8x128xf32, #tpu.memory_space<vmem>>, vector<1x8x128xf32>,
    %c3_i32 = arith.constant 3 : i32
    %97 = arith.index_cast %c3_i32 : i32 to index
    %c0_39 = arith.constant 0 : index
    %c0_40 = arith.constant 0 : index
    %98 = vector.load %arg10[%97, %c0_39, %c0_40] : memref<8x8x512xf32, #tpu.memory_space<vmem>>, vector<1x8x512xf32>
    %99 = vector.shape_cast %98 : vector<1x8x512xf32> to vector<8x512xf32>
    %100 = arith.truncf %92 : vector<8x128xf32> to vector<8x128xbf16>
    %c0_41 = arith.constant 0 : index
    %c0_42 = arith.constant 0 : index
    %101 = vector.load %arg4[%c0_41, %c0_42] : memref<128x512xbf16, #tpu.memory_space<vmem>>, vector<128x512xbf16>
    %cst_43 = arith.constant dense<0.000000e+00> : vector<8x512xf32>
    %102 = tpu.matmul %100, %101, %cst_43 {dimension_numbers = #tpu.dot_dimension_numbers<[1], [0], [0], [1], [0, 0, 1, 1], [], []>} : vector<8x128xbf16>, vector<128x512xbf16>, vector<8x512xf32> -> vector<8x512xf32>
    %103 = arith.addf %99, %102 : vector<8x512xf32>
    %104 = vector.extract_strided_slice %103 {offsets = [0, 0], sizes = [8, 384], strides = [1, 1]} : vector<8x512xf32> to vector<8x384xf32>
    %105 = arith.negf %104 : vector<8x384xf32>
    %106 = math.exp %105 : vector<8x384xf32>
    %cst_44 = arith.constant 1.000000e+00 : f32
    %107 = vector.broadcast %cst_44 : f32 to vector<8x384xf32>
    %108 = arith.addf %107, %106 : vector<8x384xf32>
    %109 = arith.divf %107, %108 : vector<8x384xf32>
    %110 = vector.extract_strided_slice %109 {offsets = [0, 0], sizes = [8, 128], strides = [1, 1]} : vector<8x384xf32> to vector<8x128xf32>
    %111 = vector.extract_strided_slice %109 {offsets = [0, 128], sizes = [8, 128], strides = [1, 1]} : vector<8x384xf32> to vector<8x128xf32>
    %112 = vector.extract_strided_slice %109 {offsets = [0, 256], sizes = [8, 128], strides = [1, 1]} : vector<8x384xf32> to vector<8x128xf32>
    %113 = vector.extract_strided_slice %103 {offsets = [0, 384], sizes = [8, 128], strides = [1, 1]} : vector<8x512xf32> to vector<8x128xf32>
    %114 = math.tanh %113 : vector<8x128xf32>
    %115 = arith.mulf %111, %90 : vector<8x128xf32>
    %116 = arith.mulf %110, %114 : vector<8x128xf32>
    %117 = arith.addf %115, %116 : vector<8x128xf32>
    %118 = math.tanh %117 : vector<8x128xf32>
    %119 = arith.mulf %112, %118 : vector<8x128xf32>
    %120 = arith.index_cast %c3_i32 : i32 to index
    %c0_45 = arith.constant 0 : index
    %c0_46 = arith.constant 0 : index
    %121 = vector.load %arg7[%120, %c0_45, %c0_46] : memref<8x8x128xf32, #tpu.memory_space<vmem>>, vector<1x8x128xf32>
    %122 = vector.shape_cast %121 : vector<1x8x128xf32> to vector<8x128xf32>
    %123 = vector.shape_cast %119 : vector<8x128xf32> to vector<1x8x128xf32>
    tpu.vector_store %arg7[%120, %c0_45, %c0_46], %123 {strides = array<i32>} : memref<8x8x128xf32, #tpu.memory_space<vmem>>, vector<1x8x128xf32>,
    %c4_i32 = arith.constant 4 : i32
    %124 = arith.index_cast %c4_i32 : i32 to index
    %c0_47 = arith.constant 0 : index
    %c0_48 = arith.constant 0 : index
    %125 = vector.load %arg10[%124, %c0_47, %c0_48] : memref<8x8x512xf32, #tpu.memory_space<vmem>>, vector<1x8x512xf32>
    %126 = vector.shape_cast %125 : vector<1x8x512xf32> to vector<8x512xf32>
    %127 = arith.truncf %119 : vector<8x128xf32> to vector<8x128xbf16>
    %c0_49 = arith.constant 0 : index
    %c0_50 = arith.constant 0 : index
    %128 = vector.load %arg4[%c0_49, %c0_50] : memref<128x512xbf16, #tpu.memory_space<vmem>>, vector<128x512xbf16>
    %cst_51 = arith.constant dense<0.000000e+00> : vector<8x512xf32>
    %129 = tpu.matmul %127, %128, %cst_51 {dimension_numbers = #tpu.dot_dimension_numbers<[1], [0], [0], [1], [0, 0, 1, 1], [], []>} : vector<8x128xbf16>, vector<128x512xbf16>, vector<8x512xf32> -> vector<8x512xf32>
    %130 = arith.addf %126, %129 : vector<8x512xf32>
    %131 = vector.extract_strided_slice %130 {offsets = [0, 0], sizes = [8, 384], strides = [1, 1]} : vector<8x512xf32> to vector<8x384xf32>
    %132 = arith.negf %131 : vector<8x384xf32>
    %133 = math.exp %132 : vector<8x384xf32>
    %cst_52 = arith.constant 1.000000e+00 : f32
    %134 = vector.broadcast %cst_52 : f32 to vector<8x384xf32>
    %135 = arith.addf %134, %133 : vector<8x384xf32>
    %136 = arith.divf %134, %135 : vector<8x384xf32>
    %137 = vector.extract_strided_slice %136 {offsets = [0, 0], sizes = [8, 128], strides = [1, 1]} : vector<8x384xf32> to vector<8x128xf32>
    %138 = vector.extract_strided_slice %136 {offsets = [0, 128], sizes = [8, 128], strides = [1, 1]} : vector<8x384xf32> to vector<8x128xf32>
    %139 = vector.extract_strided_slice %136 {offsets = [0, 256], sizes = [8, 128], strides = [1, 1]} : vector<8x384xf32> to vector<8x128xf32>
    %140 = vector.extract_strided_slice %130 {offsets = [0, 384], sizes = [8, 128], strides = [1, 1]} : vector<8x512xf32> to vector<8x128xf32>
    %141 = math.tanh %140 : vector<8x128xf32>
    %142 = arith.mulf %138, %117 : vector<8x128xf32>
    %143 = arith.mulf %137, %141 : vector<8x128xf32>
    %144 = arith.addf %142, %143 : vector<8x128xf32>
    %145 = math.tanh %144 : vector<8x128xf32>
    %146 = arith.mulf %139, %145 : vector<8x128xf32>
    %147 = arith.index_cast %c4_i32 : i32 to index
    %c0_53 = arith.constant 0 : index
    %c0_54 = arith.constant 0 : index
    %148 = vector.load %arg7[%147, %c0_53, %c0_54] : memref<8x8x128xf32, #tpu.memory_space<vmem>>, vector<1x8x128xf32>
    %149 = vector.shape_cast %148 : vector<1x8x128xf32> to vector<8x128xf32>
    %150 = vector.shape_cast %146 : vector<8x128xf32> to vector<1x8x128xf32>
    tpu.vector_store %arg7[%147, %c0_53, %c0_54], %150 {strides = array<i32>} : memref<8x8x128xf32, #tpu.memory_space<vmem>>, vector<1x8x128xf32>,
    %c5_i32 = arith.constant 5 : i32
    %151 = arith.index_cast %c5_i32 : i32 to index
    %c0_55 = arith.constant 0 : index
    %c0_56 = arith.constant 0 : index
    %152 = vector.load %arg10[%151, %c0_55, %c0_56] : memref<8x8x512xf32, #tpu.memory_space<vmem>>, vector<1x8x512xf32>
    %153 = vector.shape_cast %152 : vector<1x8x512xf32> to vector<8x512xf32>
    %154 = arith.truncf %146 : vector<8x128xf32> to vector<8x128xbf16>
    %c0_57 = arith.constant 0 : index
    %c0_58 = arith.constant 0 : index
    %155 = vector.load %arg4[%c0_57, %c0_58] : memref<128x512xbf16, #tpu.memory_space<vmem>>, vector<128x512xbf16>
    %cst_59 = arith.constant dense<0.000000e+00> : vector<8x512xf32>
    %156 = tpu.matmul %154, %155, %cst_59 {dimension_numbers = #tpu.dot_dimension_numbers<[1], [0], [0], [1], [0, 0, 1, 1], [], []>} : vector<8x128xbf16>, vector<128x512xbf16>, vector<8x512xf32> -> vector<8x512xf32>
    %157 = arith.addf %153, %156 : vector<8x512xf32>
    %158 = vector.extract_strided_slice %157 {offsets = [0, 0], sizes = [8, 384], strides = [1, 1]} : vector<8x512xf32> to vector<8x384xf32>
    %159 = arith.negf %158 : vector<8x384xf32>
    %160 = math.exp %159 : vector<8x384xf32>
    %cst_60 = arith.constant 1.000000e+00 : f32
    %161 = vector.broadcast %cst_60 : f32 to vector<8x384xf32>
    %162 = arith.addf %161, %160 : vector<8x384xf32>
    %163 = arith.divf %161, %162 : vector<8x384xf32>
    %164 = vector.extract_strided_slice %163 {offsets = [0, 0], sizes = [8, 128], strides = [1, 1]} : vector<8x384xf32> to vector<8x128xf32>
    %165 = vector.extract_strided_slice %163 {offsets = [0, 128], sizes = [8, 128], strides = [1, 1]} : vector<8x384xf32> to vector<8x128xf32>
    %166 = vector.extract_strided_slice %163 {offsets = [0, 256], sizes = [8, 128], strides = [1, 1]} : vector<8x384xf32> to vector<8x128xf32>
    %167 = vector.extract_strided_slice %157 {offsets = [0, 384], sizes = [8, 128], strides = [1, 1]} : vector<8x512xf32> to vector<8x128xf32>
    %168 = math.tanh %167 : vector<8x128xf32>
    %169 = arith.mulf %165, %144 : vector<8x128xf32>
    %170 = arith.mulf %164, %168 : vector<8x128xf32>
    %171 = arith.addf %169, %170 : vector<8x128xf32>
    %172 = math.tanh %171 : vector<8x128xf32>
    %173 = arith.mulf %166, %172 : vector<8x128xf32>
    %174 = arith.index_cast %c5_i32 : i32 to index
    %c0_61 = arith.constant 0 : index
    %c0_62 = arith.constant 0 : index
    %175 = vector.load %arg7[%174, %c0_61, %c0_62] : memref<8x8x128xf32, #tpu.memory_space<vmem>>, vector<1x8x128xf32>
    %176 = vector.shape_cast %175 : vector<1x8x128xf32> to vector<8x128xf32>
    %177 = vector.shape_cast %173 : vector<8x128xf32> to vector<1x8x128xf32>
    tpu.vector_store %arg7[%174, %c0_61, %c0_62], %177 {strides = array<i32>} : memref<8x8x128xf32, #tpu.memory_space<vmem>>, vector<1x8x128xf32>,
    %c6_i32 = arith.constant 6 : i32
    %178 = arith.index_cast %c6_i32 : i32 to index
    %c0_63 = arith.constant 0 : index
    %c0_64 = arith.constant 0 : index
    %179 = vector.load %arg10[%178, %c0_63, %c0_64] : memref<8x8x512xf32, #tpu.memory_space<vmem>>, vector<1x8x512xf32>
    %180 = vector.shape_cast %179 : vector<1x8x512xf32> to vector<8x512xf32>
    %181 = arith.truncf %173 : vector<8x128xf32> to vector<8x128xbf16>
    %c0_65 = arith.constant 0 : index
    %c0_66 = arith.constant 0 : index
    %182 = vector.load %arg4[%c0_65, %c0_66] : memref<128x512xbf16, #tpu.memory_space<vmem>>, vector<128x512xbf16>
    %cst_67 = arith.constant dense<0.000000e+00> : vector<8x512xf32>
    %183 = tpu.matmul %181, %182, %cst_67 {dimension_numbers = #tpu.dot_dimension_numbers<[1], [0], [0], [1], [0, 0, 1, 1], [], []>} : vector<8x128xbf16>, vector<128x512xbf16>, vector<8x512xf32> -> vector<8x512xf32>
    %184 = arith.addf %180, %183 : vector<8x512xf32>
    %185 = vector.extract_strided_slice %184 {offsets = [0, 0], sizes = [8, 384], strides = [1, 1]} : vector<8x512xf32> to vector<8x384xf32>
    %186 = arith.negf %185 : vector<8x384xf32>
    %187 = math.exp %186 : vector<8x384xf32>
    %cst_68 = arith.constant 1.000000e+00 : f32
    %188 = vector.broadcast %cst_68 : f32 to vector<8x384xf32>
    %189 = arith.addf %188, %187 : vector<8x384xf32>
    %190 = arith.divf %188, %189 : vector<8x384xf32>
    %191 = vector.extract_strided_slice %190 {offsets = [0, 0], sizes = [8, 128], strides = [1, 1]} : vector<8x384xf32> to vector<8x128xf32>
    %192 = vector.extract_strided_slice %190 {offsets = [0, 128], sizes = [8, 128], strides = [1, 1]} : vector<8x384xf32> to vector<8x128xf32>
    %193 = vector.extract_strided_slice %190 {offsets = [0, 256], sizes = [8, 128], strides = [1, 1]} : vector<8x384xf32> to vector<8x128xf32>
    %194 = vector.extract_strided_slice %184 {offsets = [0, 384], sizes = [8, 128], strides = [1, 1]} : vector<8x512xf32> to vector<8x128xf32>
    %195 = math.tanh %194 : vector<8x128xf32>
    %196 = arith.mulf %192, %171 : vector<8x128xf32>
    %197 = arith.mulf %191, %195 : vector<8x128xf32>
    %198 = arith.addf %196, %197 : vector<8x128xf32>
    %199 = math.tanh %198 : vector<8x128xf32>
    %200 = arith.mulf %193, %199 : vector<8x128xf32>
    %201 = arith.index_cast %c6_i32 : i32 to index
    %c0_69 = arith.constant 0 : index
    %c0_70 = arith.constant 0 : index
    %202 = vector.load %arg7[%201, %c0_69, %c0_70] : memref<8x8x128xf32, #tpu.memory_space<vmem>>, vector<1x8x128xf32>
    %203 = vector.shape_cast %202 : vector<1x8x128xf32> to vector<8x128xf32>
    %204 = vector.shape_cast %200 : vector<8x128xf32> to vector<1x8x128xf32>
    tpu.vector_store %arg7[%201, %c0_69, %c0_70], %204 {strides = array<i32>} : memref<8x8x128xf32, #tpu.memory_space<vmem>>, vector<1x8x128xf32>,
    %c7_i32 = arith.constant 7 : i32
    %205 = arith.index_cast %c7_i32 : i32 to index
    %c0_71 = arith.constant 0 : index
    %c0_72 = arith.constant 0 : index
    %206 = vector.load %arg10[%205, %c0_71, %c0_72] : memref<8x8x512xf32, #tpu.memory_space<vmem>>, vector<1x8x512xf32>
    %207 = vector.shape_cast %206 : vector<1x8x512xf32> to vector<8x512xf32>
    %208 = arith.truncf %200 : vector<8x128xf32> to vector<8x128xbf16>
    %c0_73 = arith.constant 0 : index
    %c0_74 = arith.constant 0 : index
    %209 = vector.load %arg4[%c0_73, %c0_74] : memref<128x512xbf16, #tpu.memory_space<vmem>>, vector<128x512xbf16>
    %cst_75 = arith.constant dense<0.000000e+00> : vector<8x512xf32>
    %210 = tpu.matmul %208, %209, %cst_75 {dimension_numbers = #tpu.dot_dimension_numbers<[1], [0], [0], [1], [0, 0, 1, 1], [], []>} : vector<8x128xbf16>, vector<128x512xbf16>, vector<8x512xf32> -> vector<8x512xf32>
    %211 = arith.addf %207, %210 : vector<8x512xf32>
    %212 = vector.extract_strided_slice %211 {offsets = [0, 0], sizes = [8, 384], strides = [1, 1]} : vector<8x512xf32> to vector<8x384xf32>
    %213 = arith.negf %212 : vector<8x384xf32>
    %214 = math.exp %213 : vector<8x384xf32>
    %cst_76 = arith.constant 1.000000e+00 : f32
    %215 = vector.broadcast %cst_76 : f32 to vector<8x384xf32>
    %216 = arith.addf %215, %214 : vector<8x384xf32>
    %217 = arith.divf %215, %216 : vector<8x384xf32>
    %218 = vector.extract_strided_slice %217 {offsets = [0, 0], sizes = [8, 128], strides = [1, 1]} : vector<8x384xf32> to vector<8x128xf32>
    %219 = vector.extract_strided_slice %217 {offsets = [0, 128], sizes = [8, 128], strides = [1, 1]} : vector<8x384xf32> to vector<8x128xf32>
    %220 = vector.extract_strided_slice %217 {offsets = [0, 256], sizes = [8, 128], strides = [1, 1]} : vector<8x384xf32> to vector<8x128xf32>
    %221 = vector.extract_strided_slice %211 {offsets = [0, 384], sizes = [8, 128], strides = [1, 1]} : vector<8x512xf32> to vector<8x128xf32>
    %222 = math.tanh %221 : vector<8x128xf32>
    %223 = arith.mulf %219, %198 : vector<8x128xf32>
    %224 = arith.mulf %218, %222 : vector<8x128xf32>
    %225 = arith.addf %223, %224 : vector<8x128xf32>
    %226 = math.tanh %225 : vector<8x128xf32>
    %227 = arith.mulf %220, %226 : vector<8x128xf32>
    %228 = arith.index_cast %c7_i32 : i32 to index
    %c0_77 = arith.constant 0 : index
    %c0_78 = arith.constant 0 : index
    %229 = vector.load %arg7[%228, %c0_77, %c0_78] : memref<8x8x128xf32, #tpu.memory_space<vmem>>, vector<1x8x128xf32>
    %230 = vector.shape_cast %229 : vector<1x8x128xf32> to vector<8x128xf32>
    %231 = vector.shape_cast %227 : vector<8x128xf32> to vector<1x8x128xf32>
    tpu.vector_store %arg7[%228, %c0_77, %c0_78], %231 {strides = array<i32>} : memref<8x8x128xf32, #tpu.memory_space<vmem>>, vector<1x8x128xf32>,
    %c8_i32 = arith.constant 8 : i32
    %c0_79 = arith.constant 0 : index
    %c0_80 = arith.constant 0 : index
    %232 = vector.load %arg8[%c0_79, %c0_80] : memref<8x128xf32, #tpu.memory_space<vmem>>, vector<8x128xf32>
    tpu.vector_store %arg8[%c0_79, %c0_80], %227 {strides = array<i32>} : memref<8x128xf32, #tpu.memory_space<vmem>>, vector<8x128xf32>,
    %c0_81 = arith.constant 0 : index
    %c0_82 = arith.constant 0 : index
    %233 = vector.load %arg9[%c0_81, %c0_82] : memref<8x128xf32, #tpu.memory_space<vmem>>, vector<8x128xf32>
    tpu.vector_store %arg9[%c0_81, %c0_82], %225 {strides = array<i32>} : memref<8x128xf32, #tpu.memory_space<vmem>>, vector<8x128xf32>,
    return
  }
  func.func @transform_0(%arg0: i32) -> (i32, i32, i32) {
    %c0_i32 = arith.constant 0 : i32
    %c0_i32_0 = arith.constant 0 : i32
    %c0_i32_1 = arith.constant 0 : i32
    return %arg0, %c0_i32, %c0_i32_0 : i32, i32, i32
  }
  func.func @transform_1(%arg0: i32) -> (i32, i32) {
    %c0_i32 = arith.constant 0 : i32
    %c0_i32_0 = arith.constant 0 : i32
    %c0_i32_1 = arith.constant 0 : i32
    return %c0_i32, %c0_i32_0 : i32, i32
  }
  func.func @transform_2(%arg0: i32) -> (i32, i32) {
    %c0_i32 = arith.constant 0 : i32
    %c0_i32_0 = arith.constant 0 : i32
    %c0_i32_1 = arith.constant 0 : i32
    return %c0_i32, %c0_i32_0 : i32, i32
  }
  func.func @transform_3(%arg0: i32) -> (i32, i32) {
    %c0_i32 = arith.constant 0 : i32
    %c0_i32_0 = arith.constant 0 : i32
    %c0_i32_1 = arith.constant 0 : i32
    return %c0_i32, %c0_i32_0 : i32, i32
  }
  func.func @transform_4(%arg0: i32) -> (i32, i32) {
    %c0_i32 = arith.constant 0 : i32
    %c0_i32_0 = arith.constant 0 : i32
    %c0_i32_1 = arith.constant 0 : i32
    return %c0_i32, %c0_i32_0 : i32, i32
  }
  func.func @transform_5(%arg0: i32) -> (i32, i32) {
    %c0_i32 = arith.constant 0 : i32
    %c0_i32_0 = arith.constant 0 : i32
    %c0_i32_1 = arith.constant 0 : i32
    return %c0_i32, %c0_i32_0 : i32, i32
  }
  func.func @transform_6(%arg0: i32) -> (i32, i32, i32) {
    %c0_i32 = arith.constant 0 : i32
    %c0_i32_0 = arith.constant 0 : i32
    %c0_i32_1 = arith.constant 0 : i32
    return %arg0, %c0_i32, %c0_i32_0 : i32, i32, i32
  }
  func.func @transform_7(%arg0: i32) -> (i32, i32) {
    %c0_i32 = arith.constant 0 : i32
    %c0_i32_0 = arith.constant 0 : i32
    %c0_i32_1 = arith.constant 0 : i32
    return %c0_i32, %c0_i32_0 : i32, i32
  }
  func.func @transform_8(%arg0: i32) -> (i32, i32) {
    %c0_i32 = arith.constant 0 : i32
    %c0_i32_0 = arith.constant 0 : i32
    %c0_i32_1 = arith.constant 0 : i32
    return %c0_i32, %c0_i32_0 : i32, i32
  }
}

</mosaic_0001>

<bundles_post_ra>
// kernel: tpu_custom_call.1
= control target key start
LH: loop header
LB: loop body
LE: loop exit
PB: predicated region body
PF: predicated region fallthrough
CT: control target
= control target key end

     0   :  { %14 = vsyncpa [#allocation4], 0  ;;  %s5213_s0 = inlined_call_operand.hbm [shape: f32[8,8,128], index: 0, kind: input, shape index: {}]   ;;  %s5214_s1 = inlined_call_operand.hbm [shape: bf16[128,512], index: 1, kind: input, shape index: {}]   ;;  %s5215_s2 = inlined_call_operand.hbm [shape: f32[1,512], index: 2, kind: input, shape index: {}]   ;;  %s5216_s3 = inlined_call_operand.hbm [shape: bf16[128,512], index: 3, kind: input, shape index: {}]   ;;  %s5217_s4 = inlined_call_operand.hbm [shape: f32[8,128], index: 4, kind: input, shape index: {}]   ;;  %s5218_s5 = inlined_call_operand.hbm [shape: f32[8,128], index: 5, kind: input, shape index: {}]   ;;  %s5219_s6 = inlined_call_operand.hbm [shape: f32[8,8,128], index: 6, kind: output, shape index: {0}]   ;;  %s5220_s7 = inlined_call_operand.hbm [shape: f32[8,128], index: 7, kind: output, shape index: {1}]   ;;  %s5221_s8 = inlined_call_operand.hbm [shape: f32[8,128], index: 8, kind: output, shape index: {2}]  }
   0x1   :  { %15 = vsyncpa [#allocation7], 0 }
   0x2   :  { %16 = vsyncpa [#allocation10], 0 }
   0x3   :  { %17 = vsyncpa [#allocation13], 0 }
   0x4   :  { %18 = vsyncpa [#allocation5], 0  ;;  %s37_s29 = sshll.u32 %s5214_s1, 4  ;;  %s38_s29 = int_to_ptr.hbm [resolvable:$true] %s37_s29 }
   0x5   :  { %19 = vsyncpa [#allocation16], 0  ;;  %s4958_s30 = smov [#allocation6]   ;;  %s61_s12 = sshll.u32 %s5216_s3, 4  ;;  %s62_s12 = int_to_ptr.hbm [resolvable:$true] %s61_s12 }
   0x6   :  { %s39_s9 = sshll.u32 %s4958_s30, 4  ;;  %s4959_s13 = smov 256   ;;  %s40_s9 = int_to_ptr.vmem [resolvable:$true] %s39_s9 }
   0x7   :  { %s4960_s14 = smov 16   ;;  %s4961_s15 = smov [#allocation9]  }
   0x8   :  { %45 = dma.hbm_to_vmem [thread:$0]  %s38_s29, 4096, %s40_s9, [#allocation7], %s4959_s13, %s4959_s13, %s4960_s14  }
   0x9   :  { %s63_s16 = sshll.u32 %s4961_s15, 4  ;;  %s24_s19 = sshll.u32 %s5213_s0, 4  ;;  %s64_s16 = int_to_ptr.vmem [resolvable:$true] %s63_s16  ;;  %s25_s19 = int_to_ptr.hbm [resolvable:$true] %s24_s19 }
   0xa   :  { %69 = dma.hbm_to_vmem [thread:$0]  %s62_s12, 4096, %s64_s16, [#allocation10], %s4959_s13, %s4959_s13, %s4960_s14  }
   0xb   :  { %s4962_s1 = smov [#allocation3]   ;;  %s51_s3 = sshll.u32 %s5215_s2, 4  ;;  %s52_s3 = int_to_ptr.hbm [resolvable:$true] %s51_s3 }
   0xc   :  { %s26_s20 = sshll.u32 %s4962_s1, 4  ;;  %s4963_s23 = smov 128   ;;  %s27_s20 = int_to_ptr.vmem [resolvable:$true] %s26_s20 }
   0xd   :  { %s4964_s24 = smov 8   ;;  %s4965_s25 = smov [#allocation8]  }
   0xe   :  { %32 = dma.hbm_to_vmem [thread:$0]  %s25_s19, 1024, %s27_s20, [#allocation4], %s4963_s23, %s4963_s23, %s4964_s24  }
   0xf   :  { %s53_s26 = sshll.u32 %s4965_s25, 4  ;;  %s75_s28 = sshll.u32 %s5217_s4, 4  ;;  %s54_s26 = int_to_ptr.vmem [resolvable:$true] %s53_s26  ;;  %s76_s28 = int_to_ptr.hbm [resolvable:$true] %s75_s28 }
  0x10   :  { %56 = dma.hbm_to_vmem [thread:$0]  %s52_s3, 64, %s54_s26, [#allocation7]  }
  0x11   :  { %s86_s2 = sshll.u32 %s5218_s5, 4  ;;  %s4966_s9 = smov [#allocation11]   ;;  %s87_s2 = int_to_ptr.hbm [resolvable:$true] %s86_s2 }
  0x12   :  { %s77_s10 = sshll.u32 %s4966_s9, 4  ;;  %s4967_s11 = smov [#allocation12]   ;;  %s78_s10 = int_to_ptr.vmem [resolvable:$true] %s77_s10 }
  0x13   :  { %80 = dma.hbm_to_vmem [thread:$0]  %s76_s28, 128, %s78_s10, [#allocation10]  }
  0x14   :  { %s88_s12 = sshll.u32 %s4967_s11, 4  ;;  %s89_s12 = int_to_ptr.vmem [resolvable:$true] %s88_s12 }
  0x15   :  { %91 = dma.hbm_to_vmem [thread:$0]  %s87_s2, 128, %s89_s12, [#allocation13]  }
  0x16   :  { %4946 = dma.done.wait [#allocation4], 1024  }
  0x17   :  { %4947 = vsyncadd [#allocation4], 4294966272 }
  0x18   :  { %4948 = dma.done.wait [#allocation7], 4160  }
  0x19   :  { %4949 = vsyncadd [#allocation7], 4294963136 }
  0x1a   :  { %4950 = dma.done.wait [#allocation10], 4224  }
  0x1b   :  { %4951 = vsyncadd [#allocation10], 4294963072 }
  0x1c   :  { %4952 = dma.done.wait [#allocation13], 128  }
  0x1d   :  { %4953 = vsyncadd [#allocation13], 4294967168  ;;  %v3239_v0 = vld [vmem:[#allocation6 + $0xe0] sm:$0xf]  ;;  %v4331_v1 = vld [vmem:[#allocation6 + $0xec] sm:$0xf0] }
  0x1e   :  { %v4329_v2 = vld [vmem:[#allocation6 + $0xe4] sm:$0xf]  ;;  %v3240_v3 = vor.u32 %v4331_v1, %v3239_v0  ;;  %v3241_v4 = vld [vmem:[#allocation6 + $0xf0] sm:$0xf0]  ;;  %v3247_v5 = vld [vmem:[#allocation6 + $0xe8] sm:$0xf] }
  0x1f   :  { %v4332_v6 = vld [vmem:[#allocation6 + $0xf4] sm:$0xf0]  ;;  %v3244_v7 = vor.u32 %v4329_v2, %v3241_v4  ;;  %v4330_v9 = vld [vmem:[#allocation6 + $0xec] sm:$0xf]  ;;  %v3249_v10 = vld [vmem:[#allocation6 + $0xf8] sm:$0xf0] }
  0x20   :  { %v3248_v8 = vor.u32 %v4332_v6, %v3247_v5  ;;  %v3223_v11 = vld [vmem:[#allocation6 + $0xc0] sm:$0xf]  ;;  %320 = vmatpush.bf16.msra.mxu0 %v3240_v3  ;;  %v3252_v12 = vor.u32 %v4330_v9, %v3249_v10  ;;  %v4327_v13 = vld [vmem:[#allocation6 + $0xcc] sm:$0xf0]  ;;  %v4325_v14 = vld [vmem:[#allocation6 + $0xc4] sm:$0xf] }
  0x21   :  { %v3225_v15 = vld [vmem:[#allocation6 + $0xd0] sm:$0xf0]  ;;  %349 = vmatpush.bf16.msra.mxu1 %v3244_v7  ;;  %v3224_v16 = vor.u32 %v4327_v13, %v3223_v11  ;;  %v3231_v18 = vld [vmem:[#allocation6 + $0xc8] sm:$0xf]  ;;  %v4328_v19 = vld [vmem:[#allocation6 + $0xd4] sm:$0xf0] }
  0x22   :  { %378 = vmatpush.bf16.msra.mxu2 %v3248_v8  ;;  %v3228_v17 = vor.u32 %v4325_v14, %v3225_v15  ;;  %v4326_v20 = vld [vmem:[#allocation6 + $0xcc] sm:$0xf]  ;;  %407 = vmatpush.bf16.msra.mxu3 %v3252_v12  ;;  %v3232_v21 = vor.u32 %v4328_v19, %v3231_v18  ;;  %v3233_v22 = vld [vmem:[#allocation6 + $0xd8] sm:$0xf0]  ;;  %v3207_v23 = vld [vmem:[#allocation6 + $0xa0] sm:$0xf] }
  0x23   :  { %v4323_v24 = vld [vmem:[#allocation6 + $0xac] sm:$0xf0]  ;;  %v3236_v25 = vor.u32 %v4326_v20, %v3233_v22  ;;  %v4321_v26 = vld [vmem:[#allocation6 + $0xa4] sm:$0xf]  ;;  %v3209_v27 = vld [vmem:[#allocation6 + $0xb0] sm:$0xf0] }
  0x24   :  { %v3215_v28 = vld [vmem:[#allocation6 + $0xa8] sm:$0xf]  ;;  %321 = vmatpush.bf16.msra.mxu0 %v3224_v16  ;;  %v3208_v29 = vor.u32 %v4323_v24, %v3207_v23  ;;  %v4324_v30 = vld [vmem:[#allocation6 + $0xb4] sm:$0xf0]  ;;  %v4322_v31 = vld [vmem:[#allocation6 + $0xac] sm:$0xf]  ;;  %v3212_v33 = vor.u32 %v4321_v26, %v3209_v27 }
  0x25   :  { %v3217_v32 = vld [vmem:[#allocation6 + $0xb8] sm:$0xf0]  ;;  %350 = vmatpush.bf16.msra.mxu1 %v3228_v17  ;;  %v3216_v34 = vor.u32 %v4324_v30, %v3215_v28  ;;  %v3191_v35 = vld [vmem:[#allocation6 + $0x80] sm:$0xf]  ;;  %v4319_v36 = vld [vmem:[#allocation6 + $0x8c] sm:$0xf0] }
  0x26   :  { %379 = vmatpush.bf16.msra.mxu2 %v3232_v21  ;;  %v4317_v37 = vld [vmem:[#allocation6 + $0x84] sm:$0xf]  ;;  %408 = vmatpush.bf16.msra.mxu3 %v3236_v25  ;;  %v3220_v38 = vor.u32 %v4322_v31, %v3217_v32  ;;  %v3193_v39 = vld [vmem:[#allocation6 + $0x90] sm:$0xf0]  ;;  %v3199_v40 = vld [vmem:[#allocation6 + $0x88] sm:$0xf]  ;;  %v3192_v44 = vor.u32 %v4319_v36, %v3191_v35 }
  0x27   :  { %v4320_v41 = vld [vmem:[#allocation6 + $0x94] sm:$0xf0]  ;;  %v4318_v42 = vld [vmem:[#allocation6 + $0x8c] sm:$0xf]  ;;  %v3201_v43 = vld [vmem:[#allocation6 + $0x98] sm:$0xf0]  ;;  %v3196_v45 = vor.u32 %v4317_v37, %v3193_v39 }
  0x28   :  { %322 = vmatpush.bf16.msra.mxu0 %v3208_v29  ;;  %v3200_v46 = vor.u32 %v4320_v41, %v3199_v40  ;;  %v3175_v47 = vld [vmem:[#allocation6 + $0x60] sm:$0xf]  ;;  %v4315_v48 = vld [vmem:[#allocation6 + $0x6c] sm:$0xf0]  ;;  %v4313_v49 = vld [vmem:[#allocation6 + $0x64] sm:$0xf]  ;;  %v3204_v50 = vor.u32 %v4318_v42, %v3201_v43 }
  0x29   :  { %351 = vmatpush.bf16.msra.mxu1 %v3212_v33  ;;  %v3177_v51 = vld [vmem:[#allocation6 + $0x70] sm:$0xf0]  ;;  %v3183_v52 = vld [vmem:[#allocation6 + $0x68] sm:$0xf]  ;;  %v4316_v53 = vld [vmem:[#allocation6 + $0x74] sm:$0xf0]  ;;  %v3176_v56 = vor.u32 %v4315_v48, %v3175_v47 }
  0x2a   :  { %380 = vmatpush.bf16.msra.mxu2 %v3216_v34  ;;  %409 = vmatpush.bf16.msra.mxu3 %v3220_v38  ;;  %v4314_v54 = vld [vmem:[#allocation6 + $0x6c] sm:$0xf]  ;;  %v3185_v55 = vld [vmem:[#allocation6 + $0x78] sm:$0xf0]  ;;  %v3180_v57 = vor.u32 %v4313_v49, %v3177_v51  ;;  %v3184_v58 = vor.u32 %v4316_v53, %v3183_v52  ;;  %v3159_v59 = vld [vmem:[#allocation6 + $0x40] sm:$0xf] }
  0x2b   :  { %v4311_v60 = vld [vmem:[#allocation6 + $0x4c] sm:$0xf0]  ;;  %v4309_v61 = vld [vmem:[#allocation6 + $0x44] sm:$0xf]  ;;  %v3188_v62 = vor.u32 %v4314_v54, %v3185_v55  ;;  %v3161_v63 = vld [vmem:[#allocation6 + $0x50] sm:$0xf0] }
  0x2c   :  { %323 = vmatpush.bf16.msra.mxu0 %v3192_v44  ;;  %v3167_v0 = vld [vmem:[#allocation6 + $0x48] sm:$0xf]  ;;  %v4312_v1 = vld [vmem:[#allocation6 + $0x54] sm:$0xf0]  ;;  %v4310_v2 = vld [vmem:[#allocation6 + $0x4c] sm:$0xf]  ;;  %v3160_v4 = vor.u32 %v4311_v60, %v3159_v59  ;;  %v3164_v5 = vor.u32 %v4309_v61, %v3161_v63 }
  0x2d   :  { %352 = vmatpush.bf16.msra.mxu1 %v3196_v45  ;;  %v3169_v3 = vld [vmem:[#allocation6 + $0x58] sm:$0xf0]  ;;  %v3168_v6 = vor.u32 %v4312_v1, %v3167_v0  ;;  %v3143_v7 = vld [vmem:[#allocation6 + $0x20] sm:$0xf]  ;;  %v4307_v8 = vld [vmem:[#allocation6 + $0x2c] sm:$0xf0] }
  0x2e   :  { %381 = vmatpush.bf16.msra.mxu2 %v3200_v46  ;;  %410 = vmatpush.bf16.msra.mxu3 %v3204_v50  ;;  %v4305_v9 = vld [vmem:[#allocation6 + $0x24] sm:$0xf]  ;;  %v3172_v10 = vor.u32 %v4310_v2, %v3169_v3  ;;  %v3145_v11 = vld [vmem:[#allocation6 + $0x30] sm:$0xf0]  ;;  %v3151_v12 = vld [vmem:[#allocation6 + $0x28] sm:$0xf]  ;;  %v3144_v16 = vor.u32 %v4307_v8, %v3143_v7 }
  0x2f   :  { %v4308_v13 = vld [vmem:[#allocation6 + $0x34] sm:$0xf0]  ;;  %v4306_v14 = vld [vmem:[#allocation6 + $0x2c] sm:$0xf]  ;;  %v3153_v15 = vld [vmem:[#allocation6 + $0x38] sm:$0xf0]  ;;  %v3148_v19 = vor.u32 %v4305_v9, %v3145_v11 }
  0x30   :  { %324 = vmatpush.bf16.msra.mxu0 %v3176_v56  ;;  %v3127_v17 = vld [vmem:[#allocation6] sm:$0xf]  ;;  %v4303_v18 = vld [vmem:[#allocation6 + $0xc] sm:$0xf0]  ;;  %v3152_v20 = vor.u32 %v4308_v13, %v3151_v12  ;;  %v4301_v21 = vld [vmem:[#allocation6 + $0x4] sm:$0xf]  ;;  %v3156_v24 = vor.u32 %v4306_v14, %v3153_v15 }
  0x31   :  { %353 = vmatpush.bf16.msra.mxu1 %v3180_v57  ;;  %v3129_v22 = vld [vmem:[#allocation6 + $0x10] sm:$0xf0]  ;;  %v3135_v23 = vld [vmem:[#allocation6 + $0x8] sm:$0xf]  ;;  %v4304_v25 = vld [vmem:[#allocation6 + $0x14] sm:$0xf0]  ;;  %v3128_v31 = vor.u32 %v4303_v18, %v3127_v17 }
  0x32   :  { %382 = vmatpush.bf16.msra.mxu2 %v3184_v58  ;;  %411 = vmatpush.bf16.msra.mxu3 %v3188_v62  ;;  %v4302_v26 = vld [vmem:[#allocation6 + $0xc] sm:$0xf]  ;;  %v3137_v27 = vld [vmem:[#allocation6 + $0x18] sm:$0xf0]  ;;  %v116_v28 = vld [vmem:[#allocation3] sm:$0xff]  ;;  %v3132_v35 = vor.u32 %v4301_v21, %v3129_v22  ;;  %v3136_v36 = vor.u32 %v4304_v25, %v3135_v23  ;;  %s4968_s4 = smov [#allocation14]  }
  0x33   :  { %v3367_v29 = vld [vmem:[#allocation9 + $0xe0] sm:$0xf]  ;;  %v4363_v30 = vld [vmem:[#allocation9 + $0xec] sm:$0xf0]  ;;  %v117_v32 = vld [vmem:[#allocation3 + $0x8] sm:$0xff]  ;;  %v3140_v37 = vor.u32 %v4302_v26, %v3137_v27  ;;  %s3076_s5 = sshll.u32 %s4968_s4, 4  ;;  %s3077_s5 = int_to_ptr.vmem [resolvable:$true] %s3076_s5 }
  0x34   :  { %325 = vmatpush.bf16.msra.mxu0 %v3160_v4  ;;  %v4361_v33 = vld [vmem:[#allocation9 + $0xe4] sm:$0xf]  ;;  %v3369_v34 = vld [vmem:[#allocation9 + $0xf0] sm:$0xf0]  ;;  %v3368_v38 = vor.u32 %v4363_v30, %v3367_v29  ;;  %v3375_v39 = vld [vmem:[#allocation9 + $0xe8] sm:$0xf]  ;;  %v124_v42 = vpack.c.bf16 %v117_v32, %v116_v28 }
  0x35   :  { %354 = vmatpush.bf16.msra.mxu1 %v3164_v5  ;;  %v4364_v40 = vld [vmem:[#allocation9 + $0xf4] sm:$0xf0]  ;;  %v3351_v41 = vld [vmem:[#allocation9 + $0xc0] sm:$0xf]  ;;  %v3372_v43 = vor.u32 %v4361_v33, %v3369_v34  ;;  %v4359_v44 = vld [vmem:[#allocation9 + $0xcc] sm:$0xf0] }
  0x36   :  { %383 = vmatpush.bf16.msra.mxu2 %v3168_v6  ;;  %412 = vmatpush.bf16.msra.mxu3 %v3172_v10  ;;  %v4362_v45 = vld [vmem:[#allocation9 + $0xec] sm:$0xf]  ;;  %v3377_v46 = vld [vmem:[#allocation9 + $0xf8] sm:$0xf0]  ;;  %v4357_v47 = vld [vmem:[#allocation9 + $0xc4] sm:$0xf]  ;;  %v3376_v49 = vor.u32 %v4364_v40, %v3375_v39  ;;  %v3352_v50 = vor.u32 %v4359_v44, %v3351_v41 }
  0x37   :  { %v3353_v48 = vld [vmem:[#allocation9 + $0xd0] sm:$0xf0]  ;;  %v3359_v51 = vld [vmem:[#allocation9 + $0xc8] sm:$0xf]  ;;  %v4360_v52 = vld [vmem:[#allocation9 + $0xd4] sm:$0xf0]  ;;  %v3380_v53 = vor.u32 %v4362_v45, %v3377_v46 }
  0x38   :  { %326 = vmatpush.bf16.msra.mxu0 %v3144_v16  ;;  %v3335_v54 = vld [vmem:[#allocation9 + $0xa0] sm:$0xf]  ;;  %v3356_v55 = vor.u32 %v4357_v47, %v3353_v48  ;;  %v4355_v56 = vld [vmem:[#allocation9 + $0xac] sm:$0xf0]  ;;  %v4358_v57 = vld [vmem:[#allocation9 + $0xcc] sm:$0xf]  ;;  %v3360_v61 = vor.u32 %v4360_v52, %v3359_v51 }
  0x39   :  { %355 = vmatpush.bf16.msra.mxu1 %v3148_v19  ;;  %v3361_v58 = vld [vmem:[#allocation9 + $0xd8] sm:$0xf0]  ;;  %v4353_v59 = vld [vmem:[#allocation9 + $0xa4] sm:$0xf]  ;;  %v3337_v60 = vld [vmem:[#allocation9 + $0xb0] sm:$0xf0]  ;;  %v3336_v62 = vor.u32 %v4355_v56, %v3335_v54 }
  0x3a   :  { %384 = vmatpush.bf16.msra.mxu2 %v3152_v20  ;;  %413 = vmatpush.bf16.msra.mxu3 %v3156_v24  ;;  %v3343_v63 = vld [vmem:[#allocation9 + $0xa8] sm:$0xf]  ;;  %v4356_v0 = vld [vmem:[#allocation9 + $0xb4] sm:$0xf0]  ;;  %v3364_v1 = vor.u32 %v4358_v57, %v3361_v58  ;;  %v3319_v2 = vld [vmem:[#allocation9 + $0x80] sm:$0xf]  ;;  %v3340_v3 = vor.u32 %v4353_v59, %v3337_v60 }
  0x3b   :  { %v4351_v4 = vld [vmem:[#allocation9 + $0x8c] sm:$0xf0]  ;;  %v4354_v5 = vld [vmem:[#allocation9 + $0xac] sm:$0xf]  ;;  %v3345_v6 = vld [vmem:[#allocation9 + $0xb8] sm:$0xf0]  ;;  %v3344_v9 = vor.u32 %v4356_v0, %v3343_v63 }
  0x3c   :  { %327 = vmatpush.bf16.msra.mxu0 %v3128_v31  ;;  %v4349_v7 = vld [vmem:[#allocation9 + $0x84] sm:$0xf]  ;;  %v3321_v8 = vld [vmem:[#allocation9 + $0x90] sm:$0xf0]  ;;  %v118_v10 = vld [vmem:[#allocation3 + $0x10] sm:$0xff]  ;;  %v3320_v11 = vor.u32 %v4351_v4, %v3319_v2  ;;  %v3348_v14 = vor.u32 %v4354_v5, %v3345_v6  ;;  %s3078_s15 = sshll.u32 %s5219_s6, 4  ;;  %s3079_s15 = int_to_ptr.hbm [resolvable:$true] %s3078_s15 }
  0x3d   :  { %356 = vmatpush.bf16.msra.mxu1 %v3132_v35  ;;  %v3327_v12 = vld [vmem:[#allocation9 + $0x88] sm:$0xf]  ;;  %v4352_v13 = vld [vmem:[#allocation9 + $0x94] sm:$0xf0]  ;;  %v3303_v15 = vld [vmem:[#allocation9 + $0x60] sm:$0xf]  ;;  %v3324_v16 = vor.u32 %v4349_v7, %v3321_v8 }
  0x3e   :  { %385 = vmatpush.bf16.msra.mxu2 %v3136_v36  ;;  %414 = vmatpush.bf16.msra.mxu3 %v3140_v37  ;;  %v4347_v17 = vld [vmem:[#allocation9 + $0x6c] sm:$0xf0]  ;;  %v4350_v18 = vld [vmem:[#allocation9 + $0x8c] sm:$0xf]  ;;  %v3329_v19 = vld [vmem:[#allocation9 + $0x98] sm:$0xf0]  ;;  %v3328_v23 = vor.u32 %v4352_v13, %v3327_v12 }
  0x3f   :  { %328 = vmatmul.bf16.vlgmr.msra.gmra.mxu0 %v124_v42  ;;  %v119_v20 = vld [vmem:[#allocation3 + $0x18] sm:$0xff]  ;;  %v4345_v21 = vld [vmem:[#allocation9 + $0x64] sm:$0xf]  ;;  %v3304_v24 = vor.u32 %v4347_v17, %v3303_v15  ;;  %v3311_v25 = vld [vmem:[#allocation9 + $0x68] sm:$0xf]  ;;  %v3332_v27 = vor.u32 %v4350_v18, %v3329_v19  ;;  %s4969_s16 = smov [#allocation15]  }
  0x40   :  { %717 = vmatpush.bf16.msrb.mxu0 %v3368_v38  ;;  %357 = vmatmul.bf16.vlgmr.msra.gmra.mxu1 %v124_v42  ;;  %v3305_v22 = vld [vmem:[#allocation9 + $0x70] sm:$0xf0]  ;;  %v4348_v26 = vld [vmem:[#allocation9 + $0x74] sm:$0xf0]  ;;  %v3287_v28 = vld [vmem:[#allocation9 + $0x40] sm:$0xf]  ;;  %v125_v29 = vpack.c.bf16 %v119_v20, %v118_v10 }
  0x41   :  { %730 = vmatpush.bf16.msrb.mxu1 %v3372_v43  ;;  %386 = vmatmul.bf16.vlgmr.msra.gmra.mxu2 %v124_v42  ;;  %v3308_v30 = vor.u32 %v4345_v21, %v3305_v22  ;;  %v4343_v31 = vld [vmem:[#allocation9 + $0x4c] sm:$0xf0]  ;;  %v4346_v32 = vld [vmem:[#allocation9 + $0x6c] sm:$0xf]  ;;  %v3313_v33 = vld [vmem:[#allocation9 + $0x78] sm:$0xf0]  ;;  %v3312_v36 = vor.u32 %v4348_v26, %v3311_v25 }
  0x42   :  { %415 = vmatmul.bf16.vlgmr.msra.gmra.mxu3 %v124_v42  ;;  %743 = vmatpush.bf16.msrb.mxu2 %v3376_v49  ;;  %v4341_v34 = vld [vmem:[#allocation9 + $0x44] sm:$0xf]  ;;  %v3289_v35 = vld [vmem:[#allocation9 + $0x50] sm:$0xf0]  ;;  %v3288_v37 = vor.u32 %v4343_v31, %v3287_v28  ;;  %v3295_v38 = vld [vmem:[#allocation9 + $0x48] sm:$0xf]  ;;  %v3316_v40 = vor.u32 %v4346_v32, %v3313_v33 }
  0x43   :  { %756 = vmatpush.bf16.msrb.mxu3 %v3380_v53  ;;  %v4344_v39 = vld [vmem:[#allocation9 + $0x54] sm:$0xf0]  ;;  %v3292_v41 = vor.u32 %v4341_v34, %v3289_v35  ;;  %v3271_v43 = vld [vmem:[#allocation9 + $0x20] sm:$0xf]  ;;  %v4339_v44 = vld [vmem:[#allocation9 + $0x2c] sm:$0xf0] }
  0x44   :  { %718 = vmatpush.bf16.msrb.mxu0 %v3352_v50  ;;  %v3296_v42 = vor.u32 %v4344_v39, %v3295_v38  ;;  %v4337_v45 = vld [vmem:[#allocation9 + $0x24] sm:$0xf]  ;;  %v3272_v46 = vor.u32 %v4339_v44, %v3271_v43  ;;  %v3273_v47 = vld [vmem:[#allocation9 + $0x30] sm:$0xf0]  ;;  %v3279_v48 = vld [vmem:[#allocation9 + $0x28] sm:$0xf] }
  0x45   :  { %731 = vmatpush.bf16.msrb.mxu1 %v3356_v55  ;;  %v4340_v49 = vld [vmem:[#allocation9 + $0x34] sm:$0xf0]  ;;  %v3276_v50 = vor.u32 %v4337_v45, %v3273_v47  ;;  %v4342_v51 = vld [vmem:[#allocation9 + $0x4c] sm:$0xf]  ;;  %v3297_v52 = vld [vmem:[#allocation9 + $0x58] sm:$0xf0] }
  0x46   :  { %744 = vmatpush.bf16.msrb.mxu2 %v3360_v61  ;;  %v3255_v53 = vld [vmem:[#allocation9] sm:$0xf]  ;;  %v3300_v54 = vor.u32 %v4342_v51, %v3297_v52  ;;  %v4335_v55 = vld [vmem:[#allocation9 + $0xc] sm:$0xf0]  ;;  %v4333_v56 = vld [vmem:[#allocation9 + $0x4] sm:$0xf]  ;;  %v3280_v58 = vor.u32 %v4340_v49, %v3279_v48 }
  0x47   :  { %757 = vmatpush.bf16.msrb.mxu3 %v3364_v1  ;;  %v3257_v57 = vld [vmem:[#allocation9 + $0x10] sm:$0xf0]  ;;  %v4338_v59 = vld [vmem:[#allocation9 + $0x2c] sm:$0xf]  ;;  %v3281_v60 = vld [vmem:[#allocation9 + $0x38] sm:$0xf0]  ;;  %v3256_v61 = vor.u32 %v4335_v55, %v3255_v53 }
  0x48   :  { %719 = vmatpush.bf16.msrb.mxu0 %v3336_v62  ;;  %v3284_v62 = vor.u32 %v4338_v59, %v3281_v60  ;;  %v3263_v63 = vld [vmem:[#allocation9 + $0x8] sm:$0xf]  ;;  %v4336_v0 = vld [vmem:[#allocation9 + $0x14] sm:$0xf0]  ;;  %v3260_v1 = vor.u32 %v4333_v56, %v3257_v57  ;;  %v4334_v2 = vld [vmem:[#allocation9 + $0xc] sm:$0xf] }
  0x49   :  { %732 = vmatpush.bf16.msrb.mxu1 %v3340_v3  ;;  %v3265_v3 = vld [vmem:[#allocation9 + $0x18] sm:$0xf0]  ;;  %v121_v5 = vld [vmem:[#allocation3 + $0x28] sm:$0xff]  ;;  %v3264_v6 = vor.u32 %v4336_v0, %v3263_v63  ;;  %v123_v10 = vld [vmem:[#allocation3 + $0x38] sm:$0xff]  ;;  %s3090_s17 = sshll.u32 %s4969_s16, 4  ;;  %s3092_s1 = sshll.u32 %s5220_s7, 4  ;;  %s3091_s17 = int_to_ptr.vmem [resolvable:$true] %s3090_s17  ;;  %s3093_s1 = int_to_ptr.hbm [resolvable:$true] %s3092_s1 }
  0x4a   :  { %745 = vmatpush.bf16.msrb.mxu2 %v3344_v9  ;;  %v120_v4 = vld [vmem:[#allocation3 + $0x20] sm:$0xff]  ;;  %v3268_v7 = vor.u32 %v4334_v2, %v3265_v3  ;;  %v122_v9 = vld [vmem:[#allocation3 + $0x30] sm:$0xff]  ;;  %v3500_v0 = vld [vmem:[#allocation9 + $0xf0] sm:$0xf0]  ;;  %s4970_s20 = smov [#allocation17]   ;;  %s3103_s25 = sshll.u32 %s5221_s8, 4  ;;  %s3104_s25 = int_to_ptr.hbm [resolvable:$true] %s3103_s25 }
  0x4b   :  { %758 = vmatpush.bf16.msrb.mxu3 %v3348_v14  ;;  %v126_v8 = vpack.c.bf16 %v121_v5, %v120_v4  ;;  %v514_v12 = vld [vmem:[#allocation11] sm:$0xff]  ;;  %v4395_v60 = vld [vmem:[#allocation9 + $0xec] sm:$0xf0]  ;;  %v4396_v2 = vld [vmem:[#allocation9 + $0xf4] sm:$0xf0]  ;;  %s3101_s21 = sshll.u32 %s4970_s20, 4  ;;  %s3102_s21 = int_to_ptr.vmem [resolvable:$true] %s3101_s21 }
  0x4c   :  { %720 = vmatpush.bf16.msrb.mxu0 %v3320_v11  ;;  %v127_v11 = vpack.c.bf16 %v123_v10, %v122_v9  ;;  %v524_v13 = vpack.c.bf16 %v514_v12, %v514_v12  ;;  %v3498_v59 = vld [vmem:[#allocation9 + $0xe0] sm:$0xf]  ;;  %v3508_v9 = vld [vmem:[#allocation9 + $0xf8] sm:$0xf0] }
  0x4d   :  { %733 = vmatpush.bf16.msrb.mxu1 %v3324_v16  ;;  %v436_v16 = vld [vmem:[#allocation8] sm:$0xf]  ;;  %v3499_v63 = vor.u32 %v4395_v60, %v3498_v59  ;;  %v3474_v59 = vld [vmem:[#allocation9 + $0xa8] sm:$0xf]  ;;  %v4388_v60 = vld [vmem:[#allocation9 + $0xb4] sm:$0xf0] }
  0x4e   :  { %746 = vmatpush.bf16.msrb.mxu2 %v3328_v23  ;;  %v5041_v17 = vperm.slane %v436_v16, 0  ;;  %v5045_v19 = vperm.slane %v436_v16, 1  ;;  %v5055_v25 = vperm.slane %v436_v16, 3  ;;  %v5057_v26 = vperm.slane %v436_v16, 2 }
  0x4f   :  { %759 = vmatpush.bf16.msrb.mxu3 %v3332_v27  ;;  %333 = vmatmul.bf16.gmra.mxu0 %v125_v29 }
  0x50   :  { %721 = vmatpush.bf16.msrb.mxu0 %v3304_v24  ;;  %362 = vmatmul.bf16.gmra.mxu1 %v125_v29 }
  0x51   :  { %734 = vmatpush.bf16.msrb.mxu1 %v3308_v30  ;;  %391 = vmatmul.bf16.gmra.mxu2 %v125_v29 }
  0x52   :  { %420 = vmatmul.bf16.gmra.mxu3 %v125_v29  ;;  %747 = vmatpush.bf16.msrb.mxu2 %v3312_v36 }
  0x53   :  { %760 = vmatpush.bf16.msrb.mxu3 %v3316_v40 }
  0x54   :  { %722 = vmatpush.bf16.msrb.mxu0 %v3288_v37 }
  0x55   :  { %735 = vmatpush.bf16.msrb.mxu1 %v3292_v41 }
  0x56   :  { %748 = vmatpush.bf16.msrb.mxu2 %v3296_v42 }
  0x57   :  { %761 = vmatpush.bf16.msrb.mxu3 %v3300_v54 }
  0x58   :  { %723 = vmatpush.bf16.msrb.mxu0 %v3272_v46 }
  0x59   :  { %736 = vmatpush.bf16.msrb.mxu1 %v3276_v50 }
  0x5a   :  { %749 = vmatpush.bf16.msrb.mxu2 %v3280_v58 }
  0x5b   :  { %762 = vmatpush.bf16.msrb.mxu3 %v3284_v62 }
  0x5c   :  { %724 = vmatpush.bf16.msrb.mxu0 %v3256_v61  ;;  %v4393_v61 = vld [vmem:[#allocation9 + $0xe4] sm:$0xf] }
  0x5d   :  { %737 = vmatpush.bf16.msrb.mxu1 %v3260_v1  ;;  %v3506_v1 = vld [vmem:[#allocation9 + $0xe8] sm:$0xf] }
  0x5e   :  { %750 = vmatpush.bf16.msrb.mxu2 %v3264_v6  ;;  %v3503_v6 = vor.u32 %v4393_v61, %v3500_v0 }
  0x5f   :  { %763 = vmatpush.bf16.msrb.mxu3 %v3268_v7  ;;  %338 = vmatmul.bf16.gmra.mxu0 %v126_v8  ;;  %v3507_v7 = vor.u32 %v4396_v2, %v3506_v1  ;;  %v3475_v1 = vor.u32 %v4388_v60, %v3474_v59  ;;  %v4386_v2 = vld [vmem:[#allocation9 + $0xac] sm:$0xf]  ;;  %v4380_v59 = vld [vmem:[#allocation9 + $0x74] sm:$0xf0] }
  0x60   :  { %367 = vmatmul.bf16.gmra.mxu1 %v126_v8  ;;  %1035 = vmatpush.bf16.msra.mxu0 %v3499_v63 }
  0x61   :  { %396 = vmatmul.bf16.gmra.mxu2 %v126_v8  ;;  %1048 = vmatpush.bf16.msra.mxu1 %v3503_v6 }
  0x62   :  { %425 = vmatmul.bf16.gmra.mxu3 %v126_v8  ;;  %v4394_v8 = vld [vmem:[#allocation9 + $0xec] sm:$0xf]  ;;  %1061 = vmatpush.bf16.msra.mxu2 %v3507_v7 }
  0x6f   :  { %343 = vmatmul.bf16.gmra.mxu0 %v127_v11 }
  0x70   :  { %372 = vmatmul.bf16.gmra.mxu1 %v127_v11 }
  0x71   :  { %401 = vmatmul.bf16.gmra.mxu2 %v127_v11 }
  0x72   :  { %430 = vmatmul.bf16.gmra.mxu3 %v127_v11 }
  0x7f   :  { %725 = vmatmul.bf16.vlgmr.msrb.gmra.mxu0 %v524_v13 }
  0x80   :  { %738 = vmatmul.bf16.vlgmr.msrb.gmra.mxu1 %v524_v13 }
  0x81   :  { %751 = vmatmul.bf16.vlgmr.msrb.gmra.mxu2 %v524_v13 }
  0x82   :  { %764 = vmatmul.bf16.vlgmr.msrb.gmra.mxu3 %v524_v13  ;;  %v3511_v13 = vor.u32 %v4394_v8, %v3508_v9 }
  0x84   :  { %1074 = vmatpush.bf16.msra.mxu3 %v3511_v13  ;;  %v4383_v13 = vld [vmem:[#allocation9 + $0x8c] sm:$0xf0] }
  0xbc   :  { %v5037_v14 = vpop.f32.mrf.mxu0 }
  0xbd   :  { %v5039_v15 = vpop.f32.mrf.mxu1 }
  0xbe   :  { %v447_v60 = vadd.f32 %v5045_v19, %v5039_v15  ;;  %v3418_v15 = vld [vmem:[#allocation9 + $0x40] sm:$0xf] }
  0xc4   :  { %v5043_v18 = vpop.f32.mrf.mxu2  ;;  %v331_v21 = vpop.f32.mrf.mxu0 }
  0xc5   :  { %v5047_v20 = vpop.f32.mrf.mxu3  ;;  %v5050_v22 = vadd.f32 %v5041_v17, %v331_v21  ;;  %v360_v23 = vpop.f32.mrf.mxu1  ;;  %v3482_v21 = vld [vmem:[#allocation9 + $0xc0] sm:$0xf] }
  0xc6   :  { %v5053_v24 = vadd.f32 %v5045_v19, %v360_v23  ;;  %v4391_v23 = vld [vmem:[#allocation9 + $0xcc] sm:$0xf0] }
  0xcc   :  { %v389_v27 = vpop.f32.mrf.mxu2  ;;  %v334_v30 = vpop.f32.mrf.mxu0 }
  0xcd   :  { %v5060_v28 = vadd.f32 %v5057_v26, %v389_v27  ;;  %v418_v29 = vpop.f32.mrf.mxu3  ;;  %v5066_v32 = vadd.f32 %v5041_v17, %v334_v30  ;;  %v363_v33 = vpop.f32.mrf.mxu1  ;;  %v4389_v27 = vld [vmem:[#allocation9 + $0xc4] sm:$0xf]  ;;  %v3484_v30 = vld [vmem:[#allocation9 + $0xd0] sm:$0xf0] }
  0xce   :  { %v5063_v31 = vadd.f32 %v5055_v25, %v418_v29  ;;  %v5069_v34 = vadd.f32 %v5045_v19, %v363_v33  ;;  %v3483_v29 = vor.u32 %v4391_v23, %v3482_v21  ;;  %v3490_v33 = vld [vmem:[#allocation9 + $0xc8] sm:$0xf]  ;;  %v4381_v21 = vld [vmem:[#allocation9 + $0x84] sm:$0xf] }
  0xd0   :  { %1036 = vmatpush.bf16.msra.mxu0 %v3483_v29  ;;  %v3458_v29 = vld [vmem:[#allocation9 + $0x88] sm:$0xf] }
  0xd4   :  { %v392_v35 = vpop.f32.mrf.mxu2  ;;  %v336_v38 = vpop.f32.mrf.mxu0 }
  0xd5   :  { %v5072_v36 = vadd.f32 %v5057_v26, %v392_v35  ;;  %v421_v37 = vpop.f32.mrf.mxu3  ;;  %v5078_v40 = vadd.f32 %v5041_v17, %v336_v38  ;;  %v365_v41 = vpop.f32.mrf.mxu1  ;;  %v4392_v35 = vld [vmem:[#allocation9 + $0xd4] sm:$0xf0] }
  0xd6   :  { %v5075_v39 = vadd.f32 %v5055_v25, %v421_v37  ;;  %v5081_v42 = vadd.f32 %v5045_v19, %v365_v41  ;;  %v3487_v37 = vor.u32 %v4389_v27, %v3484_v30  ;;  %v3491_v38 = vor.u32 %v4392_v35, %v3490_v33  ;;  %v4390_v41 = vld [vmem:[#allocation9 + $0xcc] sm:$0xf]  ;;  %v3452_v27 = vld [vmem:[#allocation9 + $0x90] sm:$0xf0]  ;;  %v4384_v30 = vld [vmem:[#allocation9 + $0x94] sm:$0xf0] }
  0xd7   :  { %v3455_v33 = vor.u32 %v4381_v21, %v3452_v27  ;;  %v3459_v35 = vor.u32 %v4384_v30, %v3458_v29  ;;  %v4373_v21 = vld [vmem:[#allocation9 + $0x44] sm:$0xf]  ;;  %v3420_v29 = vld [vmem:[#allocation9 + $0x50] sm:$0xf0]  ;;  %v3426_v30 = vld [vmem:[#allocation9 + $0x48] sm:$0xf] }
  0xd8   :  { %1049 = vmatpush.bf16.msra.mxu1 %v3487_v37  ;;  %1062 = vmatpush.bf16.msra.mxu2 %v3491_v38  ;;  %v4382_v37 = vld [vmem:[#allocation9 + $0x8c] sm:$0xf]  ;;  %v3460_v38 = vld [vmem:[#allocation9 + $0x98] sm:$0xf0] }
  0xdc   :  { %v394_v43 = vpop.f32.mrf.mxu2  ;;  %v339_v46 = vpop.f32.mrf.mxu0  ;;  %1063 = vmatpush.bf16.msra.mxu2 %v3475_v1 }
  0xdd   :  { %v5084_v44 = vadd.f32 %v5057_v26, %v394_v43  ;;  %v423_v45 = vpop.f32.mrf.mxu3  ;;  %v5090_v48 = vadd.f32 %v5041_v17, %v339_v46  ;;  %v368_v49 = vpop.f32.mrf.mxu1  ;;  %v3492_v43 = vld [vmem:[#allocation9 + $0xd8] sm:$0xf0]  ;;  %v3466_v46 = vld [vmem:[#allocation9 + $0xa0] sm:$0xf] }
  0xde   :  { %v5087_v47 = vadd.f32 %v5055_v25, %v423_v45  ;;  %v5093_v50 = vadd.f32 %v5045_v19, %v368_v49  ;;  %v3495_v45 = vor.u32 %v4390_v41, %v3492_v43  ;;  %v4387_v49 = vld [vmem:[#allocation9 + $0xac] sm:$0xf0]  ;;  %v3463_v41 = vor.u32 %v4382_v37, %v3460_v38  ;;  %v3434_v43 = vld [vmem:[#allocation9 + $0x60] sm:$0xf]  ;;  %v4376_v37 = vld [vmem:[#allocation9 + $0x54] sm:$0xf0] }
  0xdf   :  { %v4374_v38 = vld [vmem:[#allocation9 + $0x4c] sm:$0xf] }
  0xe0   :  { %1075 = vmatpush.bf16.msra.mxu3 %v3495_v45  ;;  %1064 = vmatpush.bf16.msra.mxu2 %v3459_v35  ;;  %v4379_v45 = vld [vmem:[#allocation9 + $0x6c] sm:$0xf0]  ;;  %v3423_v35 = vor.u32 %v4373_v21, %v3420_v29  ;;  %v3388_v21 = vld [vmem:[#allocation9 + $0x10] sm:$0xf0] }
  0xe4   :  { %v397_v51 = vpop.f32.mrf.mxu2  ;;  %v341_v54 = vpop.f32.mrf.mxu0 }
  0xe5   :  { %v5096_v52 = vadd.f32 %v5057_v26, %v397_v51  ;;  %v426_v53 = vpop.f32.mrf.mxu3  ;;  %v5102_v56 = vadd.f32 %v5041_v17, %v341_v54  ;;  %v370_v57 = vpop.f32.mrf.mxu1  ;;  %v4385_v51 = vld [vmem:[#allocation9 + $0xa4] sm:$0xf]  ;;  %v3467_v54 = vor.u32 %v4387_v49, %v3466_v46  ;;  %v446_v49 = vadd.f32 %v5041_v17, %v5037_v14 }
  0xe6   :  { %v5099_v55 = vadd.f32 %v5055_v25, %v426_v53  ;;  %v5105_v58 = vadd.f32 %v5045_v19, %v370_v57  ;;  %v3468_v57 = vld [vmem:[#allocation9 + $0xb0] sm:$0xf0]  ;;  %v4377_v46 = vld [vmem:[#allocation9 + $0x64] sm:$0xf] }
  0xe7   :  { %v3471_v0 = vor.u32 %v4385_v51, %v3468_v57  ;;  %1037 = vmatpush.bf16.msra.mxu0 %v3467_v54  ;;  %v3436_v54 = vld [vmem:[#allocation9 + $0x70] sm:$0xf0]  ;;  %v3442_v57 = vld [vmem:[#allocation9 + $0x68] sm:$0xf] }
  0xe8   :  { %v3439_v1 = vor.u32 %v4377_v46, %v3436_v54  ;;  %v4371_v46 = vld [vmem:[#allocation9 + $0x2c] sm:$0xf0]  ;;  %v4369_v54 = vld [vmem:[#allocation9 + $0x24] sm:$0xf] }
  0xe9   :  { %1050 = vmatpush.bf16.msra.mxu1 %v3471_v0 }
  0xec   :  { %v399_v62 = vpop.f32.mrf.mxu2  ;;  %v344_v5 = vpop.f32.mrf.mxu0 }
  0xed   :  { %v5108_v3 = vadd.f32 %v5057_v26, %v399_v62  ;;  %v428_v4 = vpop.f32.mrf.mxu3  ;;  %v5114_v11 = vadd.f32 %v5041_v17, %v344_v5  ;;  %v373_v12 = vpop.f32.mrf.mxu1  ;;  %1051 = vmatpush.bf16.msra.mxu1 %v3455_v33 }
  0xee   :  { %v5111_v10 = vadd.f32 %v5055_v25, %v428_v4  ;;  %v5117_v16 = vadd.f32 %v5045_v19, %v373_v12  ;;  %v3476_v4 = vld [vmem:[#allocation9 + $0xb8] sm:$0xf0]  ;;  %v3450_v12 = vld [vmem:[#allocation9 + $0x80] sm:$0xf] }
  0xef   :  { %v3479_v8 = vor.u32 %v4386_v2, %v3476_v4  ;;  %v3451_v23 = vor.u32 %v4383_v13, %v3450_v12  ;;  %v3443_v2 = vor.u32 %v4380_v59, %v3442_v57  ;;  %v4378_v4 = vld [vmem:[#allocation9 + $0x6c] sm:$0xf]  ;;  %v3404_v57 = vld [vmem:[#allocation9 + $0x30] sm:$0xf0]  ;;  %v3410_v59 = vld [vmem:[#allocation9 + $0x28] sm:$0xf] }
  0xf1   :  { %1076 = vmatpush.bf16.msra.mxu3 %v3479_v8  ;;  %1038 = vmatpush.bf16.msra.mxu0 %v3451_v23 }
  0xf2   :  { %1052 = vmatpush.bf16.msra.mxu1 %v3439_v1  ;;  %1065 = vmatpush.bf16.msra.mxu2 %v3443_v2  ;;  %v4370_v1 = vld [vmem:[#allocation9 + $0x2c] sm:$0xf]  ;;  %v3412_v2 = vld [vmem:[#allocation9 + $0x38] sm:$0xf0] }
  0xf4   :  { %v402_v53 = vpop.f32.mrf.mxu2  ;;  %v346_v63 = vpop.f32.mrf.mxu0 }
  0xf5   :  { %v5120_v61 = vadd.f32 %v5057_v26, %v402_v53  ;;  %v431_v62 = vpop.f32.mrf.mxu3  ;;  %v5126_v6 = vadd.f32 %v5041_v17, %v346_v63  ;;  %v375_v7 = vpop.f32.mrf.mxu1  ;;  %1077 = vmatpush.bf16.msra.mxu3 %v3463_v41  ;;  %v3435_v53 = vor.u32 %v4379_v45, %v3434_v43  ;;  %v3427_v41 = vor.u32 %v4376_v37, %v3426_v30  ;;  %v3428_v43 = vld [vmem:[#allocation9 + $0x58] sm:$0xf0]  ;;  %v3402_v45 = vld [vmem:[#allocation9 + $0x20] sm:$0xf] }
  0xf6   :  { %v5123_v5 = vadd.f32 %v5055_v25, %v431_v62  ;;  %v5129_v9 = vadd.f32 %v5045_v19, %v375_v7  ;;  %v3444_v7 = vld [vmem:[#allocation9 + $0x78] sm:$0xf0]  ;;  %v4375_v19 = vld [vmem:[#allocation9 + $0x4c] sm:$0xf0]  ;;  %1053 = vmatpush.bf16.msra.mxu1 %v3423_v35 }
  0xf7   :  { %1039 = vmatpush.bf16.msra.mxu0 %v3435_v53  ;;  %v3447_v12 = vor.u32 %v4378_v4, %v3444_v7  ;;  %v3419_v27 = vor.u32 %v4375_v19, %v3418_v15  ;;  %v3403_v53 = vor.u32 %v4371_v46, %v3402_v45  ;;  %1066 = vmatpush.bf16.msra.mxu2 %v3427_v41  ;;  %v3396_v35 = vld [vmem:[#allocation9 + $0x18] sm:$0xf0] }
  0xf9   :  { %1078 = vmatpush.bf16.msra.mxu3 %v3447_v12  ;;  %v3415_v12 = vor.u32 %v4370_v1, %v3412_v2 }
  0xfb   :  { %1040 = vmatpush.bf16.msra.mxu0 %v3419_v27  ;;  %v4368_v27 = vld [vmem:[#allocation9 + $0x14] sm:$0xf0] }
  0xfc   :  { %v404_v51 = vpop.f32.mrf.mxu2  ;;  %v726_v0 = vpop.f32.mrf.mxu0 }
  0xfd   :  { %v5136_v62 = vadd.f32 %v5057_v26, %v404_v51  ;;  %v433_v63 = vpop.f32.mrf.mxu3  ;;  %v769_v17 = vadd.f32 %v726_v0, %v446_v49  ;;  %v739_v8 = vpop.f32.mrf.mxu1  ;;  %v448_v49 = vadd.f32 %v5057_v26, %v5043_v18  ;;  %v3431_v51 = vor.u32 %v4374_v38, %v3428_v43  ;;  %v4372_v0 = vld [vmem:[#allocation9 + $0x34] sm:$0xf0]  ;;  %v3386_v18 = vld [vmem:[#allocation9] sm:$0xf]  ;;  %v4367_v26 = vld [vmem:[#allocation9 + $0xc] sm:$0xf0] }
  0xfe   :  { %v5139_v14 = vadd.f32 %v5055_v25, %v433_v63  ;;  %v770_v13 = vadd.f32 %v739_v8, %v447_v60  ;;  %v3407_v63 = vor.u32 %v4369_v54, %v3404_v57  ;;  %v3411_v8 = vor.u32 %v4372_v0, %v3410_v59 }
  0xff   :  { %v3381_v23 = vmul.f32 -1.442695, %v769_v17  ;;  %1079 = vmatpush.bf16.msra.mxu3 %v3431_v51  ;;  %1041 = vmatpush.bf16.msra.mxu0 %v3403_v53  ;;  %v3387_v19 = vor.u32 %v4367_v26, %v3386_v18  ;;  %v449_v54 = vadd.f32 %v5055_v25, %v5047_v20 }
 0x100   :  { %v3382_v33 = vmul.f32 -1.442695, %v770_v13  ;;  %v4365_v13 = vld [vmem:[#allocation9 + $0x4] sm:$0xf]  ;;  %1054 = vmatpush.bf16.msra.mxu1 %v3407_v63  ;;  %1067 = vmatpush.bf16.msra.mxu2 %v3411_v8 }
 0x101   :  { %4602 = vpow2.f32 %v3381_v23  ;;  %v3394_v23 = vld [vmem:[#allocation9 + $0x8] sm:$0xf]  ;;  %v3391_v30 = vor.u32 %v4365_v13, %v3388_v21 }
 0x102   :  { %4604 = vpow2.f32 %v3382_v33  ;;  %v4366_v33 = vld [vmem:[#allocation9 + $0xc] sm:$0xf]  ;;  %v3395_v38 = vor.u32 %v4368_v27, %v3394_v23 }
 0x103   :  { %1080 = vmatpush.bf16.msra.mxu3 %v3415_v12  ;;  %v3399_v45 = vor.u32 %v4366_v33, %v3396_v35  ;;  %1042 = vmatpush.bf16.msra.mxu0 %v3387_v19  ;;  %v516_v23 = vld [vmem:[#allocation12] sm:$0xff] }
 0x104   :  { %v752_v60 = vpop.f32.mrf.mxu2  ;;  %v728_v17 = vpop.f32.mrf.mxu0  ;;  %1055 = vmatpush.bf16.msra.mxu1 %v3391_v30  ;;  %1068 = vmatpush.bf16.msra.mxu2 %v3395_v38 }
 0x105   :  { %v771_v4 = vadd.f32 %v752_v60, %v448_v49  ;;  %v765_v7 = vpop.f32.mrf.mxu3  ;;  %v741_v15 = vpop.f32.mrf.mxu1 }
 0x106   :  { %v772_v60 = vadd.f32 %v765_v7, %v449_v54 }
 0x107   :  { %v3383_v29 = vmul.f32 -1.442695, %v771_v4  ;;  %v4603_v37 = vpop.eup %4602  ;;  %1081 = vmatpush.bf16.msra.mxu3 %v3399_v45 }
 0x108   :  { %v4605_v41 = vpop.eup %4604  ;;  %v782_v43 = vadd.f32 1.0, %v4603_v37 }
 0x109   :  { %4606 = vpow2.f32 %v3383_v29  ;;  %v783_v46 = vadd.f32 1.0, %v4605_v41 }
 0x10a   :  { %4608 = vrcp.f32 %v782_v43  ;;  %v796_v17 = vand.u32 2147483648, %v782_v43  ;;  %v794_v18 = vand.u32 2147483647, %v782_v43  ;;  %vm790_vm2 = vweird.f32 %v782_v43 }
 0x10b   :  { %4610 = vrcp.f32 %v783_v46  ;;  %v811_v8 = vand.u32 2147483648, %v783_v46  ;;  %v809_v13 = vand.u32 2147483647, %v783_v46  ;;  %vm805_vm3 = vweird.f32 %v783_v46 }
 0x10c   :  { %v754_v49 = vpop.f32.mrf.mxu2  ;;  %v797_v7 = vor.u32 1.1754944e-38, %v796_v17  ;;  %vm795_vm6 = vcmp.eq.f32.partialorder %v794_v18, 8.507059e+37 }
 0x10d   :  { %v767_v51 = vpop.f32.mrf.mxu3  ;;  %v812_v21 = vor.u32 1.1754944e-38, %v811_v8  ;;  %vm810_vm7 = vcmp.eq.f32.partialorder %v809_v13, 8.507059e+37  ;;  %v3631_v8 = vld [vmem:[#allocation9 + $0xf0] sm:$0xf0]  ;;  %v4426_v13 = vld [vmem:[#allocation9 + $0xec] sm:$0xf] }
 0x10f   :  { %v4607_v53 = vpop.eup %4606 }
 0x110   :  { %v784_v57 = vadd.f32 1.0, %v4607_v53  ;;  %v4609_v59 = vpop.eup %4608 }
 0x111   :  { %v4611_v63 = vpop.eup %4610  ;;  %v786_v0 = vmul.f32 %v4609_v59, %v782_v43  ;;  %vm791_vm0 = vweird.f32 %v4609_v59 }
 0x112   :  { %4612 = vrcp.f32 %v784_v57  ;;  %v801_v1 = vmul.f32 %v4611_v63, %v783_v46  ;;  %vm806_vm1 = vweird.f32 %v4611_v63  ;;  %vm792_vm4 = vmor %vm790_vm2, %vm791_vm0  ;;  %v826_v49 = vand.u32 2147483648, %v784_v57 }
 0x113   :  { %v787_v2 = vsub.f32 1.0, %v786_v0  ;;  %4614 = vtanh.f32 %v772_v60  ;;  %vm807_vm5 = vmor %vm805_vm3, %vm806_vm1  ;;  %vm820_vm9 = vweird.f32 %v784_v57  ;;  %v824_v51 = vand.u32 2147483647, %v784_v57 }
 0x114   :  { %v802_v4 = vsub.f32 1.0, %v801_v1  ;;  %v827_v54 = vor.u32 1.1754944e-38, %v826_v49  ;;  %v3629_v1 = vld [vmem:[#allocation9 + $0xe0] sm:$0xf] }
 0x115   :  { %v788_v12 = vmul.f32 %v4609_v59, %v787_v2  ;;  %vm825_vm11 = vcmp.eq.f32.partialorder %v824_v51, 8.507059e+37  ;;  %v4427_v2 = vld [vmem:[#allocation9 + $0xec] sm:$0xf0]  ;;  %v3599_v51 = vld [vmem:[#allocation9 + $0xb0] sm:$0xf0] }
 0x116   :  { %v803_v26 = vmul.f32 %v4611_v63, %v802_v4  ;;  %v4425_v4 = vld [vmem:[#allocation9 + $0xe4] sm:$0xf]  ;;  %v3630_v17 = vor.u32 %v4427_v2, %v3629_v1  ;;  %v3581_v2 = vld [vmem:[#allocation9 + $0x80] sm:$0xf] }
 0x117   :  { %v789_v20 = vadd.f32 %v4609_v59, %v788_v12  ;;  %v3637_v12 = vld [vmem:[#allocation9 + $0xe8] sm:$0xf]  ;;  %v3634_v18 = vor.u32 %v4425_v4, %v3631_v8  ;;  %v4415_v4 = vld [vmem:[#allocation9 + $0x8c] sm:$0xf0] }
 0x118   :  { %v4613_v15 = vpop.eup %4612  ;;  %v804_v19 = vadd.f32 %v4611_v63, %v803_v26  ;;  %1354 = vmatpush.bf16.msrb.mxu0 %v3630_v17  ;;  %v4413_v17 = vld [vmem:[#allocation9 + $0x84] sm:$0xf]  ;;  %v3582_v8 = vor.u32 %v4415_v4, %v3581_v2 }
 0x119   :  { %v816_v25 = vmul.f32 %v4613_v15, %v784_v57  ;;  %v793_v27 = vsel %vm792_vm4, %v4609_v59, %v789_v20  ;;  %v4615_v29 = vpop.eup %4614  ;;  %vm821_vm8 = vweird.f32 %v4613_v15  ;;  %v4428_v57 = vld [vmem:[#allocation9 + $0xf4] sm:$0xf0]  ;;  %1367 = vmatpush.bf16.msrb.mxu1 %v3634_v18 }
 0x11a   :  { %v798_v33 = vsel %vm795_vm6, %v797_v7, %v793_v27  ;;  %v808_v35 = vsel %vm807_vm5, %v4611_v63, %v804_v19  ;;  %vm822_vm10 = vmor %vm820_vm9, %vm821_vm8  ;;  %v3638_v26 = vor.u32 %v4428_v57, %v3637_v12  ;;  %v4423_v7 = vld [vmem:[#allocation9 + $0xcc] sm:$0xf0]  ;;  %v4421_v19 = vld [vmem:[#allocation9 + $0xc4] sm:$0xf] }
 0x11b   :  { %v817_v30 = vsub.f32 1.0, %v816_v25  ;;  %v813_v37 = vsel %vm810_vm7, %v812_v21, %v808_v35  ;;  %v832_v38 = vmul.f32 %v4615_v29, %v798_v33  ;;  %v3613_v25 = vld [vmem:[#allocation9 + $0xc0] sm:$0xf]  ;;  %v3621_v27 = vld [vmem:[#allocation9 + $0xc8] sm:$0xf] }
 0x11c   :  { %v831_v45 = vmul.f32 %v813_v37, %v516_v23  ;;  %1380 = vmatpush.bf16.msrb.mxu2 %v3638_v26  ;;  %v3614_v21 = vor.u32 %v4423_v7, %v3613_v25  ;;  %v3615_v23 = vld [vmem:[#allocation9 + $0xd0] sm:$0xf0]  ;;  %v4424_v29 = vld [vmem:[#allocation9 + $0xd4] sm:$0xf0]  ;;  %v4422_v35 = vld [vmem:[#allocation9 + $0xcc] sm:$0xf] }
 0x11d   :  { %v818_v41 = vmul.f32 %v4613_v15, %v817_v30  ;;  %v3618_v30 = vor.u32 %v4421_v19, %v3615_v23  ;;  %v3622_v33 = vor.u32 %v4424_v29, %v3621_v27  ;;  %v3623_v37 = vld [vmem:[#allocation9 + $0xd8] sm:$0xf0]  ;;  %v3583_v12 = vld [vmem:[#allocation9 + $0x90] sm:$0xf0]  ;;  %v3589_v57 = vld [vmem:[#allocation9 + $0x88] sm:$0xf] }
 0x11e   :  { %v5145_v43 = vadd.f32 %v832_v38, %v831_v45  ;;  %1355 = vmatpush.bf16.msrb.mxu0 %v3614_v21  ;;  %v3626_v38 = vor.u32 %v4422_v35, %v3623_v37  ;;  %v4419_v45 = vld [vmem:[#allocation9 + $0xac] sm:$0xf0]  ;;  %v4416_v18 = vld [vmem:[#allocation9 + $0x94] sm:$0xf0]  ;;  %v3586_v26 = vor.u32 %v4413_v17, %v3583_v12  ;;  %v3565_v7 = vld [vmem:[#allocation9 + $0x60] sm:$0xf] }
 0x11f   :  { %v819_v46 = vadd.f32 %v4613_v15, %v818_v41  ;;  %1368 = vmatpush.bf16.msrb.mxu1 %v3618_v30  ;;  %v3597_v41 = vld [vmem:[#allocation9 + $0xa0] sm:$0xf]  ;;  %v4411_v19 = vld [vmem:[#allocation9 + $0x6c] sm:$0xf0]  ;;  %v4409_v21 = vld [vmem:[#allocation9 + $0x64] sm:$0xf] }
 0x120   :  { %4616 = vtanh.f32 %v5145_v43  ;;  %1381 = vmatpush.bf16.msrb.mxu2 %v3622_v33  ;;  %v3598_v49 = vor.u32 %v4419_v45, %v3597_v41  ;;  %v3566_v23 = vor.u32 %v4411_v19, %v3565_v7  ;;  %v3567_v27 = vld [vmem:[#allocation9 + $0x70] sm:$0xf0]  ;;  %v3573_v29 = vld [vmem:[#allocation9 + $0x68] sm:$0xf]  ;;  %v4412_v30 = vld [vmem:[#allocation9 + $0x74] sm:$0xf0] }
 0x121   :  { %v823_v53 = vsel %vm822_vm10, %v4613_v15, %v819_v46  ;;  %v3639_v15 = vld [vmem:[#allocation9 + $0xf8] sm:$0xf0]  ;;  %v4417_v46 = vld [vmem:[#allocation9 + $0xa4] sm:$0xf]  ;;  %v3570_v33 = vor.u32 %v4409_v21, %v3567_v27  ;;  %v3574_v35 = vor.u32 %v4412_v30, %v3573_v29  ;;  %v4410_v37 = vld [vmem:[#allocation9 + $0x6c] sm:$0xf] }
 0x122   :  { %v828_v60 = vsel %vm825_vm11, %v827_v54, %v823_v53  ;;  %v3642_v20 = vor.u32 %v4426_v13, %v3639_v15  ;;  %v3605_v53 = vld [vmem:[#allocation9 + $0xa8] sm:$0xf]  ;;  %v4420_v54 = vld [vmem:[#allocation9 + $0xb4] sm:$0xf0]  ;;  %1356 = vmatpush.bf16.msrb.mxu0 %v3598_v49  ;;  %v3590_v13 = vor.u32 %v4416_v18, %v3589_v57  ;;  %v4414_v15 = vld [vmem:[#allocation9 + $0x8c] sm:$0xf] }
 0x123   :  { %v4406_v12 = vld [vmem:[#allocation9 + $0x4c] sm:$0xf]  ;;  %v3559_v57 = vld [vmem:[#allocation9 + $0x58] sm:$0xf0]  ;;  %v4403_v18 = vld [vmem:[#allocation9 + $0x2c] sm:$0xf0] }
 0x124   :  { %1393 = vmatpush.bf16.msrb.mxu3 %v3642_v20  ;;  %v3591_v20 = vld [vmem:[#allocation9 + $0x98] sm:$0xf0]  ;;  %v4404_v7 = vld [vmem:[#allocation9 + $0x34] sm:$0xf0]  ;;  %v4402_v19 = vld [vmem:[#allocation9 + $0x2c] sm:$0xf] }
 0x125   :  { %v3594_v25 = vor.u32 %v4414_v15, %v3591_v20  ;;  %v3535_v15 = vld [vmem:[#allocation9 + $0x30] sm:$0xf0]  ;;  %v3541_v20 = vld [vmem:[#allocation9 + $0x28] sm:$0xf]  ;;  %v3543_v21 = vld [vmem:[#allocation9 + $0x38] sm:$0xf0] }
 0x126   :  { %v4617_v59 = vpop.eup %4616  ;;  %1357 = vmatpush.bf16.msrb.mxu0 %v3582_v8  ;;  %v3542_v29 = vor.u32 %v4404_v7, %v3541_v20  ;;  %v3546_v30 = vor.u32 %v4402_v19, %v3543_v21 }
 0x127   :  { %v835_v63 = vmul.f32 %v4617_v59, %v828_v60  ;;  %v3602_v59 = vor.u32 %v4417_v46, %v3599_v51  ;;  %v3606_v60 = vor.u32 %v4420_v54, %v3605_v53  ;;  %v3549_v53 = vld [vmem:[#allocation9 + $0x40] sm:$0xf]  ;;  %v4407_v54 = vld [vmem:[#allocation9 + $0x4c] sm:$0xf0] }
 0x128   :  { %1394 = vmatpush.bf16.msrb.mxu3 %v3626_v38  ;;  %v3575_v38 = vld [vmem:[#allocation9 + $0x78] sm:$0xf0] }
 0x129   :  { %836 = vst [vmem:[#allocation14] sm:$0xff] %v835_v63  ;;  %v842_v0 = vpack.c.bf16 %v835_v63, %v835_v63  ;;  %v4418_v63 = vld [vmem:[#allocation9 + $0xac] sm:$0xf]  ;;  %1369 = vmatpush.bf16.msrb.mxu1 %v3602_v59  ;;  %1382 = vmatpush.bf16.msrb.mxu2 %v3606_v60  ;;  %v3578_v46 = vor.u32 %v4410_v37, %v3575_v38  ;;  %v4405_v59 = vld [vmem:[#allocation9 + $0x44] sm:$0xf] }
 0x12a   :  { %1358 = vmatpush.bf16.msrb.mxu0 %v3566_v23  ;;  %v3550_v60 = vor.u32 %v4407_v54, %v3549_v53  ;;  %v4397_v37 = vld [vmem:[#allocation9 + $0x4] sm:$0xf]  ;;  %v4400_v53 = vld [vmem:[#allocation9 + $0x14] sm:$0xf0] }
 0x12b   :  { %1043 = vmatmul.bf16.vlgmr.msra.gmra.mxu0 %v842_v0  ;;  %1056 = vmatmul.bf16.vlgmr.msra.gmra.mxu1 %v842_v0 }
 0x12c   :  { %1069 = vmatmul.bf16.vlgmr.msra.gmra.mxu2 %v842_v0  ;;  %1082 = vmatmul.bf16.vlgmr.msra.gmra.mxu3 %v842_v0  ;;  %v3607_v0 = vld [vmem:[#allocation9 + $0xb8] sm:$0xf0] }
 0x12d   :  { %v3610_v1 = vor.u32 %v4418_v63, %v3607_v0  ;;  %1370 = vmatpush.bf16.msrb.mxu1 %v3586_v26  ;;  %1383 = vmatpush.bf16.msrb.mxu2 %v3590_v13  ;;  %v3551_v63 = vld [vmem:[#allocation9 + $0x50] sm:$0xf0]  ;;  %v3557_v0 = vld [vmem:[#allocation9 + $0x48] sm:$0xf]  ;;  %v4401_v13 = vld [vmem:[#allocation9 + $0x24] sm:$0xf] }
 0x12e   :  { %v3554_v17 = vor.u32 %v4405_v59, %v3551_v63  ;;  %1359 = vmatpush.bf16.msrb.mxu0 %v3550_v60  ;;  %v4398_v60 = vld [vmem:[#allocation9 + $0xc] sm:$0xf]  ;;  %v3527_v63 = vld [vmem:[#allocation9 + $0x18] sm:$0xf0] }
 0x12f   :  { %1395 = vmatpush.bf16.msrb.mxu3 %v3610_v1  ;;  %v4408_v1 = vld [vmem:[#allocation9 + $0x54] sm:$0xf0] }
 0x130   :  { %v3558_v8 = vor.u32 %v4408_v1, %v3557_v0 }
 0x131   :  { %1371 = vmatpush.bf16.msrb.mxu1 %v3570_v33  ;;  %1384 = vmatpush.bf16.msrb.mxu2 %v3574_v35  ;;  %v3517_v33 = vld [vmem:[#allocation9] sm:$0xf]  ;;  %v4399_v35 = vld [vmem:[#allocation9 + $0xc] sm:$0xf0] }
 0x133   :  { %1396 = vmatpush.bf16.msrb.mxu3 %v3594_v25  ;;  %v3538_v25 = vor.u32 %v4401_v13, %v3535_v15 }
 0x135   :  { %1372 = vmatpush.bf16.msrb.mxu1 %v3554_v17  ;;  %1385 = vmatpush.bf16.msrb.mxu2 %v3558_v8 }
 0x137   :  { %1397 = vmatpush.bf16.msrb.mxu3 %v3578_v46  ;;  %v3518_v46 = vor.u32 %v4399_v35, %v3517_v33 }
 0x139   :  { %1373 = vmatpush.bf16.msrb.mxu1 %v3538_v25  ;;  %1386 = vmatpush.bf16.msrb.mxu2 %v3542_v29 }
 0x1a8   :  { %v1044_v41 = vpop.f32.mrf.mxu0  ;;  %v1057_v45 = vpop.f32.mrf.mxu1 }
 0x1a9   :  { %v1087_v49 = vadd.f32 %v1044_v41, %v5050_v22  ;;  %v1088_v51 = vadd.f32 %v1057_v45, %v5053_v24  ;;  %v3533_v22 = vld [vmem:[#allocation9 + $0x20] sm:$0xf]  ;;  %v3562_v24 = vor.u32 %v4406_v12, %v3559_v57 }
 0x1aa   :  { %v3534_v26 = vor.u32 %v4403_v18, %v3533_v22 }
 0x1ab   :  { %v3512_v2 = vmul.f32 -1.442695, %v1087_v49  ;;  %v3513_v4 = vmul.f32 -1.442695, %v1088_v51  ;;  %1398 = vmatpush.bf16.msrb.mxu3 %v3562_v24  ;;  %v3519_v49 = vld [vmem:[#allocation9 + $0x10] sm:$0xf0] }
 0x1ac   :  { %1360 = vmatpush.bf16.msrb.mxu0 %v3534_v26  ;;  %v3525_v51 = vld [vmem:[#allocation9 + $0x8] sm:$0xf]  ;;  %v3522_v54 = vor.u32 %v4397_v37, %v3519_v49 }
 0x1ad   :  { %4618 = vpow2.f32 %v3512_v2  ;;  %v3526_v59 = vor.u32 %v4400_v53, %v3525_v51  ;;  %v3530_v2 = vor.u32 %v4398_v60, %v3527_v63 }
 0x1ae   :  { %4620 = vpow2.f32 %v3513_v4  ;;  %1374 = vmatpush.bf16.msrb.mxu1 %v3522_v54 }
 0x1af   :  { %v1070_v23 = vpop.f32.mrf.mxu2  ;;  %v1083_v27 = vpop.f32.mrf.mxu3  ;;  %1399 = vmatpush.bf16.msrb.mxu3 %v3546_v30  ;;  %1387 = vmatpush.bf16.msrb.mxu2 %v3526_v59 }
 0x1b0   :  { %v1089_v38 = vadd.f32 %v1070_v23, %v5060_v28  ;;  %v1046_v41 = vpop.f32.mrf.mxu0  ;;  %v1059_v45 = vpop.f32.mrf.mxu1  ;;  %1361 = vmatpush.bf16.msrb.mxu0 %v3518_v46  ;;  %v1090_v24 = vadd.f32 %v1083_v27, %v5063_v31 }
 0x1b2   :  { %v3514_v0 = vmul.f32 -1.442695, %v1089_v38 }
 0x1b3   :  { %v4619_v1 = vpop.eup %4618  ;;  %1400 = vmatpush.bf16.msrb.mxu3 %v3530_v2 }
 0x1b4   :  { %v4621_v4 = vpop.eup %4620  ;;  %v1100_v17 = vadd.f32 1.0, %v4619_v1  ;;  %4622 = vpow2.f32 %v3514_v0 }
 0x1b5   :  { %v1101_v28 = vadd.f32 1.0, %v4621_v4 }
 0x1b6   :  { %4624 = vrcp.f32 %v1100_v17  ;;  %v1114_v7 = vand.u32 2147483648, %v1100_v17  ;;  %v1112_v23 = vand.u32 2147483647, %v1100_v17  ;;  %vm1108_vm14 = vweird.f32 %v1100_v17 }
 0x1b7   :  { %4626 = vrcp.f32 %v1101_v28  ;;  %v1072_v8 = vpop.f32.mrf.mxu2  ;;  %v1085_v12 = vpop.f32.mrf.mxu3  ;;  %v1129_v19 = vand.u32 2147483648, %v1101_v28  ;;  %v1127_v30 = vand.u32 2147483647, %v1101_v28  ;;  %vm1123_vm15 = vweird.f32 %v1101_v28 }
 0x1b8   :  { %v1115_v27 = vor.u32 1.1754944e-38, %v1114_v7  ;;  %vm1113_vm2 = vcmp.eq.f32.partialorder %v1112_v23, 8.507059e+37  ;;  %v4458_v7 = vld [vmem:[#allocation9 + $0xec] sm:$0xf]  ;;  %v3744_v23 = vld [vmem:[#allocation9 + $0xc0] sm:$0xf] }
 0x1b9   :  { %v1130_v38 = vor.u32 1.1754944e-38, %v1129_v19  ;;  %vm1128_vm3 = vcmp.eq.f32.partialorder %v1127_v30, 8.507059e+37  ;;  %v3770_v19 = vld [vmem:[#allocation9 + $0xf8] sm:$0xf0]  ;;  %v4453_v30 = vld [vmem:[#allocation9 + $0xc4] sm:$0xf] }
 0x1ba   :  { %v4623_v57 = vpop.eup %4622 }
 0x1bb   :  { %v1102_v22 = vadd.f32 1.0, %v4623_v57 }
 0x1bc   :  { %v4625_v18 = vpop.eup %4624 }
 0x1bd   :  { %v4627_v26 = vpop.eup %4626  ;;  %v1104_v13 = vmul.f32 %v4625_v18, %v1100_v17  ;;  %4628 = vrcp.f32 %v1102_v22  ;;  %vm1109_vm12 = vweird.f32 %v4625_v18  ;;  %v1144_v1 = vand.u32 2147483648, %v1102_v22 }
 0x1be   :  { %v1119_v15 = vmul.f32 %v4627_v26, %v1101_v28  ;;  %4630 = vtanh.f32 %v1090_v24  ;;  %vm1124_vm13 = vweird.f32 %v4627_v26  ;;  %vm1110_vm0 = vmor %vm1108_vm14, %vm1109_vm12  ;;  %vm1138_vm5 = vweird.f32 %v1102_v22  ;;  %v4457_v24 = vld [vmem:[#allocation9 + $0xe4] sm:$0xf] }
 0x1bf   :  { %v1105_v20 = vsub.f32 1.0, %v1104_v13  ;;  %vm1125_vm1 = vmor %vm1123_vm15, %vm1124_vm13  ;;  %v1142_v2 = vand.u32 2147483647, %v1102_v22  ;;  %v1145_v17 = vor.u32 1.1754944e-38, %v1144_v1  ;;  %v3762_v13 = vld [vmem:[#allocation9 + $0xf0] sm:$0xf0] }
 0x1c0   :  { %v1120_v25 = vsub.f32 1.0, %v1119_v15  ;;  %v3768_v15 = vld [vmem:[#allocation9 + $0xe8] sm:$0xf] }
 0x1c1   :  { %v1106_v21 = vmul.f32 %v4625_v18, %v1105_v20  ;;  %vm1143_vm7 = vcmp.eq.f32.partialorder %v1142_v2, 8.507059e+37  ;;  %v3765_v20 = vor.u32 %v4457_v24, %v3762_v13  ;;  %v3720_v24 = vld [vmem:[#allocation9 + $0x88] sm:$0xf] }
 0x1c2   :  { %v1121_v29 = vmul.f32 %v4627_v26, %v1120_v25 }
 0x1c3   :  { %v4629_v33 = vpop.eup %4628  ;;  %v1107_v35 = vadd.f32 %v4625_v18, %v1106_v21  ;;  %v3773_v21 = vor.u32 %v4458_v7, %v3770_v19  ;;  %1686 = vmatpush.bf16.msra.mxu1 %v3765_v20  ;;  %v3722_v20 = vld [vmem:[#allocation9 + $0x98] sm:$0xf0]  ;;  %v3696_v7 = vld [vmem:[#allocation9 + $0x60] sm:$0xf]  ;;  %v4443_v19 = vld [vmem:[#allocation9 + $0x6c] sm:$0xf0] }
 0x1c4   :  { %v1134_v31 = vmul.f32 %v4629_v33, %v1102_v22  ;;  %v1122_v37 = vadd.f32 %v4627_v26, %v1121_v29  ;;  %v4631_v45 = vpop.eup %4630  ;;  %vm1139_vm4 = vweird.f32 %v4629_v33  ;;  %v4460_v22 = vld [vmem:[#allocation9 + $0xf4] sm:$0xf0]  ;;  %v4455_v29 = vld [vmem:[#allocation9 + $0xcc] sm:$0xf0] }
 0x1c5   :  { %v1111_v41 = vsel %vm1110_vm0, %v4625_v18, %v1107_v35  ;;  %vm1140_vm6 = vmor %vm1138_vm5, %vm1139_vm4  ;;  %v4459_v18 = vld [vmem:[#allocation9 + $0xec] sm:$0xf0]  ;;  %v3769_v25 = vor.u32 %v4460_v22, %v3768_v15  ;;  %1712 = vmatpush.bf16.msra.mxu3 %v3773_v21  ;;  %v3746_v35 = vld [vmem:[#allocation9 + $0xd0] sm:$0xf0] }
 0x1c6   :  { %v1135_v46 = vsub.f32 1.0, %v1134_v31  ;;  %v1116_v49 = vsel %vm1113_vm2, %v1115_v27, %v1111_v41  ;;  %v1126_v51 = vsel %vm1125_vm1, %v4627_v26, %v1122_v37  ;;  %v3752_v31 = vld [vmem:[#allocation9 + $0xc8] sm:$0xf]  ;;  %v4456_v27 = vld [vmem:[#allocation9 + $0xd4] sm:$0xf0]  ;;  %v3749_v37 = vor.u32 %v4453_v30, %v3746_v35 }
 0x1c7   :  { %v1131_v53 = vsel %vm1128_vm3, %v1130_v38, %v1126_v51  ;;  %v1150_v54 = vmul.f32 %v4631_v45, %v1116_v49  ;;  %1699 = vmatpush.bf16.msra.mxu2 %v3769_v25  ;;  %v3753_v38 = vor.u32 %v4456_v27, %v3752_v31  ;;  %v4454_v41 = vld [vmem:[#allocation9 + $0xcc] sm:$0xf]  ;;  %v3754_v45 = vld [vmem:[#allocation9 + $0xd8] sm:$0xf0]  ;;  %v3728_v49 = vld [vmem:[#allocation9 + $0xa0] sm:$0xf] }
 0x1c8   :  { %v1136_v59 = vmul.f32 %v4629_v33, %v1135_v46  ;;  %v1149_v60 = vmul.f32 %v1131_v53, %v5145_v43  ;;  %v3760_v43 = vld [vmem:[#allocation9 + $0xe0] sm:$0xf]  ;;  %v3757_v46 = vor.u32 %v4454_v41, %v3754_v45  ;;  %1687 = vmatpush.bf16.msra.mxu1 %v3749_v37  ;;  %v4451_v51 = vld [vmem:[#allocation9 + $0xac] sm:$0xf0]  ;;  %v4449_v53 = vld [vmem:[#allocation9 + $0xa4] sm:$0xf] }
 0x1c9   :  { %v3761_v26 = vor.u32 %v4459_v18, %v3760_v43  ;;  %v3714_v18 = vld [vmem:[#allocation9 + $0x90] sm:$0xf0]  ;;  %v4446_v22 = vld [vmem:[#allocation9 + $0x8c] sm:$0xf]  ;;  %v4441_v21 = vld [vmem:[#allocation9 + $0x64] sm:$0xf] }
 0x1ca   :  { %v5153_v63 = vadd.f32 %v1150_v54, %v1149_v60  ;;  %v1137_v0 = vadd.f32 %v4629_v33, %v1136_v59  ;;  %1713 = vmatpush.bf16.msra.mxu3 %v3757_v46  ;;  %v3729_v54 = vor.u32 %v4451_v51, %v3728_v49  ;;  %v3730_v59 = vld [vmem:[#allocation9 + $0xb0] sm:$0xf0]  ;;  %v3736_v60 = vld [vmem:[#allocation9 + $0xa8] sm:$0xf]  ;;  %v3725_v25 = vor.u32 %v4446_v22, %v3722_v20  ;;  %v4442_v27 = vld [vmem:[#allocation9 + $0x6c] sm:$0xf] }
 0x1cb   :  { %1673 = vmatpush.bf16.msra.mxu0 %v3761_v26  ;;  %1700 = vmatpush.bf16.msra.mxu2 %v3753_v38  ;;  %v3733_v1 = vor.u32 %v4449_v53, %v3730_v59  ;;  %v4448_v26 = vld [vmem:[#allocation9 + $0x94] sm:$0xf0]  ;;  %v3704_v30 = vld [vmem:[#allocation9 + $0x68] sm:$0xf]  ;;  %v3706_v37 = vld [vmem:[#allocation9 + $0x78] sm:$0xf0] }
 0x1cc   :  { %4632 = vtanh.f32 %v5153_v63  ;;  %v1141_v4 = vsel %vm1140_vm6, %v4629_v33, %v1137_v0  ;;  %v3745_v33 = vor.u32 %v4455_v29, %v3744_v23  ;;  %v4452_v0 = vld [vmem:[#allocation9 + $0xb4] sm:$0xf0]  ;;  %v3721_v15 = vor.u32 %v4448_v26, %v3720_v24  ;;  %v3698_v29 = vld [vmem:[#allocation9 + $0x70] sm:$0xf0]  ;;  %v3680_v51 = vld [vmem:[#allocation9 + $0x40] sm:$0xf] }
 0x1cd   :  { %v1146_v8 = vsel %vm1143_vm7, %v1145_v17, %v1141_v4  ;;  %v3737_v2 = vor.u32 %v4452_v0, %v3736_v60  ;;  %v4450_v4 = vld [vmem:[#allocation9 + $0xac] sm:$0xf]  ;;  %v3738_v17 = vld [vmem:[#allocation9 + $0xb8] sm:$0xf0]  ;;  %1688 = vmatpush.bf16.msra.mxu1 %v3733_v1  ;;  %v3697_v23 = vor.u32 %v4443_v19, %v3696_v7  ;;  %v3701_v35 = vor.u32 %v4441_v21, %v3698_v29  ;;  %v4439_v53 = vld [vmem:[#allocation9 + $0x4c] sm:$0xf0] }
 0x1ce   :  { %v3709_v45 = vor.u32 %v4442_v27, %v3706_v37  ;;  %v3681_v59 = vor.u32 %v4439_v53, %v3680_v51  ;;  %v3682_v60 = vld [vmem:[#allocation9 + $0x50] sm:$0xf0]  ;;  %v3688_v0 = vld [vmem:[#allocation9 + $0x48] sm:$0xf]  ;;  %v4440_v1 = vld [vmem:[#allocation9 + $0x54] sm:$0xf0] }
 0x1cf   :  { %1674 = vmatpush.bf16.msra.mxu0 %v3745_v33  ;;  %1701 = vmatpush.bf16.msra.mxu2 %v3737_v2  ;;  %v4444_v33 = vld [vmem:[#allocation9 + $0x74] sm:$0xf0]  ;;  %v3666_v24 = vld [vmem:[#allocation9 + $0x30] sm:$0xf0]  ;;  %v3672_v26 = vld [vmem:[#allocation9 + $0x28] sm:$0xf] }
 0x1d0   :  { %v3705_v31 = vor.u32 %v4444_v33, %v3704_v30  ;;  %v4434_v22 = vld [vmem:[#allocation9 + $0x2c] sm:$0xf]  ;;  %v3674_v20 = vld [vmem:[#allocation9 + $0x38] sm:$0xf0]  ;;  %v4431_v29 = vld [vmem:[#allocation9 + $0xc] sm:$0xf0] }
 0x1d1   :  { %v3677_v21 = vor.u32 %v4434_v22, %v3674_v20  ;;  %v4429_v30 = vld [vmem:[#allocation9 + $0x4] sm:$0xf]  ;;  %v3650_v37 = vld [vmem:[#allocation9 + $0x10] sm:$0xf0]  ;;  %v3658_v51 = vld [vmem:[#allocation9 + $0x18] sm:$0xf0] }
 0x1d2   :  { %v4633_v28 = vpop.eup %4632 }
 0x1d3   :  { %v1153_v12 = vmul.f32 %v4633_v28, %v1146_v8  ;;  %1675 = vmatpush.bf16.msra.mxu0 %v3729_v54  ;;  %v3741_v28 = vor.u32 %v4450_v4, %v3738_v17  ;;  %v3712_v8 = vld [vmem:[#allocation9 + $0x80] sm:$0xf]  ;;  %1702 = vmatpush.bf16.msra.mxu2 %v3721_v15  ;;  %v4437_v54 = vld [vmem:[#allocation9 + $0x44] sm:$0xf]  ;;  %v4436_v15 = vld [vmem:[#allocation9 + $0x34] sm:$0xf0] }
 0x1d4   :  { %v3685_v17 = vor.u32 %v4437_v54, %v3682_v60  ;;  %v3673_v19 = vor.u32 %v4436_v15, %v3672_v26 }
 0x1d5   :  { %1155 = vst [vmem:[#allocation14 + $0x8] sm:$0xff] %v1153_v12  ;;  %v1161_v57 = vpack.c.bf16 %v1153_v12, %v1153_v12  ;;  %v4447_v12 = vld [vmem:[#allocation9 + $0x8c] sm:$0xf0]  ;;  %1714 = vmatpush.bf16.msra.mxu3 %v3741_v28  ;;  %v3689_v28 = vor.u32 %v4440_v1, %v3688_v0 }
 0x1d6   :  { %v3713_v43 = vor.u32 %v4447_v12, %v3712_v8  ;;  %v4438_v8 = vld [vmem:[#allocation9 + $0x4c] sm:$0xf]  ;;  %v3690_v12 = vld [vmem:[#allocation9 + $0x58] sm:$0xf0] }
 0x1d7   :  { %1362 = vmatmul.bf16.vlgmr.msrb.gmra.mxu0 %v1161_v57  ;;  %1375 = vmatmul.bf16.vlgmr.msrb.gmra.mxu1 %v1161_v57 }
 0x1d8   :  { %1388 = vmatmul.bf16.vlgmr.msrb.gmra.mxu2 %v1161_v57  ;;  %1401 = vmatmul.bf16.vlgmr.msrb.gmra.mxu3 %v1161_v57  ;;  %v4445_v57 = vld [vmem:[#allocation9 + $0x84] sm:$0xf] }
 0x1d9   :  { %v3717_v13 = vor.u32 %v4445_v57, %v3714_v18  ;;  %1676 = vmatpush.bf16.msra.mxu0 %v3713_v43  ;;  %1715 = vmatpush.bf16.msra.mxu3 %v3725_v25  ;;  %v4435_v57 = vld [vmem:[#allocation9 + $0x2c] sm:$0xf0]  ;;  %v4433_v18 = vld [vmem:[#allocation9 + $0x24] sm:$0xf] }
 0x1da   :  { %1703 = vmatpush.bf16.msra.mxu2 %v3705_v31 }
 0x1db   :  { %1689 = vmatpush.bf16.msra.mxu1 %v3717_v13  ;;  %v3669_v13 = vor.u32 %v4433_v18, %v3666_v24 }
 0x1dd   :  { %1677 = vmatpush.bf16.msra.mxu0 %v3697_v23  ;;  %1716 = vmatpush.bf16.msra.mxu3 %v3709_v45  ;;  %v3648_v23 = vld [vmem:[#allocation9] sm:$0xf]  ;;  %v3653_v45 = vor.u32 %v4429_v30, %v3650_v37 }
 0x1de   :  { %1704 = vmatpush.bf16.msra.mxu2 %v3689_v28  ;;  %v3649_v27 = vor.u32 %v4431_v29, %v3648_v23 }
 0x1df   :  { %1690 = vmatpush.bf16.msra.mxu1 %v3701_v35 }
 0x1e1   :  { %1678 = vmatpush.bf16.msra.mxu0 %v3681_v59 }
 0x1e2   :  { %1705 = vmatpush.bf16.msra.mxu2 %v3673_v19 }
 0x1e3   :  { %1691 = vmatpush.bf16.msra.mxu1 %v3685_v17 }
 0x1e7   :  { %1692 = vmatpush.bf16.msra.mxu1 %v3669_v13 }
 0x1eb   :  { %1693 = vmatpush.bf16.msra.mxu1 %v3653_v45 }
 0x254   :  { %v1363_v38 = vpop.f32.mrf.mxu0  ;;  %v1376_v41 = vpop.f32.mrf.mxu1 }
 0x255   :  { %v1406_v46 = vadd.f32 %v1363_v38, %v5066_v32  ;;  %v1407_v49 = vadd.f32 %v1376_v41, %v5069_v34  ;;  %v3664_v32 = vld [vmem:[#allocation9 + $0x20] sm:$0xf]  ;;  %v3693_v34 = vor.u32 %v4438_v8, %v3690_v12  ;;  %v3656_v38 = vld [vmem:[#allocation9 + $0x8] sm:$0xf]  ;;  %v4432_v41 = vld [vmem:[#allocation9 + $0x14] sm:$0xf0] }
 0x256   :  { %v3665_v43 = vor.u32 %v4435_v57, %v3664_v32 }
 0x257   :  { %v3643_v2 = vmul.f32 -1.442695, %v1406_v46  ;;  %v3644_v4 = vmul.f32 -1.442695, %v1407_v49  ;;  %1717 = vmatpush.bf16.msra.mxu3 %v3693_v34  ;;  %v3657_v46 = vor.u32 %v4432_v41, %v3656_v38  ;;  %v4430_v49 = vld [vmem:[#allocation9 + $0xc] sm:$0xf] }
 0x258   :  { %1679 = vmatpush.bf16.msra.mxu0 %v3665_v43  ;;  %v3661_v59 = vor.u32 %v4430_v49, %v3658_v51 }
 0x259   :  { %4634 = vpow2.f32 %v3643_v2  ;;  %1706 = vmatpush.bf16.msra.mxu2 %v3657_v46 }
 0x25a   :  { %4636 = vpow2.f32 %v3644_v4 }
 0x25b   :  { %v1389_v25 = vpop.f32.mrf.mxu2  ;;  %v1402_v7 = vpop.f32.mrf.mxu3  ;;  %1718 = vmatpush.bf16.msra.mxu3 %v3677_v21 }
 0x25c   :  { %v1408_v33 = vadd.f32 %v1389_v25, %v5072_v36  ;;  %v1365_v35 = vpop.f32.mrf.mxu0  ;;  %v1378_v31 = vpop.f32.mrf.mxu1  ;;  %1680 = vmatpush.bf16.msra.mxu0 %v3649_v27  ;;  %v1409_v8 = vadd.f32 %v1402_v7, %v5075_v39 }
 0x25e   :  { %v3645_v53 = vmul.f32 -1.442695, %v1408_v33 }
 0x25f   :  { %v4635_v54 = vpop.eup %4634  ;;  %1719 = vmatpush.bf16.msra.mxu3 %v3661_v59 }
 0x260   :  { %v4637_v60 = vpop.eup %4636  ;;  %v1419_v0 = vadd.f32 1.0, %v4635_v54  ;;  %4638 = vpow2.f32 %v3645_v53 }
 0x261   :  { %v1420_v36 = vadd.f32 1.0, %v4637_v60 }
 0x262   :  { %4640 = vrcp.f32 %v1419_v0  ;;  %v1433_v18 = vand.u32 2147483648, %v1419_v0  ;;  %v1431_v13 = vand.u32 2147483647, %v1419_v0  ;;  %vm1427_vm10 = vweird.f32 %v1419_v0 }
 0x263   :  { %4642 = vrcp.f32 %v1420_v36  ;;  %v1391_v1 = vpop.f32.mrf.mxu2  ;;  %v1404_v2 = vpop.f32.mrf.mxu3  ;;  %v1448_v24 = vand.u32 2147483648, %v1420_v36  ;;  %v1446_v22 = vand.u32 2147483647, %v1420_v36  ;;  %vm1442_vm11 = vweird.f32 %v1420_v36 }
 0x264   :  { %v1434_v7 = vor.u32 1.1754944e-38, %v1433_v18  ;;  %vm1432_vm14 = vcmp.eq.f32.partialorder %v1431_v13, 8.507059e+37  ;;  %v4489_v1 = vld [vmem:[#allocation9 + $0xe4] sm:$0xf]  ;;  %v4487_v18 = vld [vmem:[#allocation9 + $0xcc] sm:$0xf0] }
 0x265   :  { %v1449_v21 = vor.u32 1.1754944e-38, %v1448_v24  ;;  %vm1447_vm15 = vcmp.eq.f32.partialorder %v1446_v22, 8.507059e+37  ;;  %v4485_v24 = vld [vmem:[#allocation9 + $0xc4] sm:$0xf]  ;;  %v3877_v13 = vld [vmem:[#allocation9 + $0xd0] sm:$0xf0] }
 0x266   :  { %v4639_v4 = vpop.eup %4638  ;;  %v4488_v22 = vld [vmem:[#allocation9 + $0xd4] sm:$0xf0] }
 0x267   :  { %v1421_v17 = vadd.f32 1.0, %v4639_v4  ;;  %v3893_v4 = vld [vmem:[#allocation9 + $0xf0] sm:$0xf0] }
 0x268   :  { %v4641_v28 = vpop.eup %4640 }
 0x269   :  { %v4643_v12 = vpop.eup %4642  ;;  %v1423_v32 = vmul.f32 %v4641_v28, %v1419_v0  ;;  %4644 = vrcp.f32 %v1421_v17  ;;  %vm1428_vm8 = vweird.f32 %v4641_v28  ;;  %v1463_v46 = vand.u32 2147483648, %v1421_v17 }
 0x26a   :  { %v1438_v57 = vmul.f32 %v4643_v12, %v1420_v36  ;;  %4646 = vtanh.f32 %v1409_v8  ;;  %vm1443_vm9 = vweird.f32 %v4643_v12  ;;  %vm1429_vm12 = vmor %vm1427_vm10, %vm1428_vm8  ;;  %vm1457_vm1 = vweird.f32 %v1421_v17  ;;  %v4491_v36 = vld [vmem:[#allocation9 + $0xec] sm:$0xf0] }
 0x26b   :  { %v1424_v34 = vsub.f32 1.0, %v1423_v32  ;;  %vm1444_vm13 = vmor %vm1442_vm11, %vm1443_vm9  ;;  %v1461_v49 = vand.u32 2147483647, %v1421_v17  ;;  %v1464_v53 = vor.u32 1.1754944e-38, %v1463_v46  ;;  %v3896_v8 = vor.u32 %v4489_v1, %v3893_v4  ;;  %v4490_v32 = vld [vmem:[#allocation9 + $0xec] sm:$0xf] }
 0x26c   :  { %v1439_v43 = vsub.f32 1.0, %v1438_v57  ;;  %v3901_v57 = vld [vmem:[#allocation9 + $0xf8] sm:$0xf0]  ;;  %v4478_v1 = vld [vmem:[#allocation9 + $0x8c] sm:$0xf] }
 0x26d   :  { %v1425_v26 = vmul.f32 %v4641_v28, %v1424_v34  ;;  %vm1462_vm3 = vcmp.eq.f32.partialorder %v1461_v49, 8.507059e+37  ;;  %v3904_v34 = vor.u32 %v4490_v32, %v3901_v57  ;;  %2005 = vmatpush.bf16.msrb.mxu1 %v3896_v8  ;;  %v3843_v49 = vld [vmem:[#allocation9 + $0x80] sm:$0xf]  ;;  %v4473_v8 = vld [vmem:[#allocation9 + $0x64] sm:$0xf] }
 0x26e   :  { %v1440_v15 = vmul.f32 %v4643_v12, %v1439_v43  ;;  %v3875_v43 = vld [vmem:[#allocation9 + $0xc0] sm:$0xf]  ;;  %v3829_v32 = vld [vmem:[#allocation9 + $0x70] sm:$0xf0]  ;;  %v3835_v57 = vld [vmem:[#allocation9 + $0x68] sm:$0xf] }
 0x26f   :  { %v4645_v20 = vpop.eup %4644  ;;  %v1426_v25 = vadd.f32 %v4641_v28, %v1425_v26  ;;  %2031 = vmatpush.bf16.msrb.mxu3 %v3904_v34  ;;  %v3876_v26 = vor.u32 %v4487_v18, %v3875_v43  ;;  %v4476_v34 = vld [vmem:[#allocation9 + $0x74] sm:$0xf0]  ;;  %v3832_v43 = vor.u32 %v4473_v8, %v3829_v32 }
 0x270   :  { %v1453_v39 = vmul.f32 %v4645_v20, %v1421_v17  ;;  %v1441_v19 = vadd.f32 %v4643_v12, %v1440_v15  ;;  %v4647_v29 = vpop.eup %4646  ;;  %vm1458_vm0 = vweird.f32 %v4645_v20  ;;  %v4492_v17 = vld [vmem:[#allocation9 + $0xf4] sm:$0xf0]  ;;  %v3883_v15 = vld [vmem:[#allocation9 + $0xc8] sm:$0xf]  ;;  %v3836_v18 = vor.u32 %v4476_v34, %v3835_v57  ;;  %v3781_v34 = vld [vmem:[#allocation9 + $0x10] sm:$0xf0] }
 0x271   :  { %v1430_v23 = vsel %vm1429_vm12, %v4641_v28, %v1426_v25  ;;  %vm1459_vm2 = vmor %vm1457_vm1, %vm1458_vm0  ;;  %v3899_v28 = vld [vmem:[#allocation9 + $0xe8] sm:$0xf]  ;;  %v3884_v25 = vor.u32 %v4488_v22, %v3883_v15 }
 0x272   :  { %v1454_v30 = vsub.f32 1.0, %v1453_v39  ;;  %v1435_v33 = vsel %vm1432_vm14, %v1434_v7, %v1430_v23  ;;  %v1445_v35 = vsel %vm1444_vm13, %v4643_v12, %v1441_v19  ;;  %v3900_v12 = vor.u32 %v4492_v17, %v3899_v28  ;;  %v4486_v39 = vld [vmem:[#allocation9 + $0xcc] sm:$0xf]  ;;  %v3885_v7 = vld [vmem:[#allocation9 + $0xd8] sm:$0xf0] }
 0x273   :  { %v1450_v31 = vsel %vm1447_vm15, %v1449_v21, %v1445_v35  ;;  %v1469_v27 = vmul.f32 %v4647_v29, %v1435_v33  ;;  %v3888_v19 = vor.u32 %v4486_v39, %v3885_v7  ;;  %v3859_v21 = vld [vmem:[#allocation9 + $0xa0] sm:$0xf]  ;;  %v4483_v23 = vld [vmem:[#allocation9 + $0xac] sm:$0xf0]  ;;  %v4481_v29 = vld [vmem:[#allocation9 + $0xa4] sm:$0xf] }
 0x274   :  { %v1455_v37 = vmul.f32 %v4645_v20, %v1454_v30  ;;  %v1468_v38 = vmul.f32 %v1450_v31, %v5153_v63  ;;  %v3891_v63 = vld [vmem:[#allocation9 + $0xe0] sm:$0xf]  ;;  %2018 = vmatpush.bf16.msrb.mxu2 %v3900_v12  ;;  %v3860_v30 = vor.u32 %v4483_v23, %v3859_v21  ;;  %v3861_v33 = vld [vmem:[#allocation9 + $0xb0] sm:$0xf0]  ;;  %v3867_v35 = vld [vmem:[#allocation9 + $0xa8] sm:$0xf] }
 0x275   :  { %v3892_v2 = vor.u32 %v4491_v36, %v3891_v63  ;;  %2032 = vmatpush.bf16.msrb.mxu3 %v3888_v19  ;;  %v4484_v31 = vld [vmem:[#allocation9 + $0xb4] sm:$0xf0]  ;;  %v3827_v28 = vld [vmem:[#allocation9 + $0x60] sm:$0xf]  ;;  %v4475_v17 = vld [vmem:[#allocation9 + $0x6c] sm:$0xf0] }
 0x276   :  { %v5161_v41 = vadd.f32 %v1469_v27, %v1468_v38  ;;  %v1456_v45 = vadd.f32 %v4645_v20, %v1455_v37  ;;  %v3864_v27 = vor.u32 %v4481_v29, %v3861_v33  ;;  %v3868_v37 = vor.u32 %v4484_v31, %v3867_v35  ;;  %v4482_v38 = vld [vmem:[#allocation9 + $0xac] sm:$0xf]  ;;  %v3811_v39 = vld [vmem:[#allocation9 + $0x40] sm:$0xf]  ;;  %v4471_v7 = vld [vmem:[#allocation9 + $0x4c] sm:$0xf0] }
 0x277   :  { %1992 = vmatpush.bf16.msrb.mxu0 %v3892_v2  ;;  %v3853_v2 = vld [vmem:[#allocation9 + $0x98] sm:$0xf0]  ;;  %v3828_v12 = vor.u32 %v4475_v17, %v3827_v28  ;;  %v4469_v19 = vld [vmem:[#allocation9 + $0x44] sm:$0xf]  ;;  %v3812_v21 = vor.u32 %v4471_v7, %v3811_v39  ;;  %v3813_v23 = vld [vmem:[#allocation9 + $0x50] sm:$0xf0] }
 0x278   :  { %4648 = vtanh.f32 %v5161_v41  ;;  %v1460_v51 = vsel %vm1459_vm2, %v4645_v20, %v1456_v45  ;;  %v3880_v20 = vor.u32 %v4485_v24, %v3877_v13  ;;  %2019 = vmatpush.bf16.msrb.mxu2 %v3884_v25  ;;  %v3869_v45 = vld [vmem:[#allocation9 + $0xb8] sm:$0xf0]  ;;  %v3856_v4 = vor.u32 %v4478_v1, %v3853_v2  ;;  %v4474_v24 = vld [vmem:[#allocation9 + $0x6c] sm:$0xf]  ;;  %v3819_v29 = vld [vmem:[#allocation9 + $0x48] sm:$0xf] }
 0x279   :  { %v1465_v59 = vsel %vm1462_vm3, %v1464_v53, %v1460_v51  ;;  %v3872_v46 = vor.u32 %v4482_v38, %v3869_v45  ;;  %v4479_v51 = vld [vmem:[#allocation9 + $0x8c] sm:$0xf0]  ;;  %v4477_v53 = vld [vmem:[#allocation9 + $0x84] sm:$0xf]  ;;  %v3816_v31 = vor.u32 %v4469_v19, %v3813_v23  ;;  %v3821_v38 = vld [vmem:[#allocation9 + $0x58] sm:$0xf0] }
 0x27a   :  { %2006 = vmatpush.bf16.msrb.mxu1 %v3880_v20  ;;  %v4467_v45 = vld [vmem:[#allocation9 + $0x2c] sm:$0xf0]  ;;  %v4461_v17 = vld [vmem:[#allocation9 + $0x4] sm:$0xf] }
 0x27b   :  { %1993 = vmatpush.bf16.msrb.mxu0 %v3876_v26  ;;  %2033 = vmatpush.bf16.msrb.mxu3 %v3872_v46  ;;  %v3837_v26 = vld [vmem:[#allocation9 + $0x78] sm:$0xf0]  ;;  %v4463_v28 = vld [vmem:[#allocation9 + $0xc] sm:$0xf0] }
 0x27c   :  { %2020 = vmatpush.bf16.msrb.mxu2 %v3868_v37  ;;  %v3840_v22 = vor.u32 %v4474_v24, %v3837_v26  ;;  %v4470_v37 = vld [vmem:[#allocation9 + $0x4c] sm:$0xf]  ;;  %v3784_v24 = vor.u32 %v4461_v17, %v3781_v34 }
 0x27e   :  { %v4649_v54 = vpop.eup %4648  ;;  %2007 = vmatpush.bf16.msrb.mxu1 %v3864_v27 }
 0x27f   :  { %v1472_v60 = vmul.f32 %v4649_v54, %v1465_v59  ;;  %1994 = vmatpush.bf16.msrb.mxu0 %v3860_v30  ;;  %v3844_v54 = vor.u32 %v4479_v51, %v3843_v49  ;;  %v3845_v59 = vld [vmem:[#allocation9 + $0x90] sm:$0xf0]  ;;  %2034 = vmatpush.bf16.msrb.mxu3 %v3856_v4  ;;  %v4472_v30 = vld [vmem:[#allocation9 + $0x54] sm:$0xf0]  ;;  %v4465_v49 = vld [vmem:[#allocation9 + $0x24] sm:$0xf] }
 0x280   :  { %v3848_v63 = vor.u32 %v4477_v53, %v3845_v59  ;;  %v3820_v27 = vor.u32 %v4472_v30, %v3819_v29  ;;  %v3797_v51 = vld [vmem:[#allocation9 + $0x30] sm:$0xf0]  ;;  %v3803_v53 = vld [vmem:[#allocation9 + $0x28] sm:$0xf]  ;;  %v4468_v59 = vld [vmem:[#allocation9 + $0x34] sm:$0xf0] }
 0x281   :  { %1474 = vst [vmem:[#allocation14 + $0x10] sm:$0xff] %v1472_v60  ;;  %v1480_v0 = vpack.c.bf16 %v1472_v60, %v1472_v60  ;;  %v3851_v60 = vld [vmem:[#allocation9 + $0x88] sm:$0xf]  ;;  %v3804_v1 = vor.u32 %v4468_v59, %v3803_v53  ;;  %v3779_v4 = vld [vmem:[#allocation9] sm:$0xf] }
 0x282   :  { %2008 = vmatpush.bf16.msrb.mxu1 %v3848_v63  ;;  %v3780_v57 = vor.u32 %v4463_v28, %v3779_v4 }
 0x283   :  { %1681 = vmatmul.bf16.vlgmr.msra.gmra.mxu0 %v1480_v0  ;;  %1694 = vmatmul.bf16.vlgmr.msra.gmra.mxu1 %v1480_v0 }
 0x284   :  { %1707 = vmatmul.bf16.vlgmr.msra.gmra.mxu2 %v1480_v0  ;;  %1720 = vmatmul.bf16.vlgmr.msra.gmra.mxu3 %v1480_v0  ;;  %v4480_v0 = vld [vmem:[#allocation9 + $0x94] sm:$0xf0] }
 0x285   :  { %v3852_v36 = vor.u32 %v4480_v0, %v3851_v60  ;;  %1995 = vmatpush.bf16.msrb.mxu0 %v3844_v54  ;;  %2035 = vmatpush.bf16.msrb.mxu3 %v3840_v22  ;;  %v3800_v54 = vor.u32 %v4465_v49, %v3797_v51  ;;  %v4466_v60 = vld [vmem:[#allocation9 + $0x2c] sm:$0xf]  ;;  %v3805_v0 = vld [vmem:[#allocation9 + $0x38] sm:$0xf0] }
 0x286   :  { %2009 = vmatpush.bf16.msrb.mxu1 %v3832_v43  ;;  %v3808_v2 = vor.u32 %v4466_v60, %v3805_v0  ;;  %v3787_v43 = vld [vmem:[#allocation9 + $0x8] sm:$0xf] }
 0x287   :  { %2021 = vmatpush.bf16.msrb.mxu2 %v3852_v36 }
 0x289   :  { %1996 = vmatpush.bf16.msrb.mxu0 %v3828_v12 }
 0x28a   :  { %2010 = vmatpush.bf16.msrb.mxu1 %v3816_v31 }
 0x28b   :  { %2022 = vmatpush.bf16.msrb.mxu2 %v3836_v18  ;;  %v4464_v18 = vld [vmem:[#allocation9 + $0x14] sm:$0xf0] }
 0x28c   :  { %v3788_v26 = vor.u32 %v4464_v18, %v3787_v43 }
 0x28d   :  { %1997 = vmatpush.bf16.msrb.mxu0 %v3812_v21 }
 0x28e   :  { %2011 = vmatpush.bf16.msrb.mxu1 %v3800_v54 }
 0x28f   :  { %2023 = vmatpush.bf16.msrb.mxu2 %v3820_v27 }
 0x292   :  { %2012 = vmatpush.bf16.msrb.mxu1 %v3784_v24 }
 0x293   :  { %2024 = vmatpush.bf16.msrb.mxu2 %v3804_v1 }
 0x297   :  { %2025 = vmatpush.bf16.msrb.mxu2 %v3788_v26 }
 0x300   :  { %v1682_v13 = vpop.f32.mrf.mxu0  ;;  %v1695_v15 = vpop.f32.mrf.mxu1 }
 0x301   :  { %v1725_v20 = vadd.f32 %v1682_v13, %v5078_v40  ;;  %v1726_v25 = vadd.f32 %v1695_v15, %v5081_v42  ;;  %v3795_v40 = vld [vmem:[#allocation9 + $0x20] sm:$0xf]  ;;  %v3824_v42 = vor.u32 %v4470_v37, %v3821_v38  ;;  %v4462_v13 = vld [vmem:[#allocation9 + $0xc] sm:$0xf]  ;;  %v3789_v15 = vld [vmem:[#allocation9 + $0x18] sm:$0xf0] }
 0x302   :  { %v3796_v46 = vor.u32 %v4467_v45, %v3795_v40 }
 0x303   :  { %v3774_v33 = vmul.f32 -1.442695, %v1725_v20  ;;  %v3775_v35 = vmul.f32 -1.442695, %v1726_v25  ;;  %2036 = vmatpush.bf16.msrb.mxu3 %v3824_v42  ;;  %v3792_v25 = vor.u32 %v4462_v13, %v3789_v15 }
 0x304   :  { %1998 = vmatpush.bf16.msrb.mxu0 %v3796_v46 }
 0x305   :  { %4650 = vpow2.f32 %v3774_v33 }
 0x306   :  { %4652 = vpow2.f32 %v3775_v35 }
 0x307   :  { %v1708_v63 = vpop.f32.mrf.mxu2  ;;  %v1721_v36 = vpop.f32.mrf.mxu3  ;;  %2037 = vmatpush.bf16.msrb.mxu3 %v3808_v2 }
 0x308   :  { %v1727_v8 = vadd.f32 %v1708_v63, %v5084_v44  ;;  %v1684_v12 = vpop.f32.mrf.mxu0  ;;  %v1697_v32 = vpop.f32.mrf.mxu1  ;;  %1999 = vmatpush.bf16.msrb.mxu0 %v3780_v57  ;;  %v1728_v33 = vadd.f32 %v1721_v36, %v5087_v47 }
 0x30a   :  { %v3776_v22 = vmul.f32 -1.442695, %v1727_v8 }
 0x30b   :  { %v4651_v20 = vpop.eup %4650  ;;  %2038 = vmatpush.bf16.msrb.mxu3 %v3792_v25  ;;  %v4521_v25 = vld [vmem:[#allocation9 + $0xe4] sm:$0xf] }
 0x30c   :  { %v4653_v39 = vpop.eup %4652  ;;  %v1738_v7 = vadd.f32 1.0, %v4651_v20  ;;  %4654 = vpow2.f32 %v3776_v22  ;;  %v4523_v20 = vld [vmem:[#allocation9 + $0xec] sm:$0xf0] }
 0x30d   :  { %v1739_v44 = vadd.f32 1.0, %v4653_v39 }
 0x30e   :  { %4656 = vrcp.f32 %v1738_v7  ;;  %v1752_v40 = vand.u32 2147483648, %v1738_v7  ;;  %v1750_v46 = vand.u32 2147483647, %v1738_v7  ;;  %vm1746_vm6 = vweird.f32 %v1738_v7 }
 0x30f   :  { %4658 = vrcp.f32 %v1739_v44  ;;  %v1710_v19 = vpop.f32.mrf.mxu2  ;;  %v1723_v21 = vpop.f32.mrf.mxu3  ;;  %v1767_v45 = vand.u32 2147483648, %v1739_v44  ;;  %v1765_v51 = vand.u32 2147483647, %v1739_v44  ;;  %vm1761_vm7 = vweird.f32 %v1739_v44 }
 0x310   :  { %v1753_v59 = vor.u32 1.1754944e-38, %v1752_v40  ;;  %vm1751_vm10 = vcmp.eq.f32.partialorder %v1750_v46, 8.507059e+37  ;;  %v4524_v19 = vld [vmem:[#allocation9 + $0xf4] sm:$0xf0]  ;;  %v4014_v40 = vld [vmem:[#allocation9 + $0xc8] sm:$0xf] }
 0x311   :  { %v1768_v0 = vor.u32 1.1754944e-38, %v1767_v45  ;;  %vm1766_vm11 = vcmp.eq.f32.partialorder %v1765_v51, 8.507059e+37  ;;  %v4520_v45 = vld [vmem:[#allocation9 + $0xd4] sm:$0xf0]  ;;  %v4016_v51 = vld [vmem:[#allocation9 + $0xd8] sm:$0xf0] }
 0x312   :  { %v4655_v23 = vpop.eup %4654  ;;  %v4015_v46 = vor.u32 %v4520_v45, %v4014_v40  ;;  %v3942_v40 = vld [vmem:[#allocation9 + $0x40] sm:$0xf]  ;;  %v4503_v45 = vld [vmem:[#allocation9 + $0x4c] sm:$0xf0] }
 0x313   :  { %v1740_v29 = vadd.f32 1.0, %v4655_v23 }
 0x314   :  { %v4657_v30 = vpop.eup %4656 }
 0x315   :  { %v4659_v35 = vpop.eup %4658  ;;  %v1742_v31 = vmul.f32 %v4657_v30, %v1738_v7  ;;  %4660 = vrcp.f32 %v1740_v29  ;;  %vm1747_vm4 = vweird.f32 %v4657_v30  ;;  %v1782_v34 = vand.u32 2147483648, %v1740_v29  ;;  %v4024_v7 = vld [vmem:[#allocation9 + $0xf0] sm:$0xf0] }
 0x316   :  { %v1757_v27 = vmul.f32 %v4659_v35, %v1739_v44  ;;  %4662 = vtanh.f32 %v1728_v33  ;;  %vm1762_vm5 = vweird.f32 %v4659_v35  ;;  %vm1748_vm8 = vmor %vm1746_vm6, %vm1747_vm4  ;;  %vm1776_vm13 = vweird.f32 %v1740_v29  ;;  %v4030_v44 = vld [vmem:[#allocation9 + $0xe8] sm:$0xf] }
 0x317   :  { %v1743_v37 = vsub.f32 1.0, %v1742_v31  ;;  %vm1763_vm9 = vmor %vm1761_vm7, %vm1762_vm5  ;;  %v1780_v43 = vand.u32 2147483647, %v1740_v29  ;;  %v1783_v24 = vor.u32 1.1754944e-38, %v1782_v34  ;;  %v4027_v21 = vor.u32 %v4521_v25, %v4024_v7  ;;  %v4519_v31 = vld [vmem:[#allocation9 + $0xcc] sm:$0xf0] }
 0x318   :  { %v1758_v38 = vsub.f32 1.0, %v1757_v27  ;;  %v4031_v23 = vor.u32 %v4524_v19, %v4030_v44  ;;  %v4517_v27 = vld [vmem:[#allocation9 + $0xc4] sm:$0xf]  ;;  %v4507_v25 = vld [vmem:[#allocation9 + $0x6c] sm:$0xf0] }
 0x319   :  { %v1744_v42 = vmul.f32 %v4657_v30, %v1743_v37  ;;  %vm1781_vm15 = vcmp.eq.f32.partialorder %v1780_v43, 8.507059e+37  ;;  %2324 = vmatpush.bf16.msra.mxu1 %v4027_v21  ;;  %v3976_v43 = vld [vmem:[#allocation9 + $0x90] sm:$0xf0]  ;;  %v3966_v19 = vld [vmem:[#allocation9 + $0x68] sm:$0xf] }
 0x31a   :  { %v1759_v49 = vmul.f32 %v4659_v35, %v1758_v38  ;;  %2337 = vmatpush.bf16.msra.mxu2 %v4031_v23  ;;  %v4008_v38 = vld [vmem:[#allocation9 + $0xd0] sm:$0xf0]  ;;  %v4508_v21 = vld [vmem:[#allocation9 + $0x74] sm:$0xf0] }
 0x31b   :  { %v4661_v53 = vpop.eup %4660  ;;  %v1745_v54 = vadd.f32 %v4657_v30, %v1744_v42  ;;  %v4011_v42 = vor.u32 %v4517_v27, %v4008_v38  ;;  %v3960_v44 = vld [vmem:[#allocation9 + $0x70] sm:$0xf0] }
 0x31c   :  { %v1772_v47 = vmul.f32 %v4661_v53, %v1740_v29  ;;  %v1760_v60 = vadd.f32 %v4659_v35, %v1759_v49  ;;  %v4663_v36 = vpop.eup %4662  ;;  %vm1777_vm12 = vweird.f32 %v4661_v53  ;;  %v4522_v29 = vld [vmem:[#allocation9 + $0xec] sm:$0xf] }
 0x31d   :  { %v1749_v63 = vsel %vm1748_vm8, %v4657_v30, %v1745_v54  ;;  %vm1778_vm14 = vmor %vm1776_vm13, %vm1777_vm12  ;;  %v4032_v30 = vld [vmem:[#allocation9 + $0xf8] sm:$0xf0]  ;;  %v4518_v49 = vld [vmem:[#allocation9 + $0xcc] sm:$0xf]  ;;  %2325 = vmatpush.bf16.msra.mxu1 %v4011_v42 }
 0x31e   :  { %v1773_v1 = vsub.f32 1.0, %v1772_v47  ;;  %v1754_v2 = vsel %vm1751_vm10, %v1753_v59, %v1749_v63  ;;  %v1764_v4 = vsel %vm1763_vm9, %v4659_v35, %v1760_v60  ;;  %v4035_v33 = vor.u32 %v4522_v29, %v4032_v30  ;;  %v4006_v35 = vld [vmem:[#allocation9 + $0xc0] sm:$0xf]  ;;  %2338 = vmatpush.bf16.msra.mxu2 %v4015_v46  ;;  %v4515_v47 = vld [vmem:[#allocation9 + $0xac] sm:$0xf0] }
 0x31f   :  { %v1769_v28 = vsel %vm1766_vm11, %v1768_v0, %v1764_v4  ;;  %v1788_v17 = vmul.f32 %v4663_v36, %v1754_v2  ;;  %v4007_v37 = vor.u32 %v4519_v31, %v4006_v35  ;;  %v3990_v54 = vld [vmem:[#allocation9 + $0xa0] sm:$0xf]  ;;  %v4513_v59 = vld [vmem:[#allocation9 + $0xa4] sm:$0xf]  ;;  %v3992_v0 = vld [vmem:[#allocation9 + $0xb0] sm:$0xf0]  ;;  %v3967_v29 = vor.u32 %v4508_v21, %v3966_v19 }
 0x320   :  { %v1774_v8 = vmul.f32 %v4661_v53, %v1773_v1  ;;  %v1787_v12 = vmul.f32 %v1769_v28, %v5161_v41  ;;  %v4022_v41 = vld [vmem:[#allocation9 + $0xe0] sm:$0xf]  ;;  %2350 = vmatpush.bf16.msra.mxu3 %v4035_v33  ;;  %v3991_v60 = vor.u32 %v4515_v47, %v3990_v54  ;;  %v3998_v63 = vld [vmem:[#allocation9 + $0xa8] sm:$0xf]  ;;  %v4516_v36 = vld [vmem:[#allocation9 + $0xb4] sm:$0xf0]  ;;  %v3995_v1 = vor.u32 %v4513_v59, %v3992_v0 }
 0x321   :  { %v4023_v39 = vor.u32 %v4523_v20, %v4022_v41  ;;  %v3999_v2 = vor.u32 %v4516_v36, %v3998_v63  ;;  %v4514_v4 = vld [vmem:[#allocation9 + $0xac] sm:$0xf]  ;;  %v4000_v28 = vld [vmem:[#allocation9 + $0xb8] sm:$0xf0]  ;;  %v3958_v20 = vld [vmem:[#allocation9 + $0x60] sm:$0xf]  ;;  %v3943_v46 = vor.u32 %v4503_v45, %v3942_v40 }
 0x322   :  { %v5169_v32 = vadd.f32 %v1788_v17, %v1787_v12  ;;  %v1775_v57 = vadd.f32 %v4661_v53, %v1774_v8  ;;  %v4003_v17 = vor.u32 %v4514_v4, %v4000_v28  ;;  %2326 = vmatpush.bf16.msra.mxu1 %v3995_v1  ;;  %v3974_v8 = vld [vmem:[#allocation9 + $0x80] sm:$0xf]  ;;  %v4511_v12 = vld [vmem:[#allocation9 + $0x8c] sm:$0xf0]  ;;  %v3959_v7 = vor.u32 %v4507_v25, %v3958_v20  ;;  %v4506_v30 = vld [vmem:[#allocation9 + $0x6c] sm:$0xf] }
 0x323   :  { %2311 = vmatpush.bf16.msra.mxu0 %v4023_v39  ;;  %2339 = vmatpush.bf16.msra.mxu2 %v3999_v2  ;;  %v3975_v34 = vor.u32 %v4511_v12, %v3974_v8  ;;  %v4505_v39 = vld [vmem:[#allocation9 + $0x64] sm:$0xf]  ;;  %v3968_v33 = vld [vmem:[#allocation9 + $0x78] sm:$0xf0]  ;;  %v4502_v0 = vld [vmem:[#allocation9 + $0x4c] sm:$0xf] }
 0x324   :  { %4664 = vtanh.f32 %v5169_v32  ;;  %v1779_v18 = vsel %vm1778_vm14, %v4661_v53, %v1775_v57  ;;  %v4019_v53 = vor.u32 %v4518_v49, %v4016_v51  ;;  %v4509_v57 = vld [vmem:[#allocation9 + $0x84] sm:$0xf]  ;;  %v3963_v23 = vor.u32 %v4505_v39, %v3960_v44  ;;  %v3944_v49 = vld [vmem:[#allocation9 + $0x50] sm:$0xf0]  ;;  %v3950_v51 = vld [vmem:[#allocation9 + $0x48] sm:$0xf] }
 0x325   :  { %v1784_v13 = vsel %vm1781_vm15, %v1783_v24, %v1779_v18  ;;  %v3982_v18 = vld [vmem:[#allocation9 + $0x88] sm:$0xf]  ;;  %v4512_v24 = vld [vmem:[#allocation9 + $0x94] sm:$0xf0]  ;;  %v3971_v27 = vor.u32 %v4506_v30, %v3968_v33  ;;  %v4501_v42 = vld [vmem:[#allocation9 + $0x44] sm:$0xf] }
 0x326   :  { %2351 = vmatpush.bf16.msra.mxu3 %v4019_v53  ;;  %v4504_v53 = vld [vmem:[#allocation9 + $0x54] sm:$0xf0]  ;;  %v3947_v59 = vor.u32 %v4501_v42, %v3944_v49  ;;  %v3952_v63 = vld [vmem:[#allocation9 + $0x58] sm:$0xf0]  ;;  %v4499_v36 = vld [vmem:[#allocation9 + $0x2c] sm:$0xf0] }
 0x327   :  { %2312 = vmatpush.bf16.msra.mxu0 %v4007_v37  ;;  %v4497_v2 = vld [vmem:[#allocation9 + $0x24] sm:$0xf]  ;;  %v3928_v4 = vld [vmem:[#allocation9 + $0x30] sm:$0xf0]  ;;  %v3934_v28 = vld [vmem:[#allocation9 + $0x28] sm:$0xf] }
 0x328   :  { %v4500_v8 = vld [vmem:[#allocation9 + $0x34] sm:$0xf0]  ;;  %v4498_v12 = vld [vmem:[#allocation9 + $0x2c] sm:$0xf]  ;;  %v3912_v39 = vld [vmem:[#allocation9 + $0x10] sm:$0xf0] }
 0x329   :  { %v4496_v44 = vld [vmem:[#allocation9 + $0x14] sm:$0xf0] }
 0x32a   :  { %v4665_v26 = vpop.eup %4664  ;;  %2352 = vmatpush.bf16.msra.mxu3 %v4003_v17  ;;  %v3931_v17 = vor.u32 %v4497_v2, %v3928_v4 }
 0x32b   :  { %v1791_v15 = vmul.f32 %v4665_v26, %v1784_v13  ;;  %2313 = vmatpush.bf16.msra.mxu0 %v3991_v60  ;;  %v3979_v26 = vor.u32 %v4509_v57, %v3976_v43  ;;  %v3983_v13 = vor.u32 %v4512_v24, %v3982_v18  ;;  %v3951_v60 = vor.u32 %v4504_v53, %v3950_v51  ;;  %v3936_v57 = vld [vmem:[#allocation9 + $0x38] sm:$0xf0] }
 0x32c   :  { %v3935_v18 = vor.u32 %v4500_v8, %v3934_v28  ;;  %v3939_v24 = vor.u32 %v4498_v12, %v3936_v57 }
 0x32d   :  { %1793 = vst [vmem:[#allocation14 + $0x18] sm:$0xff] %v1791_v15  ;;  %v1799_v22 = vpack.c.bf16 %v1791_v15, %v1791_v15  ;;  %v4510_v15 = vld [vmem:[#allocation9 + $0x8c] sm:$0xf]  ;;  %2327 = vmatpush.bf16.msra.mxu1 %v3979_v26  ;;  %2340 = vmatpush.bf16.msra.mxu2 %v3983_v13  ;;  %v3910_v26 = vld [vmem:[#allocation9] sm:$0xf] }
 0x32e   :  { %v4495_v13 = vld [vmem:[#allocation9 + $0xc] sm:$0xf0] }
 0x32f   :  { %2000 = vmatmul.bf16.vlgmr.msrb.gmra.mxu0 %v1799_v22  ;;  %2013 = vmatmul.bf16.vlgmr.msrb.gmra.mxu1 %v1799_v22  ;;  %v3911_v25 = vor.u32 %v4495_v13, %v3910_v26 }
 0x330   :  { %2026 = vmatmul.bf16.vlgmr.msrb.gmra.mxu2 %v1799_v22  ;;  %2039 = vmatmul.bf16.vlgmr.msrb.gmra.mxu3 %v1799_v22  ;;  %v3984_v22 = vld [vmem:[#allocation9 + $0x98] sm:$0xf0] }
 0x331   :  { %2314 = vmatpush.bf16.msra.mxu0 %v3975_v34  ;;  %v3987_v41 = vor.u32 %v4510_v15, %v3984_v22  ;;  %2328 = vmatpush.bf16.msra.mxu1 %v3963_v23  ;;  %v4493_v15 = vld [vmem:[#allocation9 + $0x4] sm:$0xf]  ;;  %v4494_v23 = vld [vmem:[#allocation9 + $0xc] sm:$0xf] }
 0x332   :  { %2341 = vmatpush.bf16.msra.mxu2 %v3967_v29  ;;  %v3915_v19 = vor.u32 %v4493_v15, %v3912_v39  ;;  %v3920_v29 = vld [vmem:[#allocation9 + $0x18] sm:$0xf0] }
 0x333   :  { %2353 = vmatpush.bf16.msra.mxu3 %v3987_v41 }
 0x335   :  { %2315 = vmatpush.bf16.msra.mxu0 %v3959_v7  ;;  %2329 = vmatpush.bf16.msra.mxu1 %v3947_v59  ;;  %v3918_v7 = vld [vmem:[#allocation9 + $0x8] sm:$0xf] }
 0x336   :  { %2342 = vmatpush.bf16.msra.mxu2 %v3951_v60  ;;  %v3919_v21 = vor.u32 %v4496_v44, %v3918_v7 }
 0x337   :  { %2354 = vmatpush.bf16.msra.mxu3 %v3971_v27 }
 0x339   :  { %2316 = vmatpush.bf16.msra.mxu0 %v3943_v46  ;;  %2330 = vmatpush.bf16.msra.mxu1 %v3931_v17 }
 0x33a   :  { %2343 = vmatpush.bf16.msra.mxu2 %v3935_v18 }
 0x33d   :  { %2331 = vmatpush.bf16.msra.mxu1 %v3915_v19 }
 0x33e   :  { %2344 = vmatpush.bf16.msra.mxu2 %v3919_v21  ;;  %v4555_v21 = vld [vmem:[#allocation9 + $0xec] sm:$0xf0] }
 0x3ac   :  { %v2001_v35 = vpop.f32.mrf.mxu0  ;;  %v2014_v31 = vpop.f32.mrf.mxu1 }
 0x3ad   :  { %v2044_v37 = vadd.f32 %v2001_v35, %v5090_v48  ;;  %v2045_v38 = vadd.f32 %v2014_v31, %v5093_v50  ;;  %v3926_v48 = vld [vmem:[#allocation9 + $0x20] sm:$0xf]  ;;  %v3955_v50 = vor.u32 %v4502_v0, %v3952_v63  ;;  %v3923_v35 = vor.u32 %v4494_v23, %v3920_v29  ;;  %v4553_v23 = vld [vmem:[#allocation9 + $0xe4] sm:$0xf] }
 0x3ae   :  { %v3927_v1 = vor.u32 %v4499_v36, %v3926_v48 }
 0x3af   :  { %v3905_v54 = vmul.f32 -1.442695, %v2044_v37  ;;  %v3906_v47 = vmul.f32 -1.442695, %v2045_v38  ;;  %2355 = vmatpush.bf16.msra.mxu3 %v3955_v50 }
 0x3b0   :  { %2317 = vmatpush.bf16.msra.mxu0 %v3927_v1 }
 0x3b1   :  { %4666 = vpow2.f32 %v3905_v54 }
 0x3b2   :  { %4668 = vpow2.f32 %v3906_v47 }
 0x3b3   :  { %v2027_v34 = vpop.f32.mrf.mxu2  ;;  %v2040_v43 = vpop.f32.mrf.mxu3  ;;  %2356 = vmatpush.bf16.msra.mxu3 %v3939_v24 }
 0x3b4   :  { %v2046_v22 = vadd.f32 %v2027_v34, %v5096_v52  ;;  %v2003_v41 = vpop.f32.mrf.mxu0  ;;  %v2016_v20 = vpop.f32.mrf.mxu1  ;;  %2318 = vmatpush.bf16.msra.mxu0 %v3911_v25  ;;  %v2047_v46 = vadd.f32 %v2040_v43, %v5099_v55 }
 0x3b6   :  { %v3907_v30 = vmul.f32 -1.442695, %v2046_v22 }
 0x3b7   :  { %v4667_v33 = vpop.eup %4666  ;;  %2357 = vmatpush.bf16.msra.mxu3 %v3923_v35  ;;  %v4556_v35 = vld [vmem:[#allocation9 + $0xf4] sm:$0xf0] }
 0x3b8   :  { %v4669_v31 = vpop.eup %4668  ;;  %v2057_v27 = vadd.f32 1.0, %v4667_v33  ;;  %4670 = vpow2.f32 %v3907_v30  ;;  %v4155_v30 = vld [vmem:[#allocation9 + $0xf0] sm:$0xf0]  ;;  %v4161_v33 = vld [vmem:[#allocation9 + $0xe8] sm:$0xf] }
 0x3b9   :  { %v2058_v52 = vadd.f32 1.0, %v4669_v31  ;;  %v4158_v31 = vor.u32 %v4553_v23, %v4155_v30  ;;  %v4097_v23 = vld [vmem:[#allocation9 + $0x68] sm:$0xf] }
 0x3ba   :  { %4672 = vrcp.f32 %v2057_v27  ;;  %v2071_v59 = vand.u32 2147483648, %v2057_v27  ;;  %v2069_v63 = vand.u32 2147483647, %v2057_v27  ;;  %vm2065_vm2 = vweird.f32 %v2057_v27 }
 0x3bb   :  { %4674 = vrcp.f32 %v2058_v52  ;;  %v2029_v37 = vpop.f32.mrf.mxu2  ;;  %v2042_v38 = vpop.f32.mrf.mxu3  ;;  %v2086_v60 = vand.u32 2147483648, %v2058_v52  ;;  %v2084_v36 = vand.u32 2147483647, %v2058_v52  ;;  %vm2080_vm3 = vweird.f32 %v2058_v52  ;;  %2643 = vmatpush.bf16.msrb.mxu1 %v4158_v31  ;;  %v4099_v31 = vld [vmem:[#allocation9 + $0x78] sm:$0xf0] }
 0x3bc   :  { %v2072_v2 = vor.u32 1.1754944e-38, %v2071_v59  ;;  %vm2070_vm6 = vcmp.eq.f32.partialorder %v2069_v63, 8.507059e+37  ;;  %v4163_v37 = vld [vmem:[#allocation9 + $0xf8] sm:$0xf0]  ;;  %v4550_v59 = vld [vmem:[#allocation9 + $0xcc] sm:$0xf] }
 0x3bd   :  { %v2087_v28 = vor.u32 1.1754944e-38, %v2086_v60  ;;  %vm2085_vm7 = vcmp.eq.f32.partialorder %v2084_v36, 8.507059e+37  ;;  %v4147_v60 = vld [vmem:[#allocation9 + $0xd8] sm:$0xf0]  ;;  %v4121_v63 = vld [vmem:[#allocation9 + $0xa0] sm:$0xf] }
 0x3be   :  { %v4671_v40 = vpop.eup %4670  ;;  %v4545_v36 = vld [vmem:[#allocation9 + $0xa4] sm:$0xf] }
 0x3bf   :  { %v2059_v45 = vadd.f32 1.0, %v4671_v40  ;;  %v4137_v40 = vld [vmem:[#allocation9 + $0xc0] sm:$0xf] }
 0x3c0   :  { %v4673_v42 = vpop.eup %4672 }
 0x3c1   :  { %v4675_v49 = vpop.eup %4674  ;;  %v2061_v51 = vmul.f32 %v4673_v42, %v2057_v27  ;;  %4676 = vrcp.f32 %v2059_v45  ;;  %vm2066_vm0 = vweird.f32 %v4673_v42  ;;  %v2101_v22 = vand.u32 2147483648, %v2059_v45 }
 0x3c2   :  { %v2076_v53 = vmul.f32 %v4675_v49, %v2058_v52  ;;  %4678 = vtanh.f32 %v2047_v46  ;;  %vm2081_vm1 = vweird.f32 %v4675_v49  ;;  %vm2067_vm4 = vmor %vm2065_vm2, %vm2066_vm0  ;;  %vm2095_vm9 = vweird.f32 %v2059_v45  ;;  %v4554_v52 = vld [vmem:[#allocation9 + $0xec] sm:$0xf] }
 0x3c3   :  { %v2062_v54 = vsub.f32 1.0, %v2061_v51  ;;  %vm2082_vm5 = vmor %vm2080_vm3, %vm2081_vm1  ;;  %v2099_v41 = vand.u32 2147483647, %v2059_v45  ;;  %v2102_v25 = vor.u32 1.1754944e-38, %v2101_v22  ;;  %v4162_v27 = vor.u32 %v4556_v35, %v4161_v33  ;;  %v4145_v51 = vld [vmem:[#allocation9 + $0xc8] sm:$0xf] }
 0x3c4   :  { %v2077_v47 = vsub.f32 1.0, %v2076_v53  ;;  %v4166_v38 = vor.u32 %v4554_v52, %v4163_v37  ;;  %v4552_v53 = vld [vmem:[#allocation9 + $0xd4] sm:$0xf0]  ;;  %v4538_v35 = vld [vmem:[#allocation9 + $0x6c] sm:$0xf] }
 0x3c5   :  { %v2063_v0 = vmul.f32 %v4673_v42, %v2062_v54  ;;  %vm2100_vm11 = vcmp.eq.f32.partialorder %v2099_v41, 8.507059e+37  ;;  %2656 = vmatpush.bf16.msrb.mxu2 %v4162_v27  ;;  %v4102_v37 = vor.u32 %v4538_v35, %v4099_v31 }
 0x3c6   :  { %v2078_v48 = vmul.f32 %v4675_v49, %v2077_v47  ;;  %2669 = vmatpush.bf16.msrb.mxu3 %v4166_v38  ;;  %v4146_v47 = vor.u32 %v4552_v53, %v4145_v51  ;;  %v4075_v51 = vld [vmem:[#allocation9 + $0x50] sm:$0xf0]  ;;  %v4081_v53 = vld [vmem:[#allocation9 + $0x48] sm:$0xf] }
 0x3c7   :  { %v4677_v50 = vpop.eup %4676  ;;  %v2064_v1 = vadd.f32 %v4673_v42, %v2063_v0  ;;  %v4150_v0 = vor.u32 %v4550_v59, %v4147_v60 }
 0x3c8   :  { %v2091_v55 = vmul.f32 %v4677_v50, %v2059_v45  ;;  %v2079_v4 = vadd.f32 %v4675_v49, %v2078_v48  ;;  %v4679_v8 = vpop.eup %4678  ;;  %vm2096_vm8 = vweird.f32 %v4677_v50  ;;  %v4551_v45 = vld [vmem:[#allocation9 + $0xcc] sm:$0xf0] }
 0x3c9   :  { %v2068_v17 = vsel %vm2067_vm4, %v4673_v42, %v2064_v1  ;;  %vm2097_vm10 = vmor %vm2095_vm9, %vm2096_vm8  ;;  %v4549_v42 = vld [vmem:[#allocation9 + $0xc4] sm:$0xf]  ;;  %v4138_v46 = vor.u32 %v4551_v45, %v4137_v40  ;;  %2657 = vmatpush.bf16.msrb.mxu2 %v4146_v47  ;;  %v4547_v48 = vld [vmem:[#allocation9 + $0xac] sm:$0xf0] }
 0x3ca   :  { %v2092_v12 = vsub.f32 1.0, %v2091_v55  ;;  %v2073_v57 = vsel %vm2070_vm6, %v2072_v2, %v2068_v17  ;;  %v2083_v34 = vsel %vm2082_vm5, %v4675_v49, %v2079_v4  ;;  %v4139_v49 = vld [vmem:[#allocation9 + $0xd0] sm:$0xf0]  ;;  %2670 = vmatpush.bf16.msrb.mxu3 %v4150_v0  ;;  %v4129_v55 = vld [vmem:[#allocation9 + $0xa8] sm:$0xf] }
 0x3cb   :  { %v2088_v43 = vsel %vm2085_vm7, %v2087_v28, %v2083_v34  ;;  %v2107_v18 = vmul.f32 %v4679_v8, %v2073_v57  ;;  %v4142_v54 = vor.u32 %v4549_v42, %v4139_v49  ;;  %v4123_v1 = vld [vmem:[#allocation9 + $0xb0] sm:$0xf0]  ;;  %v4548_v2 = vld [vmem:[#allocation9 + $0xb4] sm:$0xf0]  ;;  %v4546_v17 = vld [vmem:[#allocation9 + $0xac] sm:$0xf] }
 0x3cc   :  { %v2093_v24 = vmul.f32 %v4677_v50, %v2092_v12  ;;  %v2106_v26 = vmul.f32 %v2088_v43, %v5169_v32  ;;  %v4153_v32 = vld [vmem:[#allocation9 + $0xe0] sm:$0xf]  ;;  %v4126_v4 = vor.u32 %v4545_v36, %v4123_v1  ;;  %v4130_v28 = vor.u32 %v4548_v2, %v4129_v55  ;;  %v4131_v8 = vld [vmem:[#allocation9 + $0xb8] sm:$0xf0]  ;;  %v4543_v34 = vld [vmem:[#allocation9 + $0x8c] sm:$0xf0] }
 0x3cd   :  { %v4154_v29 = vor.u32 %v4555_v21, %v4153_v32  ;;  %2644 = vmatpush.bf16.msrb.mxu1 %v4142_v54  ;;  %v4134_v12 = vor.u32 %v4546_v17, %v4131_v8  ;;  %v4105_v57 = vld [vmem:[#allocation9 + $0x80] sm:$0xf]  ;;  %v4541_v43 = vld [vmem:[#allocation9 + $0x84] sm:$0xf]  ;;  %v4091_v21 = vld [vmem:[#allocation9 + $0x70] sm:$0xf0] }
 0x3ce   :  { %v5177_v13 = vadd.f32 %v2107_v18, %v2106_v26  ;;  %v2094_v15 = vadd.f32 %v4677_v50, %v2093_v24  ;;  %2658 = vmatpush.bf16.msrb.mxu2 %v4130_v28  ;;  %v4106_v18 = vor.u32 %v4543_v34, %v4105_v57  ;;  %v4107_v24 = vld [vmem:[#allocation9 + $0x90] sm:$0xf0]  ;;  %v4113_v26 = vld [vmem:[#allocation9 + $0x88] sm:$0xf]  ;;  %v4073_v45 = vld [vmem:[#allocation9 + $0x40] sm:$0xf] }
 0x3cf   :  { %2630 = vmatpush.bf16.msrb.mxu0 %v4154_v29  ;;  %2671 = vmatpush.bf16.msrb.mxu3 %v4134_v12  ;;  %v4110_v22 = vor.u32 %v4541_v43, %v4107_v24  ;;  %v4540_v29 = vld [vmem:[#allocation9 + $0x74] sm:$0xf0]  ;;  %v4535_v42 = vld [vmem:[#allocation9 + $0x4c] sm:$0xf0]  ;;  %v4529_v1 = vld [vmem:[#allocation9 + $0x24] sm:$0xf] }
 0x3d0   :  { %4680 = vtanh.f32 %v5177_v13  ;;  %v2098_v20 = vsel %vm2097_vm10, %v4677_v50, %v2094_v15  ;;  %v4122_v50 = vor.u32 %v4547_v48, %v4121_v63  ;;  %v4544_v15 = vld [vmem:[#allocation9 + $0x94] sm:$0xf0]  ;;  %v4098_v33 = vor.u32 %v4540_v29, %v4097_v23  ;;  %v4534_v63 = vld [vmem:[#allocation9 + $0x4c] sm:$0xf]  ;;  %v4083_v48 = vld [vmem:[#allocation9 + $0x58] sm:$0xf0] }
 0x3d1   :  { %v2103_v7 = vsel %vm2100_vm11, %v2102_v25, %v2098_v20  ;;  %2645 = vmatpush.bf16.msrb.mxu1 %v4126_v4  ;;  %v4114_v41 = vor.u32 %v4544_v15, %v4113_v26  ;;  %v4542_v20 = vld [vmem:[#allocation9 + $0x8c] sm:$0xf]  ;;  %v4115_v25 = vld [vmem:[#allocation9 + $0x98] sm:$0xf0]  ;;  %v4074_v49 = vor.u32 %v4535_v42, %v4073_v45  ;;  %v4536_v54 = vld [vmem:[#allocation9 + $0x54] sm:$0xf0] }
 0x3d2   :  { %v4082_v0 = vor.u32 %v4536_v54, %v4081_v53  ;;  %v4531_v36 = vld [vmem:[#allocation9 + $0x2c] sm:$0xf0]  ;;  %v4059_v55 = vld [vmem:[#allocation9 + $0x30] sm:$0xf0]  ;;  %v4065_v2 = vld [vmem:[#allocation9 + $0x28] sm:$0xf] }
 0x3d3   :  { %2631 = vmatpush.bf16.msrb.mxu0 %v4138_v46  ;;  %2659 = vmatpush.bf16.msrb.mxu2 %v4114_v41  ;;  %v4533_v46 = vld [vmem:[#allocation9 + $0x44] sm:$0xf]  ;;  %v4062_v4 = vor.u32 %v4529_v1, %v4059_v55  ;;  %v4532_v28 = vld [vmem:[#allocation9 + $0x34] sm:$0xf0]  ;;  %v4530_v17 = vld [vmem:[#allocation9 + $0x2c] sm:$0xf] }
 0x3d4   :  { %v4078_v60 = vor.u32 %v4533_v46, %v4075_v51  ;;  %v4067_v8 = vld [vmem:[#allocation9 + $0x38] sm:$0xf0]  ;;  %v4066_v34 = vor.u32 %v4532_v28, %v4065_v2  ;;  %v4527_v24 = vld [vmem:[#allocation9 + $0xc] sm:$0xf0]  ;;  %v4525_v26 = vld [vmem:[#allocation9 + $0x4] sm:$0xf] }
 0x3d5   :  { %2646 = vmatpush.bf16.msrb.mxu1 %v4110_v22  ;;  %v4070_v43 = vor.u32 %v4530_v17, %v4067_v8 }
 0x3d6   :  { %v4681_v39 = vpop.eup %4680 }
 0x3d7   :  { %v2110_v44 = vmul.f32 %v4681_v39, %v2103_v7  ;;  %2632 = vmatpush.bf16.msrb.mxu0 %v4122_v50  ;;  %v4118_v39 = vor.u32 %v4542_v20, %v4115_v25  ;;  %v4089_v7 = vld [vmem:[#allocation9 + $0x60] sm:$0xf]  ;;  %2660 = vmatpush.bf16.msrb.mxu2 %v4098_v33  ;;  %v4043_v25 = vld [vmem:[#allocation9 + $0x10] sm:$0xf0] }
 0x3d9   :  { %2112 = vst [vmem:[#allocation14 + $0x20] sm:$0xff] %v2110_v44  ;;  %v2118_v19 = vpack.c.bf16 %v2110_v44, %v2110_v44  ;;  %v4539_v44 = vld [vmem:[#allocation9 + $0x6c] sm:$0xf0]  ;;  %2672 = vmatpush.bf16.msrb.mxu3 %v4118_v39  ;;  %v4049_v39 = vld [vmem:[#allocation9 + $0x8] sm:$0xf] }
 0x3da   :  { %v4090_v32 = vor.u32 %v4539_v44, %v4089_v7  ;;  %v4528_v7 = vld [vmem:[#allocation9 + $0x14] sm:$0xf0]  ;;  %v4046_v44 = vor.u32 %v4525_v26, %v4043_v25  ;;  %v4587_v25 = vld [vmem:[#allocation9 + $0xec] sm:$0xf0] }
 0x3db   :  { %2319 = vmatmul.bf16.vlgmr.msra.gmra.mxu0 %v2118_v19  ;;  %2332 = vmatmul.bf16.vlgmr.msra.gmra.mxu1 %v2118_v19 }
 0x3dc   :  { %2345 = vmatmul.bf16.vlgmr.msra.gmra.mxu2 %v2118_v19  ;;  %2358 = vmatmul.bf16.vlgmr.msra.gmra.mxu3 %v2118_v19  ;;  %v4537_v19 = vld [vmem:[#allocation9 + $0x64] sm:$0xf] }
 0x3dd   :  { %2633 = vmatpush.bf16.msrb.mxu0 %v4106_v18  ;;  %v4094_v30 = vor.u32 %v4537_v19, %v4091_v21  ;;  %2673 = vmatpush.bf16.msrb.mxu3 %v4102_v37  ;;  %v4041_v18 = vld [vmem:[#allocation9] sm:$0xf]  ;;  %v4050_v19 = vor.u32 %v4528_v7, %v4049_v39  ;;  %v4051_v21 = vld [vmem:[#allocation9 + $0x18] sm:$0xf0]  ;;  %v4585_v39 = vld [vmem:[#allocation9 + $0xe4] sm:$0xf] }
 0x3de   :  { %2661 = vmatpush.bf16.msrb.mxu2 %v4082_v0  ;;  %v4042_v20 = vor.u32 %v4527_v24, %v4041_v18 }
 0x3df   :  { %2647 = vmatpush.bf16.msrb.mxu1 %v4094_v30 }
 0x3e1   :  { %2634 = vmatpush.bf16.msrb.mxu0 %v4090_v32  ;;  %v4526_v32 = vld [vmem:[#allocation9 + $0xc] sm:$0xf] }
 0x3e2   :  { %2662 = vmatpush.bf16.msrb.mxu2 %v4066_v34  ;;  %v4054_v30 = vor.u32 %v4526_v32, %v4051_v21  ;;  %v4588_v32 = vld [vmem:[#allocation9 + $0xf4] sm:$0xf0] }
 0x3e3   :  { %2648 = vmatpush.bf16.msrb.mxu1 %v4078_v60 }
 0x3e5   :  { %2635 = vmatpush.bf16.msrb.mxu0 %v4074_v49 }
 0x3e6   :  { %2663 = vmatpush.bf16.msrb.mxu2 %v4050_v19  ;;  %v4292_v19 = vld [vmem:[#allocation9 + $0xe8] sm:$0xf] }
 0x3e7   :  { %2649 = vmatpush.bf16.msrb.mxu1 %v4062_v4 }
 0x3eb   :  { %2650 = vmatpush.bf16.msrb.mxu1 %v4046_v44  ;;  %v4286_v44 = vld [vmem:[#allocation9 + $0xf0] sm:$0xf0] }
 0x3ec   :  { %v4289_v21 = vor.u32 %v4585_v39, %v4286_v44  ;;  %v4570_v39 = vld [vmem:[#allocation9 + $0x6c] sm:$0xf] }
 0x3ef   :  { %2962 = vmatpush.bf16.msra.mxu1 %v4289_v21 }
 0x458   :  { %v2320_v27 = vpop.f32.mrf.mxu0  ;;  %v2333_v52 = vpop.f32.mrf.mxu1 }
 0x459   :  { %v2363_v38 = vadd.f32 %v2320_v27, %v5102_v56  ;;  %v2364_v40 = vadd.f32 %v2333_v52, %v5105_v58  ;;  %v4057_v56 = vld [vmem:[#allocation9 + $0x20] sm:$0xf]  ;;  %v4086_v58 = vor.u32 %v4534_v63, %v4083_v48 }
 0x45a   :  { %v4058_v50 = vor.u32 %v4531_v36, %v4057_v56 }
 0x45b   :  { %v4036_v47 = vmul.f32 -1.442695, %v2363_v38  ;;  %v4037_v59 = vmul.f32 -1.442695, %v2364_v40  ;;  %2674 = vmatpush.bf16.msrb.mxu3 %v4086_v58 }
 0x45c   :  { %2636 = vmatpush.bf16.msrb.mxu0 %v4058_v50 }
 0x45d   :  { %4682 = vpow2.f32 %v4036_v47 }
 0x45e   :  { %4684 = vpow2.f32 %v4037_v59 }
 0x45f   :  { %v2346_v12 = vpop.f32.mrf.mxu2  ;;  %v2359_v57 = vpop.f32.mrf.mxu3  ;;  %2675 = vmatpush.bf16.msrb.mxu3 %v4070_v43 }
 0x460   :  { %v2365_v15 = vadd.f32 %v2346_v12, %v5108_v3  ;;  %v2322_v22 = vpop.f32.mrf.mxu0  ;;  %v2335_v41 = vpop.f32.mrf.mxu1  ;;  %2637 = vmatpush.bf16.msrb.mxu0 %v4042_v20  ;;  %v2366_v40 = vadd.f32 %v2359_v57, %v5111_v10 }
 0x462   :  { %v4038_v23 = vmul.f32 -1.442695, %v2365_v15 }
 0x463   :  { %v4683_v29 = vpop.eup %4682  ;;  %2676 = vmatpush.bf16.msrb.mxu3 %v4054_v30  ;;  %v4294_v30 = vld [vmem:[#allocation9 + $0xf8] sm:$0xf0] }
 0x464   :  { %v4685_v33 = vpop.eup %4684  ;;  %v2376_v35 = vadd.f32 1.0, %v4683_v29  ;;  %4686 = vpow2.f32 %v4038_v23  ;;  %v4293_v23 = vor.u32 %v4588_v32, %v4292_v19  ;;  %v4586_v29 = vld [vmem:[#allocation9 + $0xec] sm:$0xf] }
 0x465   :  { %v2377_v3 = vadd.f32 1.0, %v4685_v33  ;;  %v4297_v33 = vor.u32 %v4586_v29, %v4294_v30  ;;  %v4204_v29 = vld [vmem:[#allocation9 + $0x40] sm:$0xf]  ;;  %v4567_v30 = vld [vmem:[#allocation9 + $0x4c] sm:$0xf0] }
 0x466   :  { %4688 = vrcp.f32 %v2376_v35  ;;  %v2390_v53 = vand.u32 2147483648, %v2376_v35  ;;  %v2388_v59 = vand.u32 2147483647, %v2376_v35  ;;  %vm2384_vm14 = vweird.f32 %v2376_v35  ;;  %2975 = vmatpush.bf16.msra.mxu2 %v4293_v23 }
 0x467   :  { %4690 = vrcp.f32 %v2377_v3  ;;  %v2348_v31 = vpop.f32.mrf.mxu2  ;;  %v2361_v27 = vpop.f32.mrf.mxu3  ;;  %v2405_v54 = vand.u32 2147483648, %v2377_v3  ;;  %v2403_v0 = vand.u32 2147483647, %v2377_v3  ;;  %vm2399_vm15 = vweird.f32 %v2377_v3  ;;  %2988 = vmatpush.bf16.msra.mxu3 %v4297_v33  ;;  %v4565_v33 = vld [vmem:[#allocation9 + $0x44] sm:$0xf] }
 0x468   :  { %v2391_v56 = vor.u32 1.1754944e-38, %v2390_v53  ;;  %vm2389_vm2 = vcmp.eq.f32.partialorder %v2388_v59, 8.507059e+37  ;;  %v4581_v31 = vld [vmem:[#allocation9 + $0xc4] sm:$0xf]  ;;  %v4579_v53 = vld [vmem:[#allocation9 + $0xac] sm:$0xf0] }
 0x469   :  { %v2406_v58 = vor.u32 1.1754944e-38, %v2405_v54  ;;  %vm2404_vm3 = vcmp.eq.f32.partialorder %v2403_v0, 8.507059e+37  ;;  %v4577_v54 = vld [vmem:[#allocation9 + $0xa4] sm:$0xf]  ;;  %v4254_v59 = vld [vmem:[#allocation9 + $0xb0] sm:$0xf0] }
 0x46a   :  { %v4687_v52 = vpop.eup %4686  ;;  %v4580_v0 = vld [vmem:[#allocation9 + $0xb4] sm:$0xf0] }
 0x46b   :  { %v2378_v37 = vadd.f32 1.0, %v4687_v52  ;;  %v4270_v52 = vld [vmem:[#allocation9 + $0xd0] sm:$0xf0] }
 0x46c   :  { %v4689_v38 = vpop.eup %4688 }
 0x46d   :  { %v4691_v45 = vpop.eup %4690  ;;  %v2380_v42 = vmul.f32 %v4689_v38, %v2376_v35  ;;  %4692 = vrcp.f32 %v2378_v37  ;;  %vm2385_vm12 = vweird.f32 %v4689_v38  ;;  %v2420_v43 = vand.u32 2147483648, %v2378_v37  ;;  %v4268_v35 = vld [vmem:[#allocation9 + $0xc0] sm:$0xf] }
 0x46e   :  { %v2395_v46 = vmul.f32 %v4691_v45, %v2377_v3  ;;  %4694 = vtanh.f32 %v2366_v40  ;;  %vm2400_vm13 = vweird.f32 %v4691_v45  ;;  %vm2386_vm0 = vmor %vm2384_vm14, %vm2385_vm12  ;;  %vm2414_vm5 = vweird.f32 %v2378_v37  ;;  %v4583_v3 = vld [vmem:[#allocation9 + $0xcc] sm:$0xf0] }
 0x46f   :  { %v2381_v49 = vsub.f32 1.0, %v2380_v42  ;;  %vm2401_vm1 = vmor %vm2399_vm15, %vm2400_vm13  ;;  %v2418_v18 = vand.u32 2147483647, %v2378_v37  ;;  %v2421_v26 = vor.u32 1.1754944e-38, %v2420_v43  ;;  %v4269_v27 = vor.u32 %v4583_v3, %v4268_v35  ;;  %v4582_v42 = vld [vmem:[#allocation9 + $0xcc] sm:$0xf] }
 0x470   :  { %v2396_v51 = vsub.f32 1.0, %v2395_v46  ;;  %v4273_v40 = vor.u32 %v4581_v31, %v4270_v52  ;;  %v4278_v46 = vld [vmem:[#allocation9 + $0xd8] sm:$0xf0]  ;;  %v4205_v35 = vor.u32 %v4567_v30, %v4204_v29  ;;  %v4206_v3 = vld [vmem:[#allocation9 + $0x50] sm:$0xf0] }
 0x471   :  { %v2382_v47 = vmul.f32 %v4689_v38, %v2381_v49  ;;  %vm2419_vm7 = vcmp.eq.f32.partialorder %v2418_v18, 8.507059e+37  ;;  %v4281_v49 = vor.u32 %v4582_v42, %v4278_v46  ;;  %v4220_v18 = vld [vmem:[#allocation9 + $0x60] sm:$0xf]  ;;  %v4212_v31 = vld [vmem:[#allocation9 + $0x48] sm:$0xf] }
 0x472   :  { %v2397_v60 = vmul.f32 %v4691_v45, %v2396_v51  ;;  %2963 = vmatpush.bf16.msra.mxu1 %v4273_v40  ;;  %v4252_v51 = vld [vmem:[#allocation9 + $0xa0] sm:$0xf]  ;;  %v4214_v42 = vld [vmem:[#allocation9 + $0x58] sm:$0xf0]  ;;  %v4563_v46 = vld [vmem:[#allocation9 + $0x2c] sm:$0xf0] }
 0x473   :  { %v4693_v63 = vpop.eup %4692  ;;  %v2383_v48 = vadd.f32 %v4689_v38, %v2382_v47  ;;  %2989 = vmatpush.bf16.msra.mxu3 %v4281_v49  ;;  %v4253_v47 = vor.u32 %v4579_v53, %v4252_v51  ;;  %v4561_v51 = vld [vmem:[#allocation9 + $0x24] sm:$0xf]  ;;  %v4190_v53 = vld [vmem:[#allocation9 + $0x30] sm:$0xf0] }
 0x474   :  { %v2410_v10 = vmul.f32 %v4693_v63, %v2378_v37  ;;  %v2398_v36 = vadd.f32 %v4691_v45, %v2397_v60  ;;  %v4695_v1 = vpop.eup %4694  ;;  %vm2415_vm4 = vweird.f32 %v4693_v63  ;;  %v4276_v37 = vld [vmem:[#allocation9 + $0xc8] sm:$0xf] }
 0x475   :  { %v2387_v50 = vsel %vm2386_vm0, %v4689_v38, %v2383_v48  ;;  %vm2416_vm6 = vmor %vm2414_vm5, %vm2415_vm4  ;;  %v4584_v38 = vld [vmem:[#allocation9 + $0xd4] sm:$0xf0]  ;;  %v4260_v60 = vld [vmem:[#allocation9 + $0xa8] sm:$0xf] }
 0x476   :  { %v2411_v55 = vsub.f32 1.0, %v2410_v10  ;;  %v2392_v2 = vsel %vm2389_vm2, %v2391_v56, %v2387_v50  ;;  %v2402_v4 = vsel %vm2401_vm1, %v4691_v45, %v2398_v36  ;;  %v4277_v45 = vor.u32 %v4584_v38, %v4276_v37  ;;  %v4578_v10 = vld [vmem:[#allocation9 + $0xac] sm:$0xf]  ;;  %v4262_v56 = vld [vmem:[#allocation9 + $0xb8] sm:$0xf0] }
 0x477   :  { %v2407_v28 = vsel %vm2404_vm3, %v2406_v58, %v2402_v4  ;;  %v2426_v17 = vmul.f32 %v4695_v1, %v2392_v2  ;;  %v4261_v48 = vor.u32 %v4580_v0, %v4260_v60  ;;  %v4265_v36 = vor.u32 %v4578_v10, %v4262_v56  ;;  %v4236_v58 = vld [vmem:[#allocation9 + $0x80] sm:$0xf]  ;;  %v4575_v50 = vld [vmem:[#allocation9 + $0x8c] sm:$0xf0]  ;;  %v4573_v1 = vld [vmem:[#allocation9 + $0x84] sm:$0xf] }
 0x478   :  { %v2412_v8 = vmul.f32 %v4693_v63, %v2411_v55  ;;  %v2425_v12 = vmul.f32 %v2407_v28, %v5177_v13  ;;  %v4284_v13 = vld [vmem:[#allocation9 + $0xe0] sm:$0xf]  ;;  %2976 = vmatpush.bf16.msra.mxu2 %v4277_v45  ;;  %v4237_v55 = vor.u32 %v4575_v50, %v4236_v58  ;;  %v4238_v2 = vld [vmem:[#allocation9 + $0x90] sm:$0xf0]  ;;  %v4244_v4 = vld [vmem:[#allocation9 + $0x88] sm:$0xf]  ;;  %v4209_v38 = vor.u32 %v4565_v33, %v4206_v3 }
 0x479   :  { %v4285_v7 = vor.u32 %v4587_v25, %v4284_v13  ;;  %2990 = vmatpush.bf16.msra.mxu3 %v4265_v36  ;;  %v4576_v28 = vld [vmem:[#allocation9 + $0x94] sm:$0xf0]  ;;  %v4566_v45 = vld [vmem:[#allocation9 + $0x4c] sm:$0xf]  ;;  %v4198_v0 = vld [vmem:[#allocation9 + $0x38] sm:$0xf0] }
 0x47a   :  { %v5185_v57 = vadd.f32 %v2426_v17, %v2425_v12  ;;  %v2413_v34 = vadd.f32 %v4693_v63, %v2412_v8  ;;  %v4241_v17 = vor.u32 %v4573_v1, %v4238_v2  ;;  %v4245_v8 = vor.u32 %v4576_v28, %v4244_v4  ;;  %v4574_v12 = vld [vmem:[#allocation9 + $0x8c] sm:$0xf]  ;;  %v4172_v36 = vld [vmem:[#allocation9] sm:$0xf]  ;;  %v4559_v58 = vld [vmem:[#allocation9 + $0xc] sm:$0xf0] }
 0x47b   :  { %2949 = vmatpush.bf16.msra.mxu0 %v4285_v7  ;;  %v4230_v7 = vld [vmem:[#allocation9 + $0x78] sm:$0xf0]  ;;  %v4562_v60 = vld [vmem:[#allocation9 + $0x2c] sm:$0xf]  ;;  %v4557_v50 = vld [vmem:[#allocation9 + $0x4] sm:$0xf]  ;;  %v4173_v4 = vor.u32 %v4559_v58, %v4172_v36 }
 0x47c   :  { %4696 = vtanh.f32 %v5185_v57  ;;  %v2417_v24 = vsel %vm2416_vm6, %v4693_v63, %v2413_v34  ;;  %v4257_v63 = vor.u32 %v4577_v54, %v4254_v59  ;;  %2977 = vmatpush.bf16.msra.mxu2 %v4261_v48  ;;  %v4246_v34 = vld [vmem:[#allocation9 + $0x98] sm:$0xf0]  ;;  %v4233_v32 = vor.u32 %v4570_v39, %v4230_v7  ;;  %v4196_v54 = vld [vmem:[#allocation9 + $0x28] sm:$0xf]  ;;  %v4564_v59 = vld [vmem:[#allocation9 + $0x34] sm:$0xf0] }
 0x47d   :  { %v2422_v22 = vsel %vm2419_vm7, %v2421_v26, %v2417_v24  ;;  %v4249_v43 = vor.u32 %v4574_v12, %v4246_v34  ;;  %v4571_v24 = vld [vmem:[#allocation9 + $0x6c] sm:$0xf0]  ;;  %v4569_v26 = vld [vmem:[#allocation9 + $0x64] sm:$0xf]  ;;  %v4197_v10 = vor.u32 %v4564_v59, %v4196_v54  ;;  %v4201_v56 = vor.u32 %v4562_v60, %v4198_v0  ;;  %v4174_v28 = vld [vmem:[#allocation9 + $0x10] sm:$0xf0] }
 0x47e   :  { %2964 = vmatpush.bf16.msra.mxu1 %v4257_v63  ;;  %v4177_v12 = vor.u32 %v4557_v50, %v4174_v28 }
 0x47f   :  { %2950 = vmatpush.bf16.msra.mxu0 %v4269_v27  ;;  %2991 = vmatpush.bf16.msra.mxu3 %v4249_v43  ;;  %v4568_v27 = vld [vmem:[#allocation9 + $0x54] sm:$0xf0]  ;;  %v4558_v43 = vld [vmem:[#allocation9 + $0xc] sm:$0xf] }
 0x480   :  { %2978 = vmatpush.bf16.msra.mxu2 %v4245_v8  ;;  %v4213_v40 = vor.u32 %v4568_v27, %v4212_v31  ;;  %v4560_v8 = vld [vmem:[#allocation9 + $0x14] sm:$0xf0] }
 0x482   :  { %v4697_v15 = vpop.eup %4696  ;;  %2965 = vmatpush.bf16.msra.mxu1 %v4241_v17  ;;  %v4180_v17 = vld [vmem:[#allocation9 + $0x8] sm:$0xf] }
 0x483   :  { %v2429_v41 = vmul.f32 %v4697_v15, %v2422_v22  ;;  %2951 = vmatpush.bf16.msra.mxu0 %v4253_v47  ;;  %v4221_v15 = vor.u32 %v4571_v24, %v4220_v18  ;;  %v4222_v22 = vld [vmem:[#allocation9 + $0x70] sm:$0xf0]  ;;  %2992 = vmatpush.bf16.msra.mxu3 %v4233_v32  ;;  %v4193_v47 = vor.u32 %v4561_v51, %v4190_v53  ;;  %v4182_v18 = vld [vmem:[#allocation9 + $0x18] sm:$0xf0] }
 0x484   :  { %v4225_v13 = vor.u32 %v4569_v26, %v4222_v22  ;;  %v4181_v34 = vor.u32 %v4560_v8, %v4180_v17 }
 0x485   :  { %2431 = vst [vmem:[#allocation14 + $0x28] sm:$0xff] %v2429_v41  ;;  %v2437_v20 = vpack.c.bf16 %v2429_v41, %v2429_v41  ;;  %v4228_v41 = vld [vmem:[#allocation9 + $0x68] sm:$0xf] }
 0x486   :  { %2966 = vmatpush.bf16.msra.mxu1 %v4225_v13 }
 0x487   :  { %2638 = vmatmul.bf16.vlgmr.msrb.gmra.mxu0 %v2437_v20  ;;  %2651 = vmatmul.bf16.vlgmr.msrb.gmra.mxu1 %v2437_v20 }
 0x488   :  { %2664 = vmatmul.bf16.vlgmr.msrb.gmra.mxu2 %v2437_v20  ;;  %2677 = vmatmul.bf16.vlgmr.msrb.gmra.mxu3 %v2437_v20  ;;  %v4572_v20 = vld [vmem:[#allocation9 + $0x74] sm:$0xf0] }
 0x489   :  { %2952 = vmatpush.bf16.msra.mxu0 %v4237_v55  ;;  %v4229_v25 = vor.u32 %v4572_v20, %v4228_v41 }
 0x48a   :  { %2967 = vmatpush.bf16.msra.mxu1 %v4209_v38 }
 0x48b   :  { %2979 = vmatpush.bf16.msra.mxu2 %v4229_v25 }
 0x48d   :  { %2953 = vmatpush.bf16.msra.mxu0 %v4221_v15  ;;  %v4185_v15 = vor.u32 %v4558_v43, %v4182_v18 }
 0x48e   :  { %2968 = vmatpush.bf16.msra.mxu1 %v4193_v47 }
 0x48f   :  { %2980 = vmatpush.bf16.msra.mxu2 %v4213_v40 }
 0x491   :  { %2954 = vmatpush.bf16.msra.mxu0 %v4205_v35 }
 0x492   :  { %2969 = vmatpush.bf16.msra.mxu1 %v4177_v12 }
 0x493   :  { %2981 = vmatpush.bf16.msra.mxu2 %v4197_v10 }
 0x497   :  { %2982 = vmatpush.bf16.msra.mxu2 %v4181_v34 }
 0x504   :  { %v2639_v44 = vpop.f32.mrf.mxu0  ;;  %v2652_v19 = vpop.f32.mrf.mxu1 }
 0x505   :  { %v2682_v21 = vadd.f32 %v2639_v44, %v5114_v11  ;;  %v2683_v23 = vadd.f32 %v2652_v19, %v5117_v16  ;;  %v4188_v11 = vld [vmem:[#allocation9 + $0x20] sm:$0xf]  ;;  %v4217_v16 = vor.u32 %v4566_v45, %v4214_v42 }
 0x506   :  { %v4189_v49 = vor.u32 %v4563_v46, %v4188_v11 }
 0x507   :  { %v4167_v52 = vmul.f32 -1.442695, %v2682_v21  ;;  %v4168_v37 = vmul.f32 -1.442695, %v2683_v23  ;;  %2993 = vmatpush.bf16.msra.mxu3 %v4217_v16 }
 0x508   :  { %2955 = vmatpush.bf16.msra.mxu0 %v4189_v49 }
 0x509   :  { %4698 = vpow2.f32 %v4167_v52 }
 0x50a   :  { %4700 = vpow2.f32 %v4168_v37 }
 0x50b   :  { %v2665_v63 = vpop.f32.mrf.mxu2  ;;  %v2678_v48 = vpop.f32.mrf.mxu3  ;;  %2994 = vmatpush.bf16.msra.mxu3 %v4201_v56 }
 0x50c   :  { %v2684_v1 = vadd.f32 %v2665_v63, %v5120_v61  ;;  %v2641_v55 = vpop.f32.mrf.mxu0  ;;  %v2654_v2 = vpop.f32.mrf.mxu1  ;;  %2956 = vmatpush.bf16.msra.mxu0 %v4173_v4  ;;  %v2685_v44 = vadd.f32 %v2678_v48, %v5123_v5 }
 0x50e   :  { %v4169_v24 = vmul.f32 -1.442695, %v2684_v1 }
 0x50f   :  { %v4699_v26 = vpop.eup %4698  ;;  %2995 = vmatpush.bf16.msra.mxu3 %v4185_v15 }
 0x510   :  { %v4701_v22 = vpop.eup %4700  ;;  %v2695_v41 = vadd.f32 1.0, %v4699_v26  ;;  %4702 = vpow2.f32 %v4169_v24 }
 0x511   :  { %v2696_v61 = vadd.f32 1.0, %v4701_v22 }
 0x512   :  { %4704 = vrcp.f32 %v2695_v41  ;;  %v2709_v30 = vand.u32 2147483648, %v2695_v41  ;;  %v2707_v3 = vand.u32 2147483647, %v2695_v41  ;;  %vm2703_vm10 = vweird.f32 %v2695_v41 }
 0x513   :  { %4706 = vrcp.f32 %v2696_v61  ;;  %v2667_v20 = vpop.f32.mrf.mxu2  ;;  %v2680_v13 = vpop.f32.mrf.mxu3  ;;  %v2724_v33 = vand.u32 2147483648, %v2696_v61  ;;  %v2722_v27 = vand.u32 2147483647, %v2696_v61  ;;  %vm2718_vm11 = vweird.f32 %v2696_v61 }
 0x514   :  { %v2710_v38 = vor.u32 1.1754944e-38, %v2709_v30  ;;  %vm2708_vm14 = vcmp.eq.f32.partialorder %v2707_v3, 8.507059e+37 }
 0x515   :  { %v2725_v45 = vor.u32 1.1754944e-38, %v2724_v33  ;;  %vm2723_vm15 = vcmp.eq.f32.partialorder %v2722_v27, 8.507059e+37 }
 0x516   :  { %v4703_v25 = vpop.eup %4702 }
 0x517   :  { %v2697_v39 = vadd.f32 1.0, %v4703_v25 }
 0x518   :  { %v4705_v7 = vpop.eup %4704 }
 0x519   :  { %v4707_v19 = vpop.eup %4706  ;;  %v2699_v32 = vmul.f32 %v4705_v7, %v2695_v41  ;;  %4708 = vrcp.f32 %v2697_v39  ;;  %vm2704_vm8 = vweird.f32 %v4705_v7  ;;  %v2739_v0 = vand.u32 2147483648, %v2697_v39 }
 0x51a   :  { %v2714_v21 = vmul.f32 %v4707_v19, %v2696_v61  ;;  %4710 = vtanh.f32 %v2685_v44  ;;  %vm2719_vm9 = vweird.f32 %v4707_v19  ;;  %vm2705_vm12 = vmor %vm2703_vm10, %vm2704_vm8  ;;  %vm2733_vm1 = vweird.f32 %v2697_v39 }
 0x51b   :  { %v2700_v23 = vsub.f32 1.0, %v2699_v32  ;;  %vm2720_vm13 = vmor %vm2718_vm11, %vm2719_vm9  ;;  %v2737_v63 = vand.u32 2147483647, %v2697_v39  ;;  %v2740_v10 = vor.u32 1.1754944e-38, %v2739_v0 }
 0x51c   :  { %v2715_v29 = vsub.f32 1.0, %v2714_v21 }
 0x51d   :  { %v2701_v35 = vmul.f32 %v4705_v7, %v2700_v23  ;;  %vm2738_vm3 = vcmp.eq.f32.partialorder %v2737_v63, 8.507059e+37 }
 0x51e   :  { %v2716_v31 = vmul.f32 %v4707_v19, %v2715_v29 }
 0x51f   :  { %v4709_v52 = vpop.eup %4708  ;;  %v2702_v37 = vadd.f32 %v4705_v7, %v2701_v35 }
 0x520   :  { %v2729_v5 = vmul.f32 %v4709_v52, %v2697_v39  ;;  %v2717_v40 = vadd.f32 %v4707_v19, %v2716_v31  ;;  %v4711_v11 = vpop.eup %4710  ;;  %vm2734_vm0 = vweird.f32 %v4709_v52 }
 0x521   :  { %v2706_v42 = vsel %vm2705_vm12, %v4705_v7, %v2702_v37  ;;  %vm2735_vm2 = vmor %vm2733_vm1, %vm2734_vm0 }
 0x522   :  { %v2730_v46 = vsub.f32 1.0, %v2729_v5  ;;  %v2711_v16 = vsel %vm2708_vm14, %v2710_v38, %v2706_v42  ;;  %v2721_v49 = vsel %vm2720_vm13, %v4707_v19, %v2717_v40 }
 0x523   :  { %v2726_v51 = vsel %vm2723_vm15, %v2725_v45, %v2721_v49  ;;  %v2745_v53 = vmul.f32 %v4711_v11, %v2711_v16 }
 0x524   :  { %v2731_v54 = vmul.f32 %v4709_v52, %v2730_v46  ;;  %v2744_v47 = vmul.f32 %v2726_v51, %v5185_v57 }
 0x526   :  { %v5193_v59 = vadd.f32 %v2745_v53, %v2744_v47  ;;  %v2732_v60 = vadd.f32 %v4709_v52, %v2731_v54 }
 0x528   :  { %4712 = vtanh.f32 %v5193_v59  ;;  %v2736_v48 = vsel %vm2735_vm2, %v4709_v52, %v2732_v60 }
 0x529   :  { %v2741_v36 = vsel %vm2738_vm3, %v2740_v10, %v2736_v48 }
 0x52e   :  { %v4713_v56 = vpop.eup %4712 }
 0x52f   :  { %v2748_v58 = vmul.f32 %v4713_v56, %v2741_v36 }
 0x531   :  { %2750 = vst [vmem:[#allocation14 + $0x30] sm:$0xff] %v2748_v58  ;;  %v2756_v50 = vpack.c.bf16 %v2748_v58, %v2748_v58 }
 0x533   :  { %2957 = vmatmul.bf16.vlgmr.msra.gmra.mxu0 %v2756_v50  ;;  %2970 = vmatmul.bf16.vlgmr.msra.gmra.mxu1 %v2756_v50 }
 0x534   :  { %2983 = vmatmul.bf16.vlgmr.msra.gmra.mxu2 %v2756_v50  ;;  %2996 = vmatmul.bf16.vlgmr.msra.gmra.mxu3 %v2756_v50 }
 0x5b0   :  { %v2958_v57 = vpop.f32.mrf.mxu0  ;;  %v2971_v1 = vpop.f32.mrf.mxu1 }
 0x5b1   :  { %v3001_v55 = vadd.f32 %v2958_v57, %v5126_v6  ;;  %v3002_v2 = vadd.f32 %v2971_v1, %v5129_v9 }
 0x5b3   :  { %v4298_v4 = vmul.f32 -1.442695, %v3001_v55  ;;  %v4299_v28 = vmul.f32 -1.442695, %v3002_v2 }
 0x5b5   :  { %4714 = vpow2.f32 %v4298_v4 }
 0x5b6   :  { %4716 = vpow2.f32 %v4299_v28 }
 0x5b7   :  { %v2984_v17 = vpop.f32.mrf.mxu2  ;;  %v2997_v8 = vpop.f32.mrf.mxu3 }
 0x5b8   :  { %v3003_v12 = vadd.f32 %v2984_v17, %v5136_v62  ;;  %v2960_v34 = vpop.f32.mrf.mxu0  ;;  %v2973_v43 = vpop.f32.mrf.mxu1  ;;  %v3004_v13 = vadd.f32 %v2997_v8, %v5139_v14 }
 0x5ba   :  { %v4300_v18 = vmul.f32 -1.442695, %v3003_v12 }
 0x5bb   :  { %v4715_v24 = vpop.eup %4714 }
 0x5bc   :  { %v4717_v26 = vpop.eup %4716  ;;  %v3014_v15 = vadd.f32 1.0, %v4715_v24  ;;  %4718 = vpow2.f32 %v4300_v18 }
 0x5bd   :  { %v3015_v22 = vadd.f32 1.0, %v4717_v26 }
 0x5be   :  { %4720 = vrcp.f32 %v3014_v15  ;;  %v3028_v19 = vand.u32 2147483648, %v3014_v15  ;;  %v3026_v23 = vand.u32 2147483647, %v3014_v15  ;;  %vm3022_vm6 = vweird.f32 %v3014_v15 }
 0x5bf   :  { %4722 = vrcp.f32 %v3015_v22  ;;  %v2986_v6 = vpop.f32.mrf.mxu2  ;;  %v2999_v9 = vpop.f32.mrf.mxu3  ;;  %v3043_v32 = vand.u32 2147483648, %v3015_v22  ;;  %v3041_v30 = vand.u32 2147483647, %v3015_v22  ;;  %vm3037_vm7 = vweird.f32 %v3015_v22 }
 0x5c0   :  { %v3029_v3 = vor.u32 1.1754944e-38, %v3028_v19  ;;  %vm3027_vm10 = vcmp.eq.f32.partialorder %v3026_v23, 8.507059e+37 }
 0x5c1   :  { %v3044_v27 = vor.u32 1.1754944e-38, %v3043_v32  ;;  %vm3042_vm11 = vcmp.eq.f32.partialorder %v3041_v30, 8.507059e+37 }
 0x5c2   :  { %v4719_v41 = vpop.eup %4718 }
 0x5c3   :  { %v3016_v61 = vadd.f32 1.0, %v4719_v41 }
 0x5c4   :  { %v4721_v20 = vpop.eup %4720 }
 0x5c5   :  { %v4723_v25 = vpop.eup %4722  ;;  %v3018_v39 = vmul.f32 %v4721_v20, %v3014_v15  ;;  %4724 = vrcp.f32 %v3016_v61  ;;  %vm3023_vm4 = vweird.f32 %v4721_v20  ;;  %v3058_v51 = vand.u32 2147483648, %v3016_v61 }
 0x5c6   :  { %v3033_v62 = vmul.f32 %v4723_v25, %v3015_v22  ;;  %4726 = vtanh.f32 %v3004_v13  ;;  %vm3038_vm5 = vweird.f32 %v4723_v25  ;;  %vm3024_vm8 = vmor %vm3022_vm6, %vm3023_vm4  ;;  %vm3052_vm13 = vweird.f32 %v3016_v61 }
 0x5c7   :  { %v3019_v7 = vsub.f32 1.0, %v3018_v39  ;;  %vm3039_vm9 = vmor %vm3037_vm7, %vm3038_vm5  ;;  %v3056_v53 = vand.u32 2147483647, %v3016_v61  ;;  %v3059_v47 = vor.u32 1.1754944e-38, %v3058_v51 }
 0x5c8   :  { %v3034_v44 = vsub.f32 1.0, %v3033_v62 }
 0x5c9   :  { %v3020_v21 = vmul.f32 %v4721_v20, %v3019_v7  ;;  %vm3057_vm15 = vcmp.eq.f32.partialorder %v3056_v53, 8.507059e+37 }
 0x5ca   :  { %v3035_v29 = vmul.f32 %v4723_v25, %v3034_v44 }
 0x5cb   :  { %v4725_v33 = vpop.eup %4724  ;;  %v3021_v35 = vadd.f32 %v4721_v20, %v3020_v21 }
 0x5cc   :  { %v3048_v14 = vmul.f32 %v4725_v33, %v3016_v61  ;;  %v3036_v31 = vadd.f32 %v4723_v25, %v3035_v29  ;;  %v4727_v37 = vpop.eup %4726  ;;  %vm3053_vm12 = vweird.f32 %v4725_v33 }
 0x5cd   :  { %v3025_v52 = vsel %vm3024_vm8, %v4721_v20, %v3021_v35  ;;  %vm3054_vm14 = vmor %vm3052_vm13, %vm3053_vm12 }
 0x5ce   :  { %v3049_v5 = vsub.f32 1.0, %v3048_v14  ;;  %v3030_v38 = vsel %vm3027_vm10, %v3029_v3, %v3025_v52  ;;  %v3040_v40 = vsel %vm3039_vm9, %v4723_v25, %v3036_v31 }
 0x5cf   :  { %v3045_v45 = vsel %vm3042_vm11, %v3044_v27, %v3040_v40  ;;  %v3064_v42 = vmul.f32 %v4727_v37, %v3030_v38 }
 0x5d0   :  { %v3050_v11 = vmul.f32 %v4725_v33, %v3049_v5  ;;  %v3063_v46 = vmul.f32 %v3045_v45, %v5193_v59 }
 0x5d2   :  { %v3065_v16 = vadd.f32 %v3064_v42, %v3063_v46  ;;  %v3051_v49 = vadd.f32 %v4725_v33, %v3050_v11 }
 0x5d4   :  { %4728 = vtanh.f32 %v3065_v16  ;;  %3071 = vst [vmem:[#allocation17] sm:$0xff] %v3065_v16  ;;  %v3055_v54 = vsel %vm3054_vm14, %v4725_v33, %v3051_v49 }
 0x5d5   :  { %v3060_v60 = vsel %vm3057_vm15, %v3059_v47, %v3055_v54 }
 0x5da   :  { %v4729_v59 = vpop.eup %4728 }
 0x5db   :  { %v3067_v0 = vmul.f32 %v4729_v59, %v3060_v60 }
 0x5dd   :  { %3069 = vst [vmem:[#allocation14 + $0x38] sm:$0xff] %v3067_v0 }
 0x5de   :  { %3070 = vst [vmem:[#allocation15] sm:$0xff] %v3067_v0  ;;  %3084 = dma.vmem_to_hbm [thread:$0]  %s3077_s5, 1024, %s3079_s15, [#allocation5], %s4963_s23, %s4963_s23, %s4964_s24  }
 0x5df   :  { %3095 = dma.vmem_to_hbm [thread:$0]  %s3091_s17, 128, %s3093_s1, [#allocation16]  }
 0x5e0   :  { %3106 = dma.vmem_to_hbm [thread:$0]  %s3102_s21, 128, %s3104_s25, [#allocation16]  }
 0x5e1   :  { %4954 = dma.done.wait [#allocation5], 1024  }
 0x5e2   :  { %4955 = vsyncadd [#allocation5], 4294966272 }
 0x5e3   :  { %4956 = dma.done.wait [#allocation16], 256  }
 0x5e4   :  { %4957 = vsyncadd [#allocation16], 4294967040 }
 0x5e5   :  { %3119 = vsyncpa [#allocation4], 1 }
 0x5e6   :  { %3120 = vsyncpa [#allocation7], 1 }
 0x5e7   :  { %3121 = vsyncpa [#allocation10], 1 }
 0x5e8   :  { %3122 = vsyncpa [#allocation13], 1 }
 0x5e9   :  { %3123 = vsyncpa [#allocation5], 1 }
 0x5ea   :  { %3124 = vsyncpa [#allocation16], 1 }

</bundles_post_ra>
